<compile_context>
chip_gen: v7x
topology: tpu7x:2x2x1
jax: 0.10.0
libtpu: 0.0.40
codegen_flags: <defaults>
</compile_context>

<pallas_src>
import jax
import jax.numpy as jnp
from jax.experimental import pallas as pl
from jax.experimental.pallas import tpu as pltpu

CPAD = 128  # every intermediate channel dim is padded to one lane-width


def _round_up(x, m):
    return (x + m - 1) // m * m


# ---------------------------------------------------------------------------
# Pallas kernels
# ---------------------------------------------------------------------------
def _mm_bias_relu_kernel(x_ref, w_ref, b_ref, o_ref):
    # x: (M, K) f32, w: (K, C) bf16, b: (1, C) f32 -> relu(x @ w + b) f32
    x = x_ref[...].astype(jnp.bfloat16)
    acc = jnp.dot(x, w_ref[...], preferred_element_type=jnp.float32)
    o_ref[...] = jnp.maximum(acc + b_ref[...], 0.0).astype(o_ref.dtype)


def mm_bias_relu(x, w, b):
    """relu(x @ w + b) for a problem small enough to sit whole in VMEM."""
    M, K = x.shape
    Kw, C = w.shape
    assert K == Kw and b.shape == (1, C)
    return pl.pallas_call(
        _mm_bias_relu_kernel,
        out_shape=jax.ShapeDtypeStruct((M, C), jnp.float32),
        grid=(1,),
        in_specs=[
            pl.BlockSpec((M, K), lambda i: (0, 0)),
            pl.BlockSpec((K, C), lambda i: (0, 0)),
            pl.BlockSpec((1, C), lambda i: (0, 0)),
        ],
        out_specs=pl.BlockSpec((M, C), lambda i: (0, 0)),
        compiler_params=pltpu.CompilerParams(
            dimension_semantics=("arbitrary",)),
    )(x, w, b)


def _mm2_bias_relu_kernel(x_ref, w1_ref, b1_ref, w2_ref, b2_ref, o_ref):
    # relu(relu(x @ w1 + b1) @ w2 + b2): two chained MXU matmuls, f32 epilogue.
    x = x_ref[...].astype(jnp.bfloat16)
    h = jnp.dot(x, w1_ref[...], preferred_element_type=jnp.float32)
    h = jnp.maximum(h + b1_ref[...], 0.0)
    o = jnp.dot(h.astype(jnp.bfloat16), w2_ref[...],
                preferred_element_type=jnp.float32)
    o_ref[...] = jnp.maximum(o + b2_ref[...], 0.0).astype(o_ref.dtype)


def mm2_bias_relu(x, w1, b1, w2, b2):
    """Fused two-layer (conv4 + conv5) matmul chain."""
    M, K1 = x.shape
    _, C1 = w1.shape
    _, C2 = w2.shape
    assert w1.shape[0] == K1 and w2.shape[0] == C1
    return pl.pallas_call(
        _mm2_bias_relu_kernel,
        out_shape=jax.ShapeDtypeStruct((M, C2), jnp.float32),
        grid=(1,),
        in_specs=[
            pl.BlockSpec((M, K1), lambda i: (0, 0)),
            pl.BlockSpec((K1, C1), lambda i: (0, 0)),
            pl.BlockSpec((1, C1), lambda i: (0, 0)),
            pl.BlockSpec((C1, C2), lambda i: (0, 0)),
            pl.BlockSpec((1, C2), lambda i: (0, 0)),
        ],
        out_specs=pl.BlockSpec((M, C2), lambda i: (0, 0)),
        compiler_params=pltpu.CompilerParams(
            dimension_semantics=("arbitrary",)),
    )(x, w1, b1, w2, b2)


# ---------------------------------------------------------------------------
# NHWC im2col glue (plain JAX; no activation transposes)
# ---------------------------------------------------------------------------
def _im2col_nhwc(x, kh, kw, stride, pad):
    """NHWC -> (N*OH*OW, KH*KW*C) patches; K ordering (kh, kw, c), matching weights."""
    n, h, w, c = x.shape
    if pad:
        x = jnp.pad(x, ((0, 0), (pad, pad), (pad, pad), (0, 0)))
    oh = (h + 2 * pad - kh) // stride + 1
    ow = (w + 2 * pad - kw) // stride + 1
    cols = []
    for i in range(kh):
        for j in range(kw):
            cols.append(x[:, i:i + stride * oh:stride, j:j + stride * ow:stride, :])
    patches = jnp.concatenate(cols, axis=-1) if len(cols) > 1 else cols[0]
    return patches.reshape(n * oh * ow, kh * kw * c), oh, ow


def conv_relu_nhwc(x, w_mat, b_mat, *, kh, kw, stride, pad):
    """ConvBlk (Conv2d + ReLU) on an NHWC activation via one Pallas matmul kernel."""
    n = x.shape[0]
    patches, oh, ow = _im2col_nhwc(x, kh, kw, stride, pad)
    K = w_mat.shape[0]
    assert patches.shape[1] <= K
    if patches.shape[1] < K:          # K zero-padded to a multiple of 8 (conv1: 9->16)
        patches = jnp.pad(patches, ((0, 0), (0, K - patches.shape[1])))
    out = mm_bias_relu(patches, w_mat, b_mat)          # (N*OH*OW, CPAD)
    return out.reshape(n, oh, ow, w_mat.shape[1])


# ---------------------------------------------------------------------------
# Net_1 parameters (PyTorch-style init), one-time packing, and forward
# ---------------------------------------------------------------------------
_LAYER_CFG = (
    # name,   c_in, c_out, k, pad, stride   -- static Python config (NOT jit args)
    ("conv1",    1,    16, 3,   1,      2),
    ("convsp",  16,    16, 1,   1,      1),
    ("conv2",   16,    32, 3,   1,      2),
    ("conv3",   32,    64, 3,   0,      2),
    ("conv4",   64,   128, 3,   0,      1),
    ("conv5",  128,    10, 1,   0,      1),
)


def init_params(key):
    """PyTorch Conv2d default init: U(-1/sqrt(fan_in), 1/sqrt(fan_in)), OIHW weights."""
    params = {}
    for name, c_in, c_out, k, _pad, _stride in _LAYER_CFG:
        key, kw_key, kb_key = jax.random.split(key, 3)
        bound = float(c_in * k * k) ** -0.5
        params[name] = dict(
            w=jax.random.uniform(kw_key, (c_out, c_in, k, k), jnp.float32, -bound, bound),
            b=jax.random.uniform(kb_key, (c_out,), jnp.float32, -bound, bound),
        )
    return params


def _pack_layer(w, b, cin_pad, cout_pad):
    """OIHW f32 weight -> (KH*KW*cin_pad, cout_pad) bf16 matrix + (1, cout_pad) f32 bias."""
    c_out, c_in, kh, kw = w.shape
    wt = jnp.transpose(w, (2, 3, 1, 0))                                 # (KH, KW, Cin, Cout)
    wt = jnp.pad(wt, ((0, 0), (0, 0), (0, cin_pad - c_in), (0, cout_pad - c_out)))
    w_mat = wt.reshape(kh * kw * cin_pad, cout_pad)
    kp = _round_up(w_mat.shape[0], 8)                                   # sublane-align K
    if kp != w_mat.shape[0]:
        w_mat = jnp.pad(w_mat, ((0, kp - w_mat.shape[0]), (0, 0)))
    b_mat = jnp.pad(b, (0, cout_pad - c_out)).reshape(1, cout_pad)
    return w_mat.astype(jnp.bfloat16), b_mat


def pack_params(params):
    """One-time weight reorder / channel pad / bf16 cast (zero-padded channels stay 0)."""
    packed = {}
    prev_cout_pad = None
    for name, c_in, _c_out, _k, _pad, _stride in _LAYER_CFG:
        cin_pad = c_in if prev_cout_pad is None else prev_cout_pad
        w_mat, b_mat = _pack_layer(params[name]["w"], params[name]["b"],
                                   cin_pad=cin_pad, cout_pad=CPAD)
        packed[name] = dict(w=w_mat, b=b_mat)
        prev_cout_pad = CPAD
    return packed


@jax.jit
def net1_forward(packed, x):
    """x: (N, 1, 28, 28) NCHW (PyTorch layout) -> (N, 10) logits."""
    n = x.shape[0]
    x = jnp.transpose(x, (0, 2, 3, 1))                         # NCHW -> NHWC once (C=1)
    x = conv_relu_nhwc(x, packed["conv1"]["w"], packed["conv1"]["b"],
                       kh=3, kw=3, stride=2, pad=1)            # (N, 14, 14, 128)
    x = conv_relu_nhwc(x, packed["convsp"]["w"], packed["convsp"]["b"],
                       kh=1, kw=1, stride=1, pad=1)            # (N, 16, 16, 128)
    x = conv_relu_nhwc(x, packed["conv2"]["w"], packed["conv2"]["b"],
                       kh=3, kw=3, stride=2, pad=1)            # (N, 8, 8, 128)
    x = conv_relu_nhwc(x, packed["conv3"]["w"], packed["conv3"]["b"],
                       kh=3, kw=3, stride=2, pad=0)            # (N, 3, 3, 128)
    # do1 / do2 (Dropout2d) are identity at inference.
    if x.shape[1] == 3 and x.shape[2] == 3:
        # conv4 (3x3, pad 0, stride 1 over a 3x3 map == full flatten) + conv5 (1x1)
        # fused into one Pallas kernel with two chained MXU matmuls.
        out = mm2_bias_relu(x.reshape(n, -1),
                            packed["conv4"]["w"], packed["conv4"]["b"],
                            packed["conv5"]["w"], packed["conv5"]["b"])  # (N, 128)
        return out[:, :10]
    # Generic fallback for non-28x28 inputs (keeps PyTorch NCHW flatten order).
    x = conv_relu_nhwc(x, packed["conv4"]["w"], packed["conv4"]["b"],
                       kh=3, kw=3, stride=1, pad=0)
    x = conv_relu_nhwc(x, packed["conv5"]["w"], packed["conv5"]["b"],
                       kh=1, kw=1, stride=1, pad=0)
    x = jnp.transpose(x[..., :10], (0, 3, 1, 2))
    return x.reshape(n, -1)


if __name__ == "__main__":
    key = jax.random.PRNGKey(0)
    pkey, xkey = jax.random.split(key)
    params = init_params(pkey)
    packed = pack_params(params)        # one-time weight reorder / pad / bf16 cast
    x = jax.random.normal(xkey, (2, 1, 28, 28), jnp.float32)   # MNIST-like input
    out = net1_forward(packed, x)
    out = jax.block_until_ready(out)
    assert out.shape == (2, 10), out.shape
    print("KERNEL_OK")
</pallas_src>

<mosaic_0001>
module attributes {stable_mosaic.version = 11 : i64} {
  func.func @_mm_bias_relu_kernel(%arg0: i32, %arg1: memref<392x16xf32, #tpu.memory_space<vmem>>, %arg2: memref<16x128xbf16, #tpu.memory_space<vmem>>, %arg3: memref<1x128xf32, #tpu.memory_space<vmem>>, %arg4: memref<392x128xf32, #tpu.memory_space<vmem>>) attributes {dimension_semantics = [#tpu.dimension_semantics<arbitrary>], iteration_bounds = array<i64: 1>, scalar_prefetch = 0 : i64, scratch_operands = 0 : i64, tpu.core_type = #tpu.core_type<tc>, window_params = [{pipeline_mode = #tpu.pipeline_mode<synchronous>, transform_indices = @transform_0, window_bounds = array<i64: 392, 16>}, {pipeline_mode = #tpu.pipeline_mode<synchronous>, transform_indices = @transform_1, window_bounds = array<i64: 16, 128>}, {pipeline_mode = #tpu.pipeline_mode<synchronous>, transform_indices = @transform_2, window_bounds = array<i64: 1, 128>}, {pipeline_mode = #tpu.pipeline_mode<synchronous>, transform_indices = @transform_3, window_bounds = array<i64: 392, 128>}]} {
    %c0 = arith.constant 0 : index
    %c0_0 = arith.constant 0 : index
    %0 = vector.load %arg1[%c0, %c0_0] : memref<392x16xf32, #tpu.memory_space<vmem>>, vector<392x16xf32>
    %1 = arith.truncf %0 : vector<392x16xf32> to vector<392x16xbf16>
    %c0_1 = arith.constant 0 : index
    %c0_2 = arith.constant 0 : index
    %2 = vector.load %arg2[%c0_1, %c0_2] : memref<16x128xbf16, #tpu.memory_space<vmem>>, vector<16x128xbf16>
    %cst = arith.constant dense<0.000000e+00> : vector<392x128xf32>
    %3 = tpu.matmul %1, %2, %cst {dimension_numbers = #tpu.dot_dimension_numbers<[1], [0], [0], [1], [0, 0, 1, 1], [], []>} : vector<392x16xbf16>, vector<16x128xbf16>, vector<392x128xf32> -> vector<392x128xf32>
    %c0_3 = arith.constant 0 : index
    %c0_4 = arith.constant 0 : index
    %4 = vector.load %arg3[%c0_3, %c0_4] : memref<1x128xf32, #tpu.memory_space<vmem>>, vector<1x128xf32>
    %5 = vector.broadcast %4 : vector<1x128xf32> to vector<392x128xf32>
    %6 = arith.addf %3, %5 : vector<392x128xf32>
    %cst_5 = arith.constant 0.000000e+00 : f32
    %7 = vector.broadcast %cst_5 : f32 to vector<392x128xf32>
    %8 = arith.maximumf %6, %7 : vector<392x128xf32>
    %c0_6 = arith.constant 0 : index
    %c0_7 = arith.constant 0 : index
    %9 = vector.load %arg4[%c0_6, %c0_7] : memref<392x128xf32, #tpu.memory_space<vmem>>, vector<392x128xf32>
    tpu.vector_store %arg4[%c0_6, %c0_7], %8 {strides = array<i32>} : memref<392x128xf32, #tpu.memory_space<vmem>>, vector<392x128xf32>,
    return
  }
  func.func @transform_0(%arg0: i32) -> (i32, i32) {
    %c0_i32 = arith.constant 0 : i32
    %c0_i32_0 = arith.constant 0 : i32
    %c0_i32_1 = arith.constant 0 : i32
    return %c0_i32, %c0_i32_0 : i32, i32
  }
  func.func @transform_1(%arg0: i32) -> (i32, i32) {
    %c0_i32 = arith.constant 0 : i32
    %c0_i32_0 = arith.constant 0 : i32
    %c0_i32_1 = arith.constant 0 : i32
    return %c0_i32, %c0_i32_0 : i32, i32
  }
  func.func @transform_2(%arg0: i32) -> (i32, i32) {
    %c0_i32 = arith.constant 0 : i32
    %c0_i32_0 = arith.constant 0 : i32
    %c0_i32_1 = arith.constant 0 : i32
    return %c0_i32, %c0_i32_0 : i32, i32
  }
  func.func @transform_3(%arg0: i32) -> (i32, i32) {
    %c0_i32 = arith.constant 0 : i32
    %c0_i32_0 = arith.constant 0 : i32
    %c0_i32_1 = arith.constant 0 : i32
    return %c0_i32, %c0_i32_0 : i32, i32
  }
}

module attributes {stable_mosaic.version = 11 : i64} {
  func.func @_mm_bias_relu_kernel(%arg0: i32, %arg1: memref<512x128xf32, #tpu.memory_space<vmem>>, %arg2: memref<128x128xbf16, #tpu.memory_space<vmem>>, %arg3: memref<1x128xf32, #tpu.memory_space<vmem>>, %arg4: memref<512x128xf32, #tpu.memory_space<vmem>>) attributes {dimension_semantics = [#tpu.dimension_semantics<arbitrary>], iteration_bounds = array<i64: 1>, scalar_prefetch = 0 : i64, scratch_operands = 0 : i64, tpu.core_type = #tpu.core_type<tc>, window_params = [{pipeline_mode = #tpu.pipeline_mode<synchronous>, transform_indices = @transform_0, window_bounds = array<i64: 512, 128>}, {pipeline_mode = #tpu.pipeline_mode<synchronous>, transform_indices = @transform_1, window_bounds = array<i64: 128, 128>}, {pipeline_mode = #tpu.pipeline_mode<synchronous>, transform_indices = @transform_2, window_bounds = array<i64: 1, 128>}, {pipeline_mode = #tpu.pipeline_mode<synchronous>, transform_indices = @transform_3, window_bounds = array<i64: 512, 128>}]} {
    %c0 = arith.constant 0 : index
    %c0_0 = arith.constant 0 : index
    %0 = vector.load %arg1[%c0, %c0_0] : memref<512x128xf32, #tpu.memory_space<vmem>>, vector<512x128xf32>
    %1 = arith.truncf %0 : vector<512x128xf32> to vector<512x128xbf16>
    %c0_1 = arith.constant 0 : index
    %c0_2 = arith.constant 0 : index
    %2 = vector.load %arg2[%c0_1, %c0_2] : memref<128x128xbf16, #tpu.memory_space<vmem>>, vector<128x128xbf16>
    %cst = arith.constant dense<0.000000e+00> : vector<512x128xf32>
    %3 = tpu.matmul %1, %2, %cst {dimension_numbers = #tpu.dot_dimension_numbers<[1], [0], [0], [1], [0, 0, 1, 1], [], []>} : vector<512x128xbf16>, vector<128x128xbf16>, vector<512x128xf32> -> vector<512x128xf32>
    %c0_3 = arith.constant 0 : index
    %c0_4 = arith.constant 0 : index
    %4 = vector.load %arg3[%c0_3, %c0_4] : memref<1x128xf32, #tpu.memory_space<vmem>>, vector<1x128xf32>
    %5 = vector.broadcast %4 : vector<1x128xf32> to vector<512x128xf32>
    %6 = arith.addf %3, %5 : vector<512x128xf32>
    %cst_5 = arith.constant 0.000000e+00 : f32
    %7 = vector.broadcast %cst_5 : f32 to vector<512x128xf32>
    %8 = arith.maximumf %6, %7 : vector<512x128xf32>
    %c0_6 = arith.constant 0 : index
    %c0_7 = arith.constant 0 : index
    %9 = vector.load %arg4[%c0_6, %c0_7] : memref<512x128xf32, #tpu.memory_space<vmem>>, vector<512x128xf32>
    tpu.vector_store %arg4[%c0_6, %c0_7], %8 {strides = array<i32>} : memref<512x128xf32, #tpu.memory_space<vmem>>, vector<512x128xf32>,
    return
  }
  func.func @transform_0(%arg0: i32) -> (i32, i32) {
    %c0_i32 = arith.constant 0 : i32
    %c0_i32_0 = arith.constant 0 : i32
    %c0_i32_1 = arith.constant 0 : i32
    return %c0_i32, %c0_i32_0 : i32, i32
  }
  func.func @transform_1(%arg0: i32) -> (i32, i32) {
    %c0_i32 = arith.constant 0 : i32
    %c0_i32_0 = arith.constant 0 : i32
    %c0_i32_1 = arith.constant 0 : i32
    return %c0_i32, %c0_i32_0 : i32, i32
  }
  func.func @transform_2(%arg0: i32) -> (i32, i32) {
    %c0_i32 = arith.constant 0 : i32
    %c0_i32_0 = arith.constant 0 : i32
    %c0_i32_1 = arith.constant 0 : i32
    return %c0_i32, %c0_i32_0 : i32, i32
  }
  func.func @transform_3(%arg0: i32) -> (i32, i32) {
    %c0_i32 = arith.constant 0 : i32
    %c0_i32_0 = arith.constant 0 : i32
    %c0_i32_1 = arith.constant 0 : i32
    return %c0_i32, %c0_i32_0 : i32, i32
  }
}

module attributes {stable_mosaic.version = 11 : i64} {
  func.func @_mm_bias_relu_kernel(%arg0: i32, %arg1: memref<128x1152xf32, #tpu.memory_space<vmem>>, %arg2: memref<1152x128xbf16, #tpu.memory_space<vmem>>, %arg3: memref<1x128xf32, #tpu.memory_space<vmem>>, %arg4: memref<128x128xf32, #tpu.memory_space<vmem>>) attributes {dimension_semantics = [#tpu.dimension_semantics<arbitrary>], iteration_bounds = array<i64: 1>, scalar_prefetch = 0 : i64, scratch_operands = 0 : i64, tpu.core_type = #tpu.core_type<tc>, window_params = [{pipeline_mode = #tpu.pipeline_mode<synchronous>, transform_indices = @transform_0, window_bounds = array<i64: 128, 1152>}, {pipeline_mode = #tpu.pipeline_mode<synchronous>, transform_indices = @transform_1, window_bounds = array<i64: 1152, 128>}, {pipeline_mode = #tpu.pipeline_mode<synchronous>, transform_indices = @transform_2, window_bounds = array<i64: 1, 128>}, {pipeline_mode = #tpu.pipeline_mode<synchronous>, transform_indices = @transform_3, window_bounds = array<i64: 128, 128>}]} {
    %c0 = arith.constant 0 : index
    %c0_0 = arith.constant 0 : index
    %0 = vector.load %arg1[%c0, %c0_0] : memref<128x1152xf32, #tpu.memory_space<vmem>>, vector<128x1152xf32>
    %1 = arith.truncf %0 : vector<128x1152xf32> to vector<128x1152xbf16>
    %c0_1 = arith.constant 0 : index
    %c0_2 = arith.constant 0 : index
    %2 = vector.load %arg2[%c0_1, %c0_2] : memref<1152x128xbf16, #tpu.memory_space<vmem>>, vector<1152x128xbf16>
    %cst = arith.constant dense<0.000000e+00> : vector<128x128xf32>
    %3 = tpu.matmul %1, %2, %cst {dimension_numbers = #tpu.dot_dimension_numbers<[1], [0], [0], [1], [0, 0, 1, 1], [], []>} : vector<128x1152xbf16>, vector<1152x128xbf16>, vector<128x128xf32> -> vector<128x128xf32>
    %c0_3 = arith.constant 0 : index
    %c0_4 = arith.constant 0 : index
    %4 = vector.load %arg3[%c0_3, %c0_4] : memref<1x128xf32, #tpu.memory_space<vmem>>, vector<1x128xf32>
    %5 = vector.broadcast %4 : vector<1x128xf32> to vector<128x128xf32>
    %6 = arith.addf %3, %5 : vector<128x128xf32>
    %cst_5 = arith.constant 0.000000e+00 : f32
    %7 = vector.broadcast %cst_5 : f32 to vector<128x128xf32>
    %8 = arith.maximumf %6, %7 : vector<128x128xf32>
    %c0_6 = arith.constant 0 : index
    %c0_7 = arith.constant 0 : index
    %9 = vector.load %arg4[%c0_6, %c0_7] : memref<128x128xf32, #tpu.memory_space<vmem>>, vector<128x128xf32>
    tpu.vector_store %arg4[%c0_6, %c0_7], %8 {strides = array<i32>} : memref<128x128xf32, #tpu.memory_space<vmem>>, vector<128x128xf32>,
    return
  }
  func.func @transform_0(%arg0: i32) -> (i32, i32) {
    %c0_i32 = arith.constant 0 : i32
    %c0_i32_0 = arith.constant 0 : i32
    %c0_i32_1 = arith.constant 0 : i32
    return %c0_i32, %c0_i32_0 : i32, i32
  }
  func.func @transform_1(%arg0: i32) -> (i32, i32) {
    %c0_i32 = arith.constant 0 : i32
    %c0_i32_0 = arith.constant 0 : i32
    %c0_i32_1 = arith.constant 0 : i32
    return %c0_i32, %c0_i32_0 : i32, i32
  }
  func.func @transform_2(%arg0: i32) -> (i32, i32) {
    %c0_i32 = arith.constant 0 : i32
    %c0_i32_0 = arith.constant 0 : i32
    %c0_i32_1 = arith.constant 0 : i32
    return %c0_i32, %c0_i32_0 : i32, i32
  }
  func.func @transform_3(%arg0: i32) -> (i32, i32) {
    %c0_i32 = arith.constant 0 : i32
    %c0_i32_0 = arith.constant 0 : i32
    %c0_i32_1 = arith.constant 0 : i32
    return %c0_i32, %c0_i32_0 : i32, i32
  }
}

module attributes {stable_mosaic.version = 11 : i64} {
  func.func @_mm_bias_relu_kernel(%arg0: i32, %arg1: memref<18x1152xf32, #tpu.memory_space<vmem>>, %arg2: memref<1152x128xbf16, #tpu.memory_space<vmem>>, %arg3: memref<1x128xf32, #tpu.memory_space<vmem>>, %arg4: memref<18x128xf32, #tpu.memory_space<vmem>>) attributes {dimension_semantics = [#tpu.dimension_semantics<arbitrary>], iteration_bounds = array<i64: 1>, scalar_prefetch = 0 : i64, scratch_operands = 0 : i64, tpu.core_type = #tpu.core_type<tc>, window_params = [{pipeline_mode = #tpu.pipeline_mode<synchronous>, transform_indices = @transform_0, window_bounds = array<i64: 18, 1152>}, {pipeline_mode = #tpu.pipeline_mode<synchronous>, transform_indices = @transform_1, window_bounds = array<i64: 1152, 128>}, {pipeline_mode = #tpu.pipeline_mode<synchronous>, transform_indices = @transform_2, window_bounds = array<i64: 1, 128>}, {pipeline_mode = #tpu.pipeline_mode<synchronous>, transform_indices = @transform_3, window_bounds = array<i64: 18, 128>}]} {
    %c0 = arith.constant 0 : index
    %c0_0 = arith.constant 0 : index
    %0 = vector.load %arg1[%c0, %c0_0] : memref<18x1152xf32, #tpu.memory_space<vmem>>, vector<18x1152xf32>
    %1 = arith.truncf %0 : vector<18x1152xf32> to vector<18x1152xbf16>
    %c0_1 = arith.constant 0 : index
    %c0_2 = arith.constant 0 : index
    %2 = vector.load %arg2[%c0_1, %c0_2] : memref<1152x128xbf16, #tpu.memory_space<vmem>>, vector<1152x128xbf16>
    %cst = arith.constant dense<0.000000e+00> : vector<18x128xf32>
    %3 = tpu.matmul %1, %2, %cst {dimension_numbers = #tpu.dot_dimension_numbers<[1], [0], [0], [1], [0, 0, 1, 1], [], []>} : vector<18x1152xbf16>, vector<1152x128xbf16>, vector<18x128xf32> -> vector<18x128xf32>
    %c0_3 = arith.constant 0 : index
    %c0_4 = arith.constant 0 : index
    %4 = vector.load %arg3[%c0_3, %c0_4] : memref<1x128xf32, #tpu.memory_space<vmem>>, vector<1x128xf32>
    %5 = vector.broadcast %4 : vector<1x128xf32> to vector<18x128xf32>
    %6 = arith.addf %3, %5 : vector<18x128xf32>
    %cst_5 = arith.constant 0.000000e+00 : f32
    %7 = vector.broadcast %cst_5 : f32 to vector<18x128xf32>
    %8 = arith.maximumf %6, %7 : vector<18x128xf32>
    %c0_6 = arith.constant 0 : index
    %c0_7 = arith.constant 0 : index
    %9 = vector.load %arg4[%c0_6, %c0_7] : memref<18x128xf32, #tpu.memory_space<vmem>>, vector<18x128xf32>
    tpu.vector_store %arg4[%c0_6, %c0_7], %8 {strides = array<i32>} : memref<18x128xf32, #tpu.memory_space<vmem>>, vector<18x128xf32>,
    return
  }
  func.func @transform_0(%arg0: i32) -> (i32, i32) {
    %c0_i32 = arith.constant 0 : i32
    %c0_i32_0 = arith.constant 0 : i32
    %c0_i32_1 = arith.constant 0 : i32
    return %c0_i32, %c0_i32_0 : i32, i32
  }
  func.func @transform_1(%arg0: i32) -> (i32, i32) {
    %c0_i32 = arith.constant 0 : i32
    %c0_i32_0 = arith.constant 0 : i32
    %c0_i32_1 = arith.constant 0 : i32
    return %c0_i32, %c0_i32_0 : i32, i32
  }
  func.func @transform_2(%arg0: i32) -> (i32, i32) {
    %c0_i32 = arith.constant 0 : i32
    %c0_i32_0 = arith.constant 0 : i32
    %c0_i32_1 = arith.constant 0 : i32
    return %c0_i32, %c0_i32_0 : i32, i32
  }
  func.func @transform_3(%arg0: i32) -> (i32, i32) {
    %c0_i32 = arith.constant 0 : i32
    %c0_i32_0 = arith.constant 0 : i32
    %c0_i32_1 = arith.constant 0 : i32
    return %c0_i32, %c0_i32_0 : i32, i32
  }
}

module attributes {stable_mosaic.version = 11 : i64} {
  func.func @_mm2_bias_relu_kernel(%arg0: i32, %arg1: memref<2x1152xf32, #tpu.memory_space<vmem>>, %arg2: memref<1152x128xbf16, #tpu.memory_space<vmem>>, %arg3: memref<1x128xf32, #tpu.memory_space<vmem>>, %arg4: memref<128x128xbf16, #tpu.memory_space<vmem>>, %arg5: memref<1x128xf32, #tpu.memory_space<vmem>>, %arg6: memref<2x128xf32, #tpu.memory_space<vmem>>) attributes {dimension_semantics = [#tpu.dimension_semantics<arbitrary>], iteration_bounds = array<i64: 1>, scalar_prefetch = 0 : i64, scratch_operands = 0 : i64, tpu.core_type = #tpu.core_type<tc>, window_params = [{pipeline_mode = #tpu.pipeline_mode<synchronous>, transform_indices = @transform_0, window_bounds = array<i64: 2, 1152>}, {pipeline_mode = #tpu.pipeline_mode<synchronous>, transform_indices = @transform_1, window_bounds = array<i64: 1152, 128>}, {pipeline_mode = #tpu.pipeline_mode<synchronous>, transform_indices = @transform_2, window_bounds = array<i64: 1, 128>}, {pipeline_mode = #tpu.pipeline_mode<synchronous>, transform_indices = @transform_3, window_bounds = array<i64: 128, 128>}, {pipeline_mode = #tpu.pipeline_mode<synchronous>, transform_indices = @transform_4, window_bounds = array<i64: 1, 128>}, {pipeline_mode = #tpu.pipeline_mode<synchronous>, transform_indices = @transform_5, window_bounds = array<i64: 2, 128>}]} {
    %c0 = arith.constant 0 : index
    %c0_0 = arith.constant 0 : index
    %0 = vector.load %arg1[%c0, %c0_0] : memref<2x1152xf32, #tpu.memory_space<vmem>>, vector<2x1152xf32>
    %1 = arith.truncf %0 : vector<2x1152xf32> to vector<2x1152xbf16>
    %c0_1 = arith.constant 0 : index
    %c0_2 = arith.constant 0 : index
    %2 = vector.load %arg2[%c0_1, %c0_2] : memref<1152x128xbf16, #tpu.memory_space<vmem>>, vector<1152x128xbf16>
    %cst = arith.constant dense<0.000000e+00> : vector<2x128xf32>
    %3 = tpu.matmul %1, %2, %cst {dimension_numbers = #tpu.dot_dimension_numbers<[1], [0], [0], [1], [0, 0, 1, 1], [], []>} : vector<2x1152xbf16>, vector<1152x128xbf16>, vector<2x128xf32> -> vector<2x128xf32>
    %c0_3 = arith.constant 0 : index
    %c0_4 = arith.constant 0 : index
    %4 = vector.load %arg3[%c0_3, %c0_4] : memref<1x128xf32, #tpu.memory_space<vmem>>, vector<1x128xf32>
    %5 = vector.broadcast %4 : vector<1x128xf32> to vector<2x128xf32>
    %6 = arith.addf %3, %5 : vector<2x128xf32>
    %cst_5 = arith.constant 0.000000e+00 : f32
    %7 = vector.broadcast %cst_5 : f32 to vector<2x128xf32>
    %8 = arith.maximumf %6, %7 : vector<2x128xf32>
    %9 = arith.truncf %8 : vector<2x128xf32> to vector<2x128xbf16>
    %c0_6 = arith.constant 0 : index
    %c0_7 = arith.constant 0 : index
    %10 = vector.load %arg4[%c0_6, %c0_7] : memref<128x128xbf16, #tpu.memory_space<vmem>>, vector<128x128xbf16>
    %cst_8 = arith.constant dense<0.000000e+00> : vector<2x128xf32>
    %11 = tpu.matmul %9, %10, %cst_8 {dimension_numbers = #tpu.dot_dimension_numbers<[1], [0], [0], [1], [0, 0, 1, 1], [], []>} : vector<2x128xbf16>, vector<128x128xbf16>, vector<2x128xf32> -> vector<2x128xf32>
    %c0_9 = arith.constant 0 : index
    %c0_10 = arith.constant 0 : index
    %12 = vector.load %arg5[%c0_9, %c0_10] : memref<1x128xf32, #tpu.memory_space<vmem>>, vector<1x128xf32>
    %13 = vector.broadcast %12 : vector<1x128xf32> to vector<2x128xf32>
    %14 = arith.addf %11, %13 : vector<2x128xf32>
    %cst_11 = arith.constant 0.000000e+00 : f32
    %15 = vector.broadcast %cst_11 : f32 to vector<2x128xf32>
    %16 = arith.maximumf %14, %15 : vector<2x128xf32>
    %c0_12 = arith.constant 0 : index
    %c0_13 = arith.constant 0 : index
    %17 = vector.load %arg6[%c0_12, %c0_13] : memref<2x128xf32, #tpu.memory_space<vmem>>, vector<2x128xf32>
    tpu.vector_store %arg6[%c0_12, %c0_13], %16 {strides = array<i32>} : memref<2x128xf32, #tpu.memory_space<vmem>>, vector<2x128xf32>,
    return
  }
  func.func @transform_0(%arg0: i32) -> (i32, i32) {
    %c0_i32 = arith.constant 0 : i32
    %c0_i32_0 = arith.constant 0 : i32
    %c0_i32_1 = arith.constant 0 : i32
    return %c0_i32, %c0_i32_0 : i32, i32
  }
  func.func @transform_1(%arg0: i32) -> (i32, i32) {
    %c0_i32 = arith.constant 0 : i32
    %c0_i32_0 = arith.constant 0 : i32
    %c0_i32_1 = arith.constant 0 : i32
    return %c0_i32, %c0_i32_0 : i32, i32
  }
  func.func @transform_2(%arg0: i32) -> (i32, i32) {
    %c0_i32 = arith.constant 0 : i32
    %c0_i32_0 = arith.constant 0 : i32
    %c0_i32_1 = arith.constant 0 : i32
    return %c0_i32, %c0_i32_0 : i32, i32
  }
  func.func @transform_3(%arg0: i32) -> (i32, i32) {
    %c0_i32 = arith.constant 0 : i32
    %c0_i32_0 = arith.constant 0 : i32
    %c0_i32_1 = arith.constant 0 : i32
    return %c0_i32, %c0_i32_0 : i32, i32
  }
  func.func @transform_4(%arg0: i32) -> (i32, i32) {
    %c0_i32 = arith.constant 0 : i32
    %c0_i32_0 = arith.constant 0 : i32
    %c0_i32_1 = arith.constant 0 : i32
    return %c0_i32, %c0_i32_0 : i32, i32
  }
  func.func @transform_5(%arg0: i32) -> (i32, i32) {
    %c0_i32 = arith.constant 0 : i32
    %c0_i32_0 = arith.constant 0 : i32
    %c0_i32_1 = arith.constant 0 : i32
    return %c0_i32, %c0_i32_0 : i32, i32
  }
}

</mosaic_0001>

<bundles_post_ra>
// kernel: net1_forward.5
= control target key start
LH: loop header
LB: loop body
LE: loop exit
PB: predicated region body
PF: predicated region fallthrough
CT: control target
= control target key end

     0   :  { %v674_v0 = vmov 0.0   ;;  %vm675_vm0 = vmmov 0   ;;  %vm104_vm1 = vcmask 130048   ;;  %s1124_s1 = inlined_call_operand.vmem [shape: bf16[16,128], index: 1, kind: input, shape index: {}]   ;;  %s1125_s0 = inlined_call_operand.vmem [shape: f32[392,16], index: 0, kind: input, shape index: {}]   ;;  %s1126_s2 = inlined_call_operand.vmem [shape: f32[1,128], index: 2, kind: input, shape index: {}]   ;;  %s1127_s3 = inlined_call_operand.vmem [shape: f32[392,128], index: 3, kind: output, shape index: {}]  }
   0x1   :  { %567 = vmatprep.subr.bf16.mxu0 %v674_v0  ;;  %v673_v1 = vld [vmem:[%s1124_s1] sm:$0xff]   ;;  %569 = vmatprep.mubr.msk.bf16.mxu0 %vm675_vm0, %v674_v0  ;;  %v16_v3 = vld [vmem:[%s1125_s0 + $0x8] sm:$0xff]  ;;  %v41_v4 = vld [vmem:[%s1125_s0 + $0xd0] sm:$0xff] }
   0x2   :  { %v15_v2 = vld [vmem:[%s1125_s0] sm:$0xff]  ;;  %669 = vmatprep.subr.bf16.mxu1 %v674_v0  ;;  %621 = vmatprep.mubr.msk.bf16.mxu1 %vm675_vm0, %v674_v0  ;;  %v42_v6 = vld [vmem:[%s1125_s0 + $0xd8] sm:$0xff]  ;;  %v17_v8 = vld [vmem:[%s1125_s0 + $0x10] sm:$0xff] }
   0x3   :  { %568 = vmatpush3.bf16.msra.mxu0 %v673_v1  ;;  %v64_v5 = vpack.c.bf16 %v16_v3, %v15_v2  ;;  %670 = vmatpush3.bf16.msra.mxu1 %v673_v1  ;;  %v77_v7 = vpack.c.bf16 %v42_v6, %v41_v4  ;;  %v18_v9 = vld [vmem:[%s1125_s0 + $0x18] sm:$0xff]  ;;  %v43_v10 = vld [vmem:[%s1125_s0 + $0xe0] sm:$0xff]  ;;  %v44_v11 = vld [vmem:[%s1125_s0 + $0xe8] sm:$0xff] }
   0x4   :  { %v65_v12 = vpack.c.bf16 %v18_v9, %v17_v8  ;;  %v78_v13 = vpack.c.bf16 %v44_v11, %v43_v10  ;;  %v19_v14 = vld [vmem:[%s1125_s0 + $0x20] sm:$0xff]  ;;  %v20_v15 = vld [vmem:[%s1125_s0 + $0x28] sm:$0xff]  ;;  %v45_v16 = vld [vmem:[%s1125_s0 + $0xf0] sm:$0xff] }
   0x5   :  { %v46_v17 = vld [vmem:[%s1125_s0 + $0xf8] sm:$0xff]  ;;  %v66_v18 = vpack.c.bf16 %v20_v15, %v19_v14  ;;  %v21_v20 = vld [vmem:[%s1125_s0 + $0x30] sm:$0xff]  ;;  %v47_v22 = vld [vmem:[%s1125_s0 + $0x100] sm:$0xff] }
   0x6   :  { %570 = vmatmul.mubr.msk.bf16.vlgmr.msra.gmra.mrb[0].mxu0 %vm104_vm1, %v64_v5  ;;  %622 = vmatmul.mubr.msk.bf16.vlgmr.msra.gmra.mrb[0].mxu1 %vm104_vm1, %v77_v7  ;;  %v79_v19 = vpack.c.bf16 %v46_v17, %v45_v16  ;;  %v22_v21 = vld [vmem:[%s1125_s0 + $0x38] sm:$0xff]  ;;  %v48_v23 = vld [vmem:[%s1125_s0 + $0x108] sm:$0xff]  ;;  %v23_v26 = vld [vmem:[%s1125_s0 + $0x40] sm:$0xff] }
   0x7   :  { %573 = vmatprep.mubr.msk.bf16.mxu0 %vm675_vm0, %v674_v0  ;;  %625 = vmatprep.mubr.msk.bf16.mxu1 %vm675_vm0, %v674_v0  ;;  %v67_v24 = vpack.c.bf16 %v22_v21, %v21_v20  ;;  %v80_v25 = vpack.c.bf16 %v48_v23, %v47_v22  ;;  %v24_v27 = vld [vmem:[%s1125_s0 + $0x48] sm:$0xff]  ;;  %v49_v28 = vld [vmem:[%s1125_s0 + $0x110] sm:$0xff]  ;;  %v50_v29 = vld [vmem:[%s1125_s0 + $0x118] sm:$0xff] }
   0x8   :  { %v68_v30 = vpack.c.bf16 %v24_v27, %v23_v26  ;;  %v81_v31 = vpack.c.bf16 %v50_v29, %v49_v28  ;;  %v25_v32 = vld [vmem:[%s1125_s0 + $0x50] sm:$0xff]  ;;  %v26_v33 = vld [vmem:[%s1125_s0 + $0x58] sm:$0xff]  ;;  %v51_v34 = vld [vmem:[%s1125_s0 + $0x120] sm:$0xff] }
   0x9   :  { %v52_v35 = vld [vmem:[%s1125_s0 + $0x128] sm:$0xff]  ;;  %v69_v36 = vpack.c.bf16 %v26_v33, %v25_v32  ;;  %v27_v38 = vld [vmem:[%s1125_s0 + $0x60] sm:$0xff]  ;;  %v53_v40 = vld [vmem:[%s1125_s0 + $0x130] sm:$0xff] }
   0xa   :  { %v82_v37 = vpack.c.bf16 %v52_v35, %v51_v34  ;;  %v28_v39 = vld [vmem:[%s1125_s0 + $0x68] sm:$0xff]  ;;  %v54_v41 = vld [vmem:[%s1125_s0 + $0x138] sm:$0xff]  ;;  %v29_v44 = vld [vmem:[%s1125_s0 + $0x70] sm:$0xff] }
   0xb   :  { %v70_v42 = vpack.c.bf16 %v28_v39, %v27_v38  ;;  %v83_v43 = vpack.c.bf16 %v54_v41, %v53_v40  ;;  %v30_v45 = vld [vmem:[%s1125_s0 + $0x78] sm:$0xff]  ;;  %v55_v46 = vld [vmem:[%s1125_s0 + $0x140] sm:$0xff]  ;;  %v56_v47 = vld [vmem:[%s1125_s0 + $0x148] sm:$0xff] }
   0xc   :  { %v71_v48 = vpack.c.bf16 %v30_v45, %v29_v44  ;;  %v84_v49 = vpack.c.bf16 %v56_v47, %v55_v46  ;;  %v31_v50 = vld [vmem:[%s1125_s0 + $0x80] sm:$0xff]  ;;  %v32_v51 = vld [vmem:[%s1125_s0 + $0x88] sm:$0xff]  ;;  %v57_v52 = vld [vmem:[%s1125_s0 + $0x150] sm:$0xff] }
   0xd   :  { %v58_v53 = vld [vmem:[%s1125_s0 + $0x158] sm:$0xff]  ;;  %v72_v54 = vpack.c.bf16 %v32_v51, %v31_v50  ;;  %v33_v56 = vld [vmem:[%s1125_s0 + $0x90] sm:$0xff]  ;;  %v59_v58 = vld [vmem:[%s1125_s0 + $0x160] sm:$0xff] }
   0xe   :  { %574 = vmatmul.mubr.msk.bf16.gmra.mrb[4].mxu0 %vm104_vm1, %v65_v12  ;;  %626 = vmatmul.mubr.msk.bf16.gmra.mrb[4].mxu1 %vm104_vm1, %v78_v13  ;;  %v85_v55 = vpack.c.bf16 %v58_v53, %v57_v52  ;;  %v34_v57 = vld [vmem:[%s1125_s0 + $0x98] sm:$0xff]  ;;  %v60_v59 = vld [vmem:[%s1125_s0 + $0x168] sm:$0xff]  ;;  %v35_v62 = vld [vmem:[%s1125_s0 + $0xa0] sm:$0xff] }
   0xf   :  { %577 = vmatprep.mubr.msk.bf16.mxu0 %vm675_vm0, %v674_v0  ;;  %629 = vmatprep.mubr.msk.bf16.mxu1 %vm675_vm0, %v674_v0  ;;  %v73_v60 = vpack.c.bf16 %v34_v57, %v33_v56  ;;  %v86_v61 = vpack.c.bf16 %v60_v59, %v59_v58  ;;  %v36_v63 = vld [vmem:[%s1125_s0 + $0xa8] sm:$0xff]  ;;  %v61_v1 = vld [vmem:[%s1125_s0 + $0x170] sm:$0xff]  ;;  %v62_v2 = vld [vmem:[%s1125_s0 + $0x178] sm:$0xff] }
  0x10   :  { %v74_v3 = vpack.c.bf16 %v36_v63, %v35_v62  ;;  %v87_v4 = vpack.c.bf16 %v62_v2, %v61_v1  ;;  %v37_v5 = vld [vmem:[%s1125_s0 + $0xb0] sm:$0xff]  ;;  %v38_v6 = vld [vmem:[%s1125_s0 + $0xb8] sm:$0xff]  ;;  %v63_v7 = vld [vmem:[%s1125_s0 + $0x180] sm:$0xff] }
  0x11   :  { %v75_v8 = vpack.c.bf16 %v38_v6, %v37_v5  ;;  %v88_v9 = vpack.c.bf16 %v63_v7, %v63_v7  ;;  %v39_v10 = vld [vmem:[%s1125_s0 + $0xc0] sm:$0xff]  ;;  %v40_v11 = vld [vmem:[%s1125_s0 + $0xc8] sm:$0xff] }
  0x12   :  { %v76_v12 = vpack.c.bf16 %v40_v11, %v39_v10  ;;  %v926_v13 = vld [vmem:[%s1126_s2] ss:$0 sm:$0xff] }
  0x16   :  { %578 = vmatmul.mubr.msk.bf16.gmra.mrb[8].mxu0 %vm104_vm1, %v66_v18  ;;  %630 = vmatmul.mubr.msk.bf16.gmra.mrb[8].mxu1 %vm104_vm1, %v79_v19 }
  0x17   :  { %581 = vmatprep.mubr.msk.bf16.mxu0 %vm675_vm0, %v674_v0  ;;  %633 = vmatprep.mubr.msk.bf16.mxu1 %vm675_vm0, %v674_v0 }
  0x1e   :  { %582 = vmatmul.mubr.msk.bf16.gmra.mrb[12].mxu0 %vm104_vm1, %v67_v24  ;;  %634 = vmatmul.mubr.msk.bf16.gmra.mrb[12].mxu1 %vm104_vm1, %v80_v25 }
  0x1f   :  { %585 = vmatprep.mubr.msk.bf16.mxu0 %vm675_vm0, %v674_v0  ;;  %637 = vmatprep.mubr.msk.bf16.mxu1 %vm675_vm0, %v674_v0 }
  0x26   :  { %586 = vmatmul.mubr.msk.bf16.gmra.mrb[16].mxu0 %vm104_vm1, %v68_v30  ;;  %638 = vmatmul.mubr.msk.bf16.gmra.mrb[16].mxu1 %vm104_vm1, %v81_v31 }
  0x27   :  { %589 = vmatprep.mubr.msk.bf16.mxu0 %vm675_vm0, %v674_v0  ;;  %641 = vmatprep.mubr.msk.bf16.mxu1 %vm675_vm0, %v674_v0 }
  0x2e   :  { %590 = vmatmul.mubr.msk.bf16.gmra.mrb[20].mxu0 %vm104_vm1, %v69_v36  ;;  %642 = vmatmul.mubr.msk.bf16.gmra.mrb[20].mxu1 %vm104_vm1, %v82_v37 }
  0x2f   :  { %593 = vmatprep.mubr.msk.bf16.mxu0 %vm675_vm0, %v674_v0  ;;  %645 = vmatprep.mubr.msk.bf16.mxu1 %vm675_vm0, %v674_v0 }
  0x36   :  { %594 = vmatmul.mubr.msk.bf16.gmra.mrb[24].mxu0 %vm104_vm1, %v70_v42  ;;  %646 = vmatmul.mubr.msk.bf16.gmra.mrb[24].mxu1 %vm104_vm1, %v83_v43 }
  0x37   :  { %597 = vmatprep.mubr.msk.bf16.mxu0 %vm675_vm0, %v674_v0  ;;  %649 = vmatprep.mubr.msk.bf16.mxu1 %vm675_vm0, %v674_v0 }
  0x3e   :  { %598 = vmatmul.mubr.msk.bf16.gmra.mrb[28].mxu0 %vm104_vm1, %v71_v48  ;;  %650 = vmatmul.mubr.msk.bf16.gmra.mrb[28].mxu1 %vm104_vm1, %v84_v49 }
  0x3f   :  { %601 = vmatprep.mubr.msk.bf16.mxu0 %vm675_vm0, %v674_v0  ;;  %653 = vmatprep.mubr.msk.bf16.mxu1 %vm675_vm0, %v674_v0 }
  0x46   :  { %602 = vmatmul.mubr.msk.bf16.gmra.mrb[32].mxu0 %vm104_vm1, %v72_v54  ;;  %654 = vmatmul.mubr.msk.bf16.gmra.mrb[32].mxu1 %vm104_vm1, %v85_v55 }
  0x47   :  { %605 = vmatprep.mubr.msk.bf16.mxu0 %vm675_vm0, %v674_v0  ;;  %657 = vmatprep.mubr.msk.bf16.mxu1 %vm675_vm0, %v674_v0 }
  0x4e   :  { %606 = vmatmul.mubr.msk.bf16.gmra.mrb[36].mxu0 %vm104_vm1, %v73_v60  ;;  %658 = vmatmul.mubr.msk.bf16.gmra.mrb[36].mxu1 %vm104_vm1, %v86_v61 }
  0x4f   :  { %609 = vmatprep.mubr.msk.bf16.mxu0 %vm675_vm0, %v674_v0  ;;  %661 = vmatprep.mubr.msk.bf16.mxu1 %vm675_vm0, %v674_v0 }
  0x56   :  { %610 = vmatmul.mubr.msk.bf16.gmra.mrb[40].mxu0 %vm104_vm1, %v74_v3  ;;  %662 = vmatmul.mubr.msk.bf16.gmra.mrb[40].mxu1 %vm104_vm1, %v87_v4 }
  0x57   :  { %613 = vmatprep.mubr.msk.bf16.mxu0 %vm675_vm0, %v674_v0  ;;  %665 = vmatprep.mubr.msk.bf16.mxu1 %vm675_vm0, %v674_v0 }
  0x5e   :  { %614 = vmatmul.mubr.msk.bf16.gmra.mrb[44].mxu0 %vm104_vm1, %v75_v8  ;;  %666 = vmatmul.mubr.msk.bf16.gmra.mrb[44].mxu1 %vm104_vm1, %v88_v9 }
  0x5f   :  { %617 = vmatprep.mubr.msk.bf16.mxu0 %vm675_vm0, %v674_v0 }
  0x66   :  { %618 = vmatmul.mubr.msk.bf16.gmra.mrb[48].mxu0 %vm104_vm1, %v76_v12 }
  0xd9   :  { %v214_v14 = vpop.f32.mrb[0].mxu0  ;;  %v318_v15 = vpop.f32.mrb[0].mxu1 }
  0xda   :  { %v215_v0 = vadd.f32 %v926_v13, %v214_v14  ;;  %v571_v16 = vpop.f32.mrb[1].mxu0  ;;  %v319_v17 = vadd.f32 %v926_v13, %v318_v15  ;;  %v623_v18 = vpop.f32.mrb[1].mxu1 }
  0xdb   :  { %v217_v19 = vpop.f32.mrb[2].mxu0  ;;  %v321_v20 = vpop.f32.mrb[2].mxu1 }
  0xdc   :  { %v412_v21 = vmax.f32 %v215_v0, 0.0  ;;  %v218_v22 = vadd.f32 %v926_v13, %v217_v19  ;;  %v572_v23 = vpop.f32.mrb[3].mxu0  ;;  %v438_v24 = vmax.f32 %v319_v17, 0.0  ;;  %v322_v25 = vadd.f32 %v926_v13, %v321_v20  ;;  %v624_v26 = vpop.f32.mrb[3].mxu1 }
  0xde   :  { %461 = vst [vmem:[%s1127_s3] sm:$0xff] %v412_v21  ;;  %v413_v27 = vmax.f32 %v218_v22, 0.0  ;;  %487 = vst [vmem:[%s1127_s3 + $0xd0] sm:$0xff] %v438_v24  ;;  %v439_v28 = vmax.f32 %v322_v25, 0.0 }
  0xe0   :  { %462 = vst [vmem:[%s1127_s3 + $0x8] sm:$0xff] %v413_v27  ;;  %488 = vst [vmem:[%s1127_s3 + $0xd8] sm:$0xff] %v439_v28 }
  0xe1   :  { %v222_v29 = vpop.f32.mrb[4].mxu0  ;;  %v326_v30 = vpop.f32.mrb[4].mxu1 }
  0xe2   :  { %v223_v31 = vadd.f32 %v926_v13, %v222_v29  ;;  %v575_v32 = vpop.f32.mrb[5].mxu0  ;;  %v327_v33 = vadd.f32 %v926_v13, %v326_v30  ;;  %v627_v34 = vpop.f32.mrb[5].mxu1 }
  0xe3   :  { %v225_v35 = vpop.f32.mrb[6].mxu0  ;;  %v329_v36 = vpop.f32.mrb[6].mxu1 }
  0xe4   :  { %v414_v37 = vmax.f32 %v223_v31, 0.0  ;;  %v226_v38 = vadd.f32 %v926_v13, %v225_v35  ;;  %v576_v39 = vpop.f32.mrb[7].mxu0  ;;  %v440_v40 = vmax.f32 %v327_v33, 0.0  ;;  %v330_v41 = vadd.f32 %v926_v13, %v329_v36  ;;  %v628_v42 = vpop.f32.mrb[7].mxu1 }
  0xe6   :  { %463 = vst [vmem:[%s1127_s3 + $0x10] sm:$0xff] %v414_v37  ;;  %v415_v43 = vmax.f32 %v226_v38, 0.0  ;;  %489 = vst [vmem:[%s1127_s3 + $0xe0] sm:$0xff] %v440_v40  ;;  %v441_v44 = vmax.f32 %v330_v41, 0.0 }
  0xe8   :  { %464 = vst [vmem:[%s1127_s3 + $0x18] sm:$0xff] %v415_v43  ;;  %490 = vst [vmem:[%s1127_s3 + $0xe8] sm:$0xff] %v441_v44 }
  0xe9   :  { %v230_v45 = vpop.f32.mrb[8].mxu0  ;;  %v334_v46 = vpop.f32.mrb[8].mxu1 }
  0xea   :  { %v231_v47 = vadd.f32 %v926_v13, %v230_v45  ;;  %v579_v48 = vpop.f32.mrb[9].mxu0  ;;  %v335_v49 = vadd.f32 %v926_v13, %v334_v46  ;;  %v631_v50 = vpop.f32.mrb[9].mxu1 }
  0xeb   :  { %v233_v51 = vpop.f32.mrb[10].mxu0  ;;  %v337_v52 = vpop.f32.mrb[10].mxu1 }
  0xec   :  { %v416_v53 = vmax.f32 %v231_v47, 0.0  ;;  %v234_v54 = vadd.f32 %v926_v13, %v233_v51  ;;  %v580_v55 = vpop.f32.mrb[11].mxu0  ;;  %v442_v56 = vmax.f32 %v335_v49, 0.0  ;;  %v338_v57 = vadd.f32 %v926_v13, %v337_v52  ;;  %v632_v58 = vpop.f32.mrb[11].mxu1 }
  0xee   :  { %465 = vst [vmem:[%s1127_s3 + $0x20] sm:$0xff] %v416_v53  ;;  %v417_v59 = vmax.f32 %v234_v54, 0.0  ;;  %491 = vst [vmem:[%s1127_s3 + $0xf0] sm:$0xff] %v442_v56  ;;  %v443_v60 = vmax.f32 %v338_v57, 0.0 }
  0xf0   :  { %466 = vst [vmem:[%s1127_s3 + $0x28] sm:$0xff] %v417_v59  ;;  %492 = vst [vmem:[%s1127_s3 + $0xf8] sm:$0xff] %v443_v60 }
  0xf1   :  { %v238_v61 = vpop.f32.mrb[12].mxu0  ;;  %v342_v62 = vpop.f32.mrb[12].mxu1 }
  0xf2   :  { %v239_v63 = vadd.f32 %v926_v13, %v238_v61  ;;  %v583_v1 = vpop.f32.mrb[13].mxu0  ;;  %v343_v2 = vadd.f32 %v926_v13, %v342_v62  ;;  %v635_v3 = vpop.f32.mrb[13].mxu1 }
  0xf3   :  { %v241_v4 = vpop.f32.mrb[14].mxu0  ;;  %v345_v5 = vpop.f32.mrb[14].mxu1 }
  0xf4   :  { %v418_v6 = vmax.f32 %v239_v63, 0.0  ;;  %v242_v7 = vadd.f32 %v926_v13, %v241_v4  ;;  %v584_v8 = vpop.f32.mrb[15].mxu0  ;;  %v444_v9 = vmax.f32 %v343_v2, 0.0  ;;  %v346_v10 = vadd.f32 %v926_v13, %v345_v5  ;;  %v636_v11 = vpop.f32.mrb[15].mxu1 }
  0xf6   :  { %467 = vst [vmem:[%s1127_s3 + $0x30] sm:$0xff] %v418_v6  ;;  %v419_v12 = vmax.f32 %v242_v7, 0.0  ;;  %493 = vst [vmem:[%s1127_s3 + $0x100] sm:$0xff] %v444_v9  ;;  %v445_v14 = vmax.f32 %v346_v10, 0.0 }
  0xf8   :  { %468 = vst [vmem:[%s1127_s3 + $0x38] sm:$0xff] %v419_v12  ;;  %494 = vst [vmem:[%s1127_s3 + $0x108] sm:$0xff] %v445_v14 }
  0xf9   :  { %v246_v15 = vpop.f32.mrb[16].mxu0  ;;  %v350_v0 = vpop.f32.mrb[16].mxu1 }
  0xfa   :  { %v247_v16 = vadd.f32 %v926_v13, %v246_v15  ;;  %v587_v17 = vpop.f32.mrb[17].mxu0  ;;  %v351_v18 = vadd.f32 %v926_v13, %v350_v0  ;;  %v639_v19 = vpop.f32.mrb[17].mxu1 }
  0xfb   :  { %v249_v20 = vpop.f32.mrb[18].mxu0  ;;  %v353_v21 = vpop.f32.mrb[18].mxu1 }
  0xfc   :  { %v420_v22 = vmax.f32 %v247_v16, 0.0  ;;  %v250_v23 = vadd.f32 %v926_v13, %v249_v20  ;;  %v588_v24 = vpop.f32.mrb[19].mxu0  ;;  %v446_v25 = vmax.f32 %v351_v18, 0.0  ;;  %v354_v26 = vadd.f32 %v926_v13, %v353_v21  ;;  %v640_v27 = vpop.f32.mrb[19].mxu1 }
  0xfe   :  { %469 = vst [vmem:[%s1127_s3 + $0x40] sm:$0xff] %v420_v22  ;;  %v421_v28 = vmax.f32 %v250_v23, 0.0  ;;  %495 = vst [vmem:[%s1127_s3 + $0x110] sm:$0xff] %v446_v25  ;;  %v447_v29 = vmax.f32 %v354_v26, 0.0 }
 0x100   :  { %470 = vst [vmem:[%s1127_s3 + $0x48] sm:$0xff] %v421_v28  ;;  %496 = vst [vmem:[%s1127_s3 + $0x118] sm:$0xff] %v447_v29 }
 0x101   :  { %v254_v30 = vpop.f32.mrb[20].mxu0  ;;  %v358_v31 = vpop.f32.mrb[20].mxu1 }
 0x102   :  { %v255_v32 = vadd.f32 %v926_v13, %v254_v30  ;;  %v591_v33 = vpop.f32.mrb[21].mxu0  ;;  %v359_v34 = vadd.f32 %v926_v13, %v358_v31  ;;  %v643_v35 = vpop.f32.mrb[21].mxu1 }
 0x103   :  { %v257_v36 = vpop.f32.mrb[22].mxu0  ;;  %v361_v37 = vpop.f32.mrb[22].mxu1 }
 0x104   :  { %v422_v38 = vmax.f32 %v255_v32, 0.0  ;;  %v258_v39 = vadd.f32 %v926_v13, %v257_v36  ;;  %v592_v40 = vpop.f32.mrb[23].mxu0  ;;  %v448_v41 = vmax.f32 %v359_v34, 0.0  ;;  %v362_v42 = vadd.f32 %v926_v13, %v361_v37  ;;  %v644_v43 = vpop.f32.mrb[23].mxu1 }
 0x106   :  { %471 = vst [vmem:[%s1127_s3 + $0x50] sm:$0xff] %v422_v38  ;;  %v423_v44 = vmax.f32 %v258_v39, 0.0  ;;  %497 = vst [vmem:[%s1127_s3 + $0x120] sm:$0xff] %v448_v41  ;;  %v449_v45 = vmax.f32 %v362_v42, 0.0 }
 0x108   :  { %472 = vst [vmem:[%s1127_s3 + $0x58] sm:$0xff] %v423_v44  ;;  %498 = vst [vmem:[%s1127_s3 + $0x128] sm:$0xff] %v449_v45 }
 0x109   :  { %v262_v46 = vpop.f32.mrb[24].mxu0  ;;  %v366_v47 = vpop.f32.mrb[24].mxu1 }
 0x10a   :  { %v263_v48 = vadd.f32 %v926_v13, %v262_v46  ;;  %v595_v49 = vpop.f32.mrb[25].mxu0  ;;  %v367_v50 = vadd.f32 %v926_v13, %v366_v47  ;;  %v647_v51 = vpop.f32.mrb[25].mxu1 }
 0x10b   :  { %v265_v52 = vpop.f32.mrb[26].mxu0  ;;  %v369_v53 = vpop.f32.mrb[26].mxu1 }
 0x10c   :  { %v424_v54 = vmax.f32 %v263_v48, 0.0  ;;  %v266_v55 = vadd.f32 %v926_v13, %v265_v52  ;;  %v596_v56 = vpop.f32.mrb[27].mxu0  ;;  %v450_v57 = vmax.f32 %v367_v50, 0.0  ;;  %v370_v58 = vadd.f32 %v926_v13, %v369_v53  ;;  %v648_v59 = vpop.f32.mrb[27].mxu1 }
 0x10e   :  { %473 = vst [vmem:[%s1127_s3 + $0x60] sm:$0xff] %v424_v54  ;;  %v425_v60 = vmax.f32 %v266_v55, 0.0  ;;  %499 = vst [vmem:[%s1127_s3 + $0x130] sm:$0xff] %v450_v57  ;;  %v451_v61 = vmax.f32 %v370_v58, 0.0 }
 0x110   :  { %474 = vst [vmem:[%s1127_s3 + $0x68] sm:$0xff] %v425_v60  ;;  %500 = vst [vmem:[%s1127_s3 + $0x138] sm:$0xff] %v451_v61 }
 0x111   :  { %v270_v62 = vpop.f32.mrb[28].mxu0  ;;  %v374_v63 = vpop.f32.mrb[28].mxu1 }
 0x112   :  { %v271_v1 = vadd.f32 %v926_v13, %v270_v62  ;;  %v599_v2 = vpop.f32.mrb[29].mxu0  ;;  %v375_v3 = vadd.f32 %v926_v13, %v374_v63  ;;  %v651_v4 = vpop.f32.mrb[29].mxu1 }
 0x113   :  { %v273_v5 = vpop.f32.mrb[30].mxu0  ;;  %v377_v6 = vpop.f32.mrb[30].mxu1 }
 0x114   :  { %v426_v7 = vmax.f32 %v271_v1, 0.0  ;;  %v274_v8 = vadd.f32 %v926_v13, %v273_v5  ;;  %v600_v9 = vpop.f32.mrb[31].mxu0  ;;  %v452_v10 = vmax.f32 %v375_v3, 0.0  ;;  %v378_v11 = vadd.f32 %v926_v13, %v377_v6  ;;  %v652_v12 = vpop.f32.mrb[31].mxu1 }
 0x116   :  { %475 = vst [vmem:[%s1127_s3 + $0x70] sm:$0xff] %v426_v7  ;;  %v427_v14 = vmax.f32 %v274_v8, 0.0  ;;  %501 = vst [vmem:[%s1127_s3 + $0x140] sm:$0xff] %v452_v10  ;;  %v453_v15 = vmax.f32 %v378_v11, 0.0 }
 0x118   :  { %476 = vst [vmem:[%s1127_s3 + $0x78] sm:$0xff] %v427_v14  ;;  %502 = vst [vmem:[%s1127_s3 + $0x148] sm:$0xff] %v453_v15 }
 0x119   :  { %v278_v0 = vpop.f32.mrb[32].mxu0  ;;  %v382_v16 = vpop.f32.mrb[32].mxu1 }
 0x11a   :  { %v279_v17 = vadd.f32 %v926_v13, %v278_v0  ;;  %v603_v18 = vpop.f32.mrb[33].mxu0  ;;  %v383_v19 = vadd.f32 %v926_v13, %v382_v16  ;;  %v655_v20 = vpop.f32.mrb[33].mxu1 }
 0x11b   :  { %v281_v21 = vpop.f32.mrb[34].mxu0  ;;  %v385_v22 = vpop.f32.mrb[34].mxu1 }
 0x11c   :  { %v428_v23 = vmax.f32 %v279_v17, 0.0  ;;  %v282_v24 = vadd.f32 %v926_v13, %v281_v21  ;;  %v604_v25 = vpop.f32.mrb[35].mxu0  ;;  %v454_v26 = vmax.f32 %v383_v19, 0.0  ;;  %v386_v27 = vadd.f32 %v926_v13, %v385_v22  ;;  %v656_v28 = vpop.f32.mrb[35].mxu1 }
 0x11e   :  { %477 = vst [vmem:[%s1127_s3 + $0x80] sm:$0xff] %v428_v23  ;;  %v429_v29 = vmax.f32 %v282_v24, 0.0  ;;  %503 = vst [vmem:[%s1127_s3 + $0x150] sm:$0xff] %v454_v26  ;;  %v455_v30 = vmax.f32 %v386_v27, 0.0 }
 0x120   :  { %478 = vst [vmem:[%s1127_s3 + $0x88] sm:$0xff] %v429_v29  ;;  %504 = vst [vmem:[%s1127_s3 + $0x158] sm:$0xff] %v455_v30 }
 0x121   :  { %v286_v31 = vpop.f32.mrb[36].mxu0  ;;  %v390_v32 = vpop.f32.mrb[36].mxu1 }
 0x122   :  { %v287_v33 = vadd.f32 %v926_v13, %v286_v31  ;;  %v607_v34 = vpop.f32.mrb[37].mxu0  ;;  %v391_v35 = vadd.f32 %v926_v13, %v390_v32  ;;  %v659_v36 = vpop.f32.mrb[37].mxu1 }
 0x123   :  { %v289_v37 = vpop.f32.mrb[38].mxu0  ;;  %v393_v38 = vpop.f32.mrb[38].mxu1 }
 0x124   :  { %v430_v39 = vmax.f32 %v287_v33, 0.0  ;;  %v290_v40 = vadd.f32 %v926_v13, %v289_v37  ;;  %v608_v41 = vpop.f32.mrb[39].mxu0  ;;  %v456_v42 = vmax.f32 %v391_v35, 0.0  ;;  %v394_v43 = vadd.f32 %v926_v13, %v393_v38  ;;  %v660_v44 = vpop.f32.mrb[39].mxu1 }
 0x126   :  { %479 = vst [vmem:[%s1127_s3 + $0x90] sm:$0xff] %v430_v39  ;;  %v431_v45 = vmax.f32 %v290_v40, 0.0  ;;  %505 = vst [vmem:[%s1127_s3 + $0x160] sm:$0xff] %v456_v42  ;;  %v457_v46 = vmax.f32 %v394_v43, 0.0 }
 0x128   :  { %480 = vst [vmem:[%s1127_s3 + $0x98] sm:$0xff] %v431_v45  ;;  %506 = vst [vmem:[%s1127_s3 + $0x168] sm:$0xff] %v457_v46 }
 0x129   :  { %v294_v47 = vpop.f32.mrb[40].mxu0  ;;  %v398_v48 = vpop.f32.mrb[40].mxu1 }
 0x12a   :  { %v295_v49 = vadd.f32 %v926_v13, %v294_v47  ;;  %v611_v50 = vpop.f32.mrb[41].mxu0  ;;  %v399_v51 = vadd.f32 %v926_v13, %v398_v48  ;;  %v663_v52 = vpop.f32.mrb[41].mxu1 }
 0x12b   :  { %v297_v53 = vpop.f32.mrb[42].mxu0  ;;  %v401_v54 = vpop.f32.mrb[42].mxu1 }
 0x12c   :  { %v432_v55 = vmax.f32 %v295_v49, 0.0  ;;  %v298_v56 = vadd.f32 %v926_v13, %v297_v53  ;;  %v612_v57 = vpop.f32.mrb[43].mxu0  ;;  %v458_v58 = vmax.f32 %v399_v51, 0.0  ;;  %v402_v59 = vadd.f32 %v926_v13, %v401_v54  ;;  %v664_v60 = vpop.f32.mrb[43].mxu1 }
 0x12e   :  { %481 = vst [vmem:[%s1127_s3 + $0xa0] sm:$0xff] %v432_v55  ;;  %v433_v61 = vmax.f32 %v298_v56, 0.0  ;;  %507 = vst [vmem:[%s1127_s3 + $0x170] sm:$0xff] %v458_v58  ;;  %v459_v62 = vmax.f32 %v402_v59, 0.0 }
 0x130   :  { %482 = vst [vmem:[%s1127_s3 + $0xa8] sm:$0xff] %v433_v61  ;;  %508 = vst [vmem:[%s1127_s3 + $0x178] sm:$0xff] %v459_v62 }
 0x131   :  { %v302_v63 = vpop.f32.mrb[44].mxu0  ;;  %v406_v1 = vpop.f32.mrb[44].mxu1 }
 0x132   :  { %v303_v2 = vadd.f32 %v926_v13, %v302_v63  ;;  %v615_v3 = vpop.f32.mrb[45].mxu0  ;;  %v407_v4 = vadd.f32 %v926_v13, %v406_v1  ;;  %v667_v5 = vpop.f32.mrb[45].mxu1 }
 0x133   :  { %v305_v6 = vpop.f32.mrb[46].mxu0  ;;  %v409_v7 = vpop.f32.mrb[46].mxu1 }
 0x134   :  { %v434_v8 = vmax.f32 %v303_v2, 0.0  ;;  %v306_v9 = vadd.f32 %v926_v13, %v305_v6  ;;  %v616_v10 = vpop.f32.mrb[47].mxu0  ;;  %v460_v11 = vmax.f32 %v407_v4, 0.0  ;;  %v668_v12 = vpop.f32.mrb[47].mxu1 }
 0x136   :  { %483 = vst [vmem:[%s1127_s3 + $0xb0] sm:$0xff] %v434_v8  ;;  %v435_v14 = vmax.f32 %v306_v9, 0.0  ;;  %509 = vst [vmem:[%s1127_s3 + $0x180] sm:$0xff] %v460_v11 }
 0x138   :  { %484 = vst [vmem:[%s1127_s3 + $0xb8] sm:$0xff] %v435_v14 }
 0x139   :  { %v310_v15 = vpop.f32.mrb[48].mxu0 }
 0x13a   :  { %v311_v0 = vadd.f32 %v926_v13, %v310_v15  ;;  %v619_v16 = vpop.f32.mrb[49].mxu0 }
 0x13b   :  { %v313_v17 = vpop.f32.mrb[50].mxu0 }
 0x13c   :  { %v436_v18 = vmax.f32 %v311_v0, 0.0  ;;  %v314_v19 = vadd.f32 %v926_v13, %v313_v17  ;;  %v620_v20 = vpop.f32.mrb[51].mxu0 }
 0x13e   :  { %485 = vst [vmem:[%s1127_s3 + $0xc0] sm:$0xff] %v436_v18  ;;  %v437_v21 = vmax.f32 %v314_v19, 0.0 }
 0x140   :  { %486 = vst [vmem:[%s1127_s3 + $0xc8] sm:$0xff] %v437_v21 }

// kernel: net1_forward.6
= control target key start
LH: loop header
LB: loop body
LE: loop exit
PB: predicated region body
PF: predicated region fallthrough
CT: control target
= control target key end

     0   :  { %s1253_s1 = inlined_call_operand.vmem [shape: bf16[128,128], index: 1, kind: input, shape index: {}]   ;;  %s1254_s0 = inlined_call_operand.vmem [shape: f32[512,128], index: 0, kind: input, shape index: {}]   ;;  %s1255_s2 = inlined_call_operand.vmem [shape: f32[1,128], index: 2, kind: input, shape index: {}]   ;;  %s1256_s3 = inlined_call_operand.vmem [shape: f32[512,128], index: 3, kind: output, shape index: {}]  }
   0x1   :  { %v748_v0 = vld [vmem:[%s1253_s1] sm:$0xff]   ;;  %v749_v1 = vld [vmem:[%s1253_s1 + $0x8] sm:$0xff]   ;;  %v750_v2 = vld [vmem:[%s1253_s1 + $0x10] sm:$0xff]  }
   0x2   :  { %652 = vmatprep.subr.bf16.mxu0 %v748_v0  ;;  %732 = vmatprep.subr.bf16.mxu1 %v748_v0  ;;  %v751_v3 = vld [vmem:[%s1253_s1 + $0x18] sm:$0xff]   ;;  %v15_v4 = vld [vmem:[%s1254_s0] sm:$0xff]  ;;  %v16_v5 = vld [vmem:[%s1254_s0 + $0x8] sm:$0xff] }
   0x3   :  { %653 = vmatpush3.bf16.msra.mxu0 %v748_v0  ;;  %740 = vmatpush3.bf16.msra.mxu1 %v748_v0  ;;  %v47_v6 = vld [vmem:[%s1254_s0 + $0x100] sm:$0xff]  ;;  %v79_v7 = vpack.c.bf16 %v16_v5, %v15_v4  ;;  %v48_v8 = vld [vmem:[%s1254_s0 + $0x108] sm:$0xff]  ;;  %v754_v12 = vld [vmem:[%s1253_s1 + $0x30] sm:$0xff]  }
   0x4   :  { %654 = vmatprep.subr.bf16.mxu0 %v749_v1  ;;  %733 = vmatprep.subr.bf16.mxu1 %v749_v1  ;;  %v95_v9 = vpack.c.bf16 %v48_v8, %v47_v6  ;;  %v752_v10 = vld [vmem:[%s1253_s1 + $0x20] sm:$0xff]   ;;  %v753_v11 = vld [vmem:[%s1253_s1 + $0x28] sm:$0xff]   ;;  %v755_v13 = vld [vmem:[%s1253_s1 + $0x38] sm:$0xff]  }
   0x5   :  { %668 = vmatprep.mubr.bf16.mxu0 %v79_v7  ;;  %v17_v14 = vld [vmem:[%s1254_s0 + $0x10] sm:$0xff]  ;;  %v18_v15 = vld [vmem:[%s1254_s0 + $0x18] sm:$0xff]  ;;  %v19_v18 = vld [vmem:[%s1254_s0 + $0x20] sm:$0xff] }
   0x6   :  { %700 = vmatprep.mubr.bf16.mxu1 %v95_v9  ;;  %v49_v16 = vld [vmem:[%s1254_s0 + $0x110] sm:$0xff]  ;;  %v50_v17 = vld [vmem:[%s1254_s0 + $0x118] sm:$0xff]  ;;  %v20_v19 = vld [vmem:[%s1254_s0 + $0x28] sm:$0xff]  ;;  %v80_v22 = vpack.c.bf16 %v18_v15, %v17_v14 }
   0x7   :  { %655 = vmatpush3.bf16.msra.mxu0 %v749_v1  ;;  %741 = vmatpush3.bf16.msra.mxu1 %v749_v1  ;;  %v51_v20 = vld [vmem:[%s1254_s0 + $0x120] sm:$0xff]  ;;  %v52_v21 = vld [vmem:[%s1254_s0 + $0x128] sm:$0xff]  ;;  %v96_v23 = vpack.c.bf16 %v50_v17, %v49_v16  ;;  %v81_v24 = vpack.c.bf16 %v20_v19, %v19_v18  ;;  %v21_v26 = vld [vmem:[%s1254_s0 + $0x30] sm:$0xff] }
   0x8   :  { %656 = vmatprep.subr.bf16.mxu0 %v750_v2  ;;  %734 = vmatprep.subr.bf16.mxu1 %v750_v2  ;;  %v97_v25 = vpack.c.bf16 %v52_v21, %v51_v20  ;;  %v22_v27 = vld [vmem:[%s1254_s0 + $0x38] sm:$0xff]  ;;  %v53_v28 = vld [vmem:[%s1254_s0 + $0x130] sm:$0xff]  ;;  %v23_v30 = vld [vmem:[%s1254_s0 + $0x40] sm:$0xff] }
   0x9   :  { %v54_v29 = vld [vmem:[%s1254_s0 + $0x138] sm:$0xff]  ;;  %v24_v31 = vld [vmem:[%s1254_s0 + $0x48] sm:$0xff]  ;;  %v55_v32 = vld [vmem:[%s1254_s0 + $0x140] sm:$0xff]  ;;  %v82_v34 = vpack.c.bf16 %v22_v27, %v21_v26 }
   0xa   :  { %v56_v33 = vld [vmem:[%s1254_s0 + $0x148] sm:$0xff]  ;;  %v98_v35 = vpack.c.bf16 %v54_v29, %v53_v28  ;;  %v83_v36 = vpack.c.bf16 %v24_v31, %v23_v30  ;;  %v25_v38 = vld [vmem:[%s1254_s0 + $0x50] sm:$0xff]  ;;  %v26_v39 = vld [vmem:[%s1254_s0 + $0x58] sm:$0xff] }
   0xb   :  { %657 = vmatpush3.bf16.msra.mxu0 %v750_v2  ;;  %742 = vmatpush3.bf16.msra.mxu1 %v750_v2  ;;  %v99_v37 = vpack.c.bf16 %v56_v33, %v55_v32  ;;  %v57_v40 = vld [vmem:[%s1254_s0 + $0x150] sm:$0xff]  ;;  %v58_v41 = vld [vmem:[%s1254_s0 + $0x158] sm:$0xff]  ;;  %v27_v42 = vld [vmem:[%s1254_s0 + $0x60] sm:$0xff]  ;;  %v84_v46 = vpack.c.bf16 %v26_v39, %v25_v38 }
   0xc   :  { %658 = vmatprep.subr.bf16.mxu0 %v751_v3  ;;  %735 = vmatprep.subr.bf16.mxu1 %v751_v3  ;;  %v28_v43 = vld [vmem:[%s1254_s0 + $0x68] sm:$0xff]  ;;  %v59_v44 = vld [vmem:[%s1254_s0 + $0x160] sm:$0xff]  ;;  %v100_v47 = vpack.c.bf16 %v58_v41, %v57_v40  ;;  %v29_v50 = vld [vmem:[%s1254_s0 + $0x70] sm:$0xff] }
   0xd   :  { %v60_v45 = vld [vmem:[%s1254_s0 + $0x168] sm:$0xff]  ;;  %v85_v48 = vpack.c.bf16 %v28_v43, %v27_v42  ;;  %v30_v51 = vld [vmem:[%s1254_s0 + $0x78] sm:$0xff]  ;;  %v61_v52 = vld [vmem:[%s1254_s0 + $0x170] sm:$0xff] }
   0xe   :  { %v101_v49 = vpack.c.bf16 %v60_v45, %v59_v44  ;;  %v62_v53 = vld [vmem:[%s1254_s0 + $0x178] sm:$0xff]  ;;  %v31_v54 = vld [vmem:[%s1254_s0 + $0x80] sm:$0xff]  ;;  %v32_v55 = vld [vmem:[%s1254_s0 + $0x88] sm:$0xff]  ;;  %v86_v58 = vpack.c.bf16 %v30_v51, %v29_v50 }
   0xf   :  { %659 = vmatpush3.bf16.msra.mxu0 %v751_v3  ;;  %743 = vmatpush3.bf16.msra.mxu1 %v751_v3  ;;  %v63_v56 = vld [vmem:[%s1254_s0 + $0x180] sm:$0xff]  ;;  %v64_v57 = vld [vmem:[%s1254_s0 + $0x188] sm:$0xff]  ;;  %v102_v59 = vpack.c.bf16 %v62_v53, %v61_v52  ;;  %v87_v60 = vpack.c.bf16 %v32_v55, %v31_v54  ;;  %v33_v62 = vld [vmem:[%s1254_s0 + $0x90] sm:$0xff] }
  0x10   :  { %660 = vmatprep.subr.bf16.mxu0 %v752_v10  ;;  %736 = vmatprep.subr.bf16.mxu1 %v752_v10  ;;  %v103_v61 = vpack.c.bf16 %v64_v57, %v63_v56  ;;  %v34_v63 = vld [vmem:[%s1254_s0 + $0x98] sm:$0xff]  ;;  %v65_v0 = vld [vmem:[%s1254_s0 + $0x190] sm:$0xff]  ;;  %v35_v2 = vld [vmem:[%s1254_s0 + $0xa0] sm:$0xff] }
  0x11   :  { %v66_v1 = vld [vmem:[%s1254_s0 + $0x198] sm:$0xff]  ;;  %v36_v3 = vld [vmem:[%s1254_s0 + $0xa8] sm:$0xff]  ;;  %v67_v4 = vld [vmem:[%s1254_s0 + $0x1a0] sm:$0xff]  ;;  %v88_v6 = vpack.c.bf16 %v34_v63, %v33_v62 }
  0x12   :  { %v68_v5 = vld [vmem:[%s1254_s0 + $0x1a8] sm:$0xff]  ;;  %v104_v7 = vpack.c.bf16 %v66_v1, %v65_v0  ;;  %v89_v8 = vpack.c.bf16 %v36_v3, %v35_v2  ;;  %v39_v14 = vld [vmem:[%s1254_s0 + $0xc0] sm:$0xff] }
  0x13   :  { %661 = vmatpush3.bf16.msra.mxu0 %v752_v10  ;;  %744 = vmatpush3.bf16.msra.mxu1 %v752_v10  ;;  %v105_v9 = vpack.c.bf16 %v68_v5, %v67_v4  ;;  %v37_v10 = vld [vmem:[%s1254_s0 + $0xb0] sm:$0xff]  ;;  %v40_v15 = vld [vmem:[%s1254_s0 + $0xc8] sm:$0xff]  ;;  %v71_v16 = vld [vmem:[%s1254_s0 + $0x1c0] sm:$0xff] }
  0x14   :  { %662 = vmatprep.subr.bf16.mxu0 %v753_v11  ;;  %737 = vmatprep.subr.bf16.mxu1 %v753_v11  ;;  %v72_v17 = vld [vmem:[%s1254_s0 + $0x1c8] sm:$0xff]  ;;  %v91_v20 = vpack.c.bf16 %v40_v15, %v39_v14  ;;  %v43_v26 = vld [vmem:[%s1254_s0 + $0xe0] sm:$0xff] }
  0x15   :  { %v107_v21 = vpack.c.bf16 %v72_v17, %v71_v16  ;;  %v44_v27 = vld [vmem:[%s1254_s0 + $0xe8] sm:$0xff]  ;;  %v75_v28 = vld [vmem:[%s1254_s0 + $0x1e0] sm:$0xff] }
  0x16   :  { %v76_v29 = vld [vmem:[%s1254_s0 + $0x1e8] sm:$0xff]  ;;  %v93_v32 = vpack.c.bf16 %v44_v27, %v43_v26  ;;  %v995_v40 = vld [vmem:[%s1255_s2] ss:$0 sm:$0xff] }
  0x17   :  { %663 = vmatpush3.bf16.msra.mxu0 %v753_v11  ;;  %745 = vmatpush3.bf16.msra.mxu1 %v753_v11  ;;  %v38_v11 = vld [vmem:[%s1254_s0 + $0xb8] sm:$0xff]  ;;  %v109_v33 = vpack.c.bf16 %v76_v29, %v75_v28 }
  0x18   :  { %664 = vmatprep.subr.bf16.mxu0 %v754_v12  ;;  %738 = vmatprep.subr.bf16.mxu1 %v754_v12  ;;  %v90_v18 = vpack.c.bf16 %v38_v11, %v37_v10 }
  0x1b   :  { %665 = vmatpush3.bf16.msra.mxu0 %v754_v12  ;;  %746 = vmatpush3.bf16.msra.mxu1 %v754_v12  ;;  %v69_v12 = vld [vmem:[%s1254_s0 + $0x1b0] sm:$0xff] }
  0x1c   :  { %666 = vmatprep.subr.bf16.mxu0 %v755_v13  ;;  %739 = vmatprep.subr.bf16.mxu1 %v755_v13 }
  0x1f   :  { %667 = vmatpush3.bf16.msra.mxu0 %v755_v13  ;;  %747 = vmatpush3.bf16.msra.mxu1 %v755_v13  ;;  %v70_v13 = vld [vmem:[%s1254_s0 + $0x1b8] sm:$0xff] }
  0x20   :  { %v106_v19 = vpack.c.bf16 %v70_v13, %v69_v12 }
  0x22   :  { %669 = vmatmul.mubr.bf16.vlgmr.msra.gmra.mrb[0].mxu0 %v80_v22  ;;  %701 = vmatmul.mubr.bf16.vlgmr.msra.gmra.mrb[0].mxu1 %v96_v23  ;;  %v41_v22 = vld [vmem:[%s1254_s0 + $0xd0] sm:$0xff]  ;;  %v42_v23 = vld [vmem:[%s1254_s0 + $0xd8] sm:$0xff] }
  0x23   :  { %672 = vmatprep.mubr.bf16.mxu0 %v81_v24  ;;  %704 = vmatprep.mubr.bf16.mxu1 %v97_v25  ;;  %v73_v24 = vld [vmem:[%s1254_s0 + $0x1d0] sm:$0xff]  ;;  %v74_v25 = vld [vmem:[%s1254_s0 + $0x1d8] sm:$0xff]  ;;  %v92_v30 = vpack.c.bf16 %v42_v23, %v41_v22 }
  0x24   :  { %v108_v31 = vpack.c.bf16 %v74_v25, %v73_v24 }
  0x2a   :  { %673 = vmatmul.mubr.bf16.gmra.mrb[4].mxu0 %v82_v34  ;;  %705 = vmatmul.mubr.bf16.gmra.mrb[4].mxu1 %v98_v35  ;;  %v45_v34 = vld [vmem:[%s1254_s0 + $0xf0] sm:$0xff]  ;;  %v46_v35 = vld [vmem:[%s1254_s0 + $0xf8] sm:$0xff] }
  0x2b   :  { %676 = vmatprep.mubr.bf16.mxu0 %v83_v36  ;;  %708 = vmatprep.mubr.bf16.mxu1 %v99_v37  ;;  %v77_v36 = vld [vmem:[%s1254_s0 + $0x1f0] sm:$0xff]  ;;  %v78_v37 = vld [vmem:[%s1254_s0 + $0x1f8] sm:$0xff]  ;;  %v94_v38 = vpack.c.bf16 %v46_v35, %v45_v34 }
  0x2c   :  { %v110_v39 = vpack.c.bf16 %v78_v37, %v77_v36 }
  0x32   :  { %677 = vmatmul.mubr.bf16.gmra.mrb[8].mxu0 %v84_v46  ;;  %709 = vmatmul.mubr.bf16.gmra.mrb[8].mxu1 %v100_v47 }
  0x33   :  { %680 = vmatprep.mubr.bf16.mxu0 %v85_v48  ;;  %712 = vmatprep.mubr.bf16.mxu1 %v101_v49 }
  0x3a   :  { %681 = vmatmul.mubr.bf16.gmra.mrb[12].mxu0 %v86_v58  ;;  %713 = vmatmul.mubr.bf16.gmra.mrb[12].mxu1 %v102_v59 }
  0x3b   :  { %684 = vmatprep.mubr.bf16.mxu0 %v87_v60  ;;  %716 = vmatprep.mubr.bf16.mxu1 %v103_v61 }
  0x42   :  { %685 = vmatmul.mubr.bf16.gmra.mrb[16].mxu0 %v88_v6  ;;  %717 = vmatmul.mubr.bf16.gmra.mrb[16].mxu1 %v104_v7 }
  0x43   :  { %688 = vmatprep.mubr.bf16.mxu0 %v89_v8  ;;  %720 = vmatprep.mubr.bf16.mxu1 %v105_v9 }
  0x4a   :  { %689 = vmatmul.mubr.bf16.gmra.mrb[20].mxu0 %v90_v18  ;;  %721 = vmatmul.mubr.bf16.gmra.mrb[20].mxu1 %v106_v19 }
  0x4b   :  { %692 = vmatprep.mubr.bf16.mxu0 %v91_v20  ;;  %724 = vmatprep.mubr.bf16.mxu1 %v107_v21 }
  0x52   :  { %693 = vmatmul.mubr.bf16.gmra.mrb[24].mxu0 %v92_v30  ;;  %725 = vmatmul.mubr.bf16.gmra.mrb[24].mxu1 %v108_v31 }
  0x53   :  { %696 = vmatprep.mubr.bf16.mxu0 %v93_v32  ;;  %728 = vmatprep.mubr.bf16.mxu1 %v109_v33 }
  0x5a   :  { %697 = vmatmul.mubr.bf16.gmra.mrb[28].mxu0 %v94_v38  ;;  %729 = vmatmul.mubr.bf16.gmra.mrb[28].mxu1 %v110_v39 }
  0xf5   :  { %v670_v41 = vpop.f32.mrb[0].mxu0  ;;  %v702_v42 = vpop.f32.mrb[0].mxu1 }
  0xf6   :  { %v225_v43 = vadd.f32 %v670_v41, %v995_v40  ;;  %v353_v44 = vadd.f32 %v702_v42, %v995_v40  ;;  %v216_v45 = vpop.f32.mrb[1].mxu0  ;;  %v344_v46 = vpop.f32.mrb[1].mxu1 }
  0xf7   :  { %v217_v47 = vadd.f32 %v995_v40, %v216_v45  ;;  %v345_v48 = vadd.f32 %v995_v40, %v344_v46  ;;  %v671_v49 = vpop.f32.mrb[2].mxu0  ;;  %v703_v50 = vpop.f32.mrb[2].mxu1 }
  0xf8   :  { %v473_v51 = vmax.f32 %v225_v43, 0.0  ;;  %v505_v52 = vmax.f32 %v353_v44, 0.0  ;;  %v228_v53 = vadd.f32 %v671_v49, %v995_v40  ;;  %v356_v54 = vadd.f32 %v703_v50, %v995_v40  ;;  %v219_v55 = vpop.f32.mrb[3].mxu0  ;;  %v347_v56 = vpop.f32.mrb[3].mxu1 }
  0xf9   :  { %v471_v57 = vmax.f32 %v217_v47, 0.0  ;;  %v503_v58 = vmax.f32 %v345_v48, 0.0  ;;  %v220_v59 = vadd.f32 %v995_v40, %v219_v55  ;;  %v348_v60 = vadd.f32 %v995_v40, %v347_v56 }
  0xfa   :  { %537 = vst [vmem:[%s1256_s3 + $0x10] sm:$0xff] %v473_v51  ;;  %569 = vst [vmem:[%s1256_s3 + $0x110] sm:$0xff] %v505_v52  ;;  %v474_v61 = vmax.f32 %v228_v53, 0.0  ;;  %v506_v62 = vmax.f32 %v356_v54, 0.0 }
  0xfb   :  { %535 = vst [vmem:[%s1256_s3] sm:$0xff] %v471_v57  ;;  %567 = vst [vmem:[%s1256_s3 + $0x100] sm:$0xff] %v503_v58  ;;  %v472_v63 = vmax.f32 %v220_v59, 0.0  ;;  %v504_v0 = vmax.f32 %v348_v60, 0.0 }
  0xfc   :  { %538 = vst [vmem:[%s1256_s3 + $0x18] sm:$0xff] %v474_v61  ;;  %570 = vst [vmem:[%s1256_s3 + $0x118] sm:$0xff] %v506_v62 }
  0xfd   :  { %536 = vst [vmem:[%s1256_s3 + $0x8] sm:$0xff] %v472_v63  ;;  %568 = vst [vmem:[%s1256_s3 + $0x108] sm:$0xff] %v504_v0  ;;  %v674_v1 = vpop.f32.mrb[4].mxu0  ;;  %v706_v2 = vpop.f32.mrb[4].mxu1 }
  0xfe   :  { %v241_v3 = vadd.f32 %v674_v1, %v995_v40  ;;  %v369_v4 = vadd.f32 %v706_v2, %v995_v40  ;;  %v232_v5 = vpop.f32.mrb[5].mxu0  ;;  %v360_v6 = vpop.f32.mrb[5].mxu1 }
  0xff   :  { %v233_v7 = vadd.f32 %v995_v40, %v232_v5  ;;  %v361_v8 = vadd.f32 %v995_v40, %v360_v6  ;;  %v675_v9 = vpop.f32.mrb[6].mxu0  ;;  %v707_v10 = vpop.f32.mrb[6].mxu1 }
 0x100   :  { %v477_v11 = vmax.f32 %v241_v3, 0.0  ;;  %v509_v12 = vmax.f32 %v369_v4, 0.0  ;;  %v244_v13 = vadd.f32 %v675_v9, %v995_v40  ;;  %v372_v14 = vadd.f32 %v707_v10, %v995_v40  ;;  %v235_v15 = vpop.f32.mrb[7].mxu0  ;;  %v363_v16 = vpop.f32.mrb[7].mxu1 }
 0x101   :  { %v475_v17 = vmax.f32 %v233_v7, 0.0  ;;  %v507_v18 = vmax.f32 %v361_v8, 0.0  ;;  %v236_v19 = vadd.f32 %v995_v40, %v235_v15  ;;  %v364_v20 = vadd.f32 %v995_v40, %v363_v16 }
 0x102   :  { %541 = vst [vmem:[%s1256_s3 + $0x30] sm:$0xff] %v477_v11  ;;  %573 = vst [vmem:[%s1256_s3 + $0x130] sm:$0xff] %v509_v12  ;;  %v478_v21 = vmax.f32 %v244_v13, 0.0  ;;  %v510_v22 = vmax.f32 %v372_v14, 0.0 }
 0x103   :  { %539 = vst [vmem:[%s1256_s3 + $0x20] sm:$0xff] %v475_v17  ;;  %571 = vst [vmem:[%s1256_s3 + $0x120] sm:$0xff] %v507_v18  ;;  %v476_v23 = vmax.f32 %v236_v19, 0.0  ;;  %v508_v24 = vmax.f32 %v364_v20, 0.0 }
 0x104   :  { %542 = vst [vmem:[%s1256_s3 + $0x38] sm:$0xff] %v478_v21  ;;  %574 = vst [vmem:[%s1256_s3 + $0x138] sm:$0xff] %v510_v22 }
 0x105   :  { %540 = vst [vmem:[%s1256_s3 + $0x28] sm:$0xff] %v476_v23  ;;  %572 = vst [vmem:[%s1256_s3 + $0x128] sm:$0xff] %v508_v24  ;;  %v678_v25 = vpop.f32.mrb[8].mxu0  ;;  %v710_v26 = vpop.f32.mrb[8].mxu1 }
 0x106   :  { %v257_v27 = vadd.f32 %v678_v25, %v995_v40  ;;  %v385_v28 = vadd.f32 %v710_v26, %v995_v40  ;;  %v248_v29 = vpop.f32.mrb[9].mxu0  ;;  %v376_v30 = vpop.f32.mrb[9].mxu1 }
 0x107   :  { %v249_v31 = vadd.f32 %v995_v40, %v248_v29  ;;  %v377_v32 = vadd.f32 %v995_v40, %v376_v30  ;;  %v679_v33 = vpop.f32.mrb[10].mxu0  ;;  %v711_v34 = vpop.f32.mrb[10].mxu1 }
 0x108   :  { %v481_v35 = vmax.f32 %v257_v27, 0.0  ;;  %v513_v36 = vmax.f32 %v385_v28, 0.0  ;;  %v260_v37 = vadd.f32 %v679_v33, %v995_v40  ;;  %v388_v38 = vadd.f32 %v711_v34, %v995_v40  ;;  %v251_v39 = vpop.f32.mrb[11].mxu0  ;;  %v379_v41 = vpop.f32.mrb[11].mxu1 }
 0x109   :  { %v479_v42 = vmax.f32 %v249_v31, 0.0  ;;  %v511_v43 = vmax.f32 %v377_v32, 0.0  ;;  %v252_v44 = vadd.f32 %v995_v40, %v251_v39  ;;  %v380_v45 = vadd.f32 %v995_v40, %v379_v41 }
 0x10a   :  { %545 = vst [vmem:[%s1256_s3 + $0x50] sm:$0xff] %v481_v35  ;;  %577 = vst [vmem:[%s1256_s3 + $0x150] sm:$0xff] %v513_v36  ;;  %v482_v46 = vmax.f32 %v260_v37, 0.0  ;;  %v514_v47 = vmax.f32 %v388_v38, 0.0 }
 0x10b   :  { %543 = vst [vmem:[%s1256_s3 + $0x40] sm:$0xff] %v479_v42  ;;  %575 = vst [vmem:[%s1256_s3 + $0x140] sm:$0xff] %v511_v43  ;;  %v480_v48 = vmax.f32 %v252_v44, 0.0  ;;  %v512_v49 = vmax.f32 %v380_v45, 0.0 }
 0x10c   :  { %546 = vst [vmem:[%s1256_s3 + $0x58] sm:$0xff] %v482_v46  ;;  %578 = vst [vmem:[%s1256_s3 + $0x158] sm:$0xff] %v514_v47 }
 0x10d   :  { %544 = vst [vmem:[%s1256_s3 + $0x48] sm:$0xff] %v480_v48  ;;  %576 = vst [vmem:[%s1256_s3 + $0x148] sm:$0xff] %v512_v49  ;;  %v682_v50 = vpop.f32.mrb[12].mxu0  ;;  %v714_v51 = vpop.f32.mrb[12].mxu1 }
 0x10e   :  { %v273_v52 = vadd.f32 %v682_v50, %v995_v40  ;;  %v401_v53 = vadd.f32 %v714_v51, %v995_v40  ;;  %v264_v54 = vpop.f32.mrb[13].mxu0  ;;  %v392_v55 = vpop.f32.mrb[13].mxu1 }
 0x10f   :  { %v265_v56 = vadd.f32 %v995_v40, %v264_v54  ;;  %v393_v57 = vadd.f32 %v995_v40, %v392_v55  ;;  %v683_v58 = vpop.f32.mrb[14].mxu0  ;;  %v715_v59 = vpop.f32.mrb[14].mxu1 }
 0x110   :  { %v485_v60 = vmax.f32 %v273_v52, 0.0  ;;  %v517_v61 = vmax.f32 %v401_v53, 0.0  ;;  %v276_v62 = vadd.f32 %v683_v58, %v995_v40  ;;  %v404_v63 = vadd.f32 %v715_v59, %v995_v40  ;;  %v267_v0 = vpop.f32.mrb[15].mxu0  ;;  %v395_v1 = vpop.f32.mrb[15].mxu1 }
 0x111   :  { %v483_v2 = vmax.f32 %v265_v56, 0.0  ;;  %v515_v3 = vmax.f32 %v393_v57, 0.0  ;;  %v268_v4 = vadd.f32 %v995_v40, %v267_v0  ;;  %v396_v5 = vadd.f32 %v995_v40, %v395_v1 }
 0x112   :  { %549 = vst [vmem:[%s1256_s3 + $0x70] sm:$0xff] %v485_v60  ;;  %581 = vst [vmem:[%s1256_s3 + $0x170] sm:$0xff] %v517_v61  ;;  %v486_v6 = vmax.f32 %v276_v62, 0.0  ;;  %v518_v7 = vmax.f32 %v404_v63, 0.0 }
 0x113   :  { %547 = vst [vmem:[%s1256_s3 + $0x60] sm:$0xff] %v483_v2  ;;  %579 = vst [vmem:[%s1256_s3 + $0x160] sm:$0xff] %v515_v3  ;;  %v484_v8 = vmax.f32 %v268_v4, 0.0  ;;  %v516_v9 = vmax.f32 %v396_v5, 0.0 }
 0x114   :  { %550 = vst [vmem:[%s1256_s3 + $0x78] sm:$0xff] %v486_v6  ;;  %582 = vst [vmem:[%s1256_s3 + $0x178] sm:$0xff] %v518_v7 }
 0x115   :  { %548 = vst [vmem:[%s1256_s3 + $0x68] sm:$0xff] %v484_v8  ;;  %580 = vst [vmem:[%s1256_s3 + $0x168] sm:$0xff] %v516_v9  ;;  %v686_v10 = vpop.f32.mrb[16].mxu0  ;;  %v718_v11 = vpop.f32.mrb[16].mxu1 }
 0x116   :  { %v289_v12 = vadd.f32 %v686_v10, %v995_v40  ;;  %v417_v13 = vadd.f32 %v718_v11, %v995_v40  ;;  %v280_v14 = vpop.f32.mrb[17].mxu0  ;;  %v408_v15 = vpop.f32.mrb[17].mxu1 }
 0x117   :  { %v281_v16 = vadd.f32 %v995_v40, %v280_v14  ;;  %v409_v17 = vadd.f32 %v995_v40, %v408_v15  ;;  %v687_v18 = vpop.f32.mrb[18].mxu0  ;;  %v719_v19 = vpop.f32.mrb[18].mxu1 }
 0x118   :  { %v489_v20 = vmax.f32 %v289_v12, 0.0  ;;  %v521_v21 = vmax.f32 %v417_v13, 0.0  ;;  %v292_v22 = vadd.f32 %v687_v18, %v995_v40  ;;  %v420_v23 = vadd.f32 %v719_v19, %v995_v40  ;;  %v283_v24 = vpop.f32.mrb[19].mxu0  ;;  %v411_v25 = vpop.f32.mrb[19].mxu1 }
 0x119   :  { %v487_v26 = vmax.f32 %v281_v16, 0.0  ;;  %v519_v27 = vmax.f32 %v409_v17, 0.0  ;;  %v284_v28 = vadd.f32 %v995_v40, %v283_v24  ;;  %v412_v29 = vadd.f32 %v995_v40, %v411_v25 }
 0x11a   :  { %553 = vst [vmem:[%s1256_s3 + $0x90] sm:$0xff] %v489_v20  ;;  %585 = vst [vmem:[%s1256_s3 + $0x190] sm:$0xff] %v521_v21  ;;  %v490_v30 = vmax.f32 %v292_v22, 0.0  ;;  %v522_v31 = vmax.f32 %v420_v23, 0.0 }
 0x11b   :  { %551 = vst [vmem:[%s1256_s3 + $0x80] sm:$0xff] %v487_v26  ;;  %583 = vst [vmem:[%s1256_s3 + $0x180] sm:$0xff] %v519_v27  ;;  %v488_v32 = vmax.f32 %v284_v28, 0.0  ;;  %v520_v33 = vmax.f32 %v412_v29, 0.0 }
 0x11c   :  { %554 = vst [vmem:[%s1256_s3 + $0x98] sm:$0xff] %v490_v30  ;;  %586 = vst [vmem:[%s1256_s3 + $0x198] sm:$0xff] %v522_v31 }
 0x11d   :  { %552 = vst [vmem:[%s1256_s3 + $0x88] sm:$0xff] %v488_v32  ;;  %584 = vst [vmem:[%s1256_s3 + $0x188] sm:$0xff] %v520_v33  ;;  %v690_v34 = vpop.f32.mrb[20].mxu0  ;;  %v722_v35 = vpop.f32.mrb[20].mxu1 }
 0x11e   :  { %v305_v36 = vadd.f32 %v690_v34, %v995_v40  ;;  %v433_v37 = vadd.f32 %v722_v35, %v995_v40  ;;  %v296_v38 = vpop.f32.mrb[21].mxu0  ;;  %v424_v39 = vpop.f32.mrb[21].mxu1 }
 0x11f   :  { %v297_v41 = vadd.f32 %v995_v40, %v296_v38  ;;  %v425_v42 = vadd.f32 %v995_v40, %v424_v39  ;;  %v691_v43 = vpop.f32.mrb[22].mxu0  ;;  %v723_v44 = vpop.f32.mrb[22].mxu1 }
 0x120   :  { %v493_v45 = vmax.f32 %v305_v36, 0.0  ;;  %v525_v46 = vmax.f32 %v433_v37, 0.0  ;;  %v308_v47 = vadd.f32 %v691_v43, %v995_v40  ;;  %v436_v48 = vadd.f32 %v723_v44, %v995_v40  ;;  %v299_v49 = vpop.f32.mrb[23].mxu0  ;;  %v427_v50 = vpop.f32.mrb[23].mxu1 }
 0x121   :  { %v491_v51 = vmax.f32 %v297_v41, 0.0  ;;  %v523_v52 = vmax.f32 %v425_v42, 0.0  ;;  %v300_v53 = vadd.f32 %v995_v40, %v299_v49  ;;  %v428_v54 = vadd.f32 %v995_v40, %v427_v50 }
 0x122   :  { %557 = vst [vmem:[%s1256_s3 + $0xb0] sm:$0xff] %v493_v45  ;;  %589 = vst [vmem:[%s1256_s3 + $0x1b0] sm:$0xff] %v525_v46  ;;  %v494_v55 = vmax.f32 %v308_v47, 0.0  ;;  %v526_v56 = vmax.f32 %v436_v48, 0.0 }
 0x123   :  { %555 = vst [vmem:[%s1256_s3 + $0xa0] sm:$0xff] %v491_v51  ;;  %587 = vst [vmem:[%s1256_s3 + $0x1a0] sm:$0xff] %v523_v52  ;;  %v492_v57 = vmax.f32 %v300_v53, 0.0  ;;  %v524_v58 = vmax.f32 %v428_v54, 0.0 }
 0x124   :  { %558 = vst [vmem:[%s1256_s3 + $0xb8] sm:$0xff] %v494_v55  ;;  %590 = vst [vmem:[%s1256_s3 + $0x1b8] sm:$0xff] %v526_v56 }
 0x125   :  { %556 = vst [vmem:[%s1256_s3 + $0xa8] sm:$0xff] %v492_v57  ;;  %588 = vst [vmem:[%s1256_s3 + $0x1a8] sm:$0xff] %v524_v58  ;;  %v694_v59 = vpop.f32.mrb[24].mxu0  ;;  %v726_v60 = vpop.f32.mrb[24].mxu1 }
 0x126   :  { %v321_v61 = vadd.f32 %v694_v59, %v995_v40  ;;  %v449_v62 = vadd.f32 %v726_v60, %v995_v40  ;;  %v312_v63 = vpop.f32.mrb[25].mxu0  ;;  %v440_v0 = vpop.f32.mrb[25].mxu1 }
 0x127   :  { %v313_v1 = vadd.f32 %v995_v40, %v312_v63  ;;  %v441_v2 = vadd.f32 %v995_v40, %v440_v0  ;;  %v695_v3 = vpop.f32.mrb[26].mxu0  ;;  %v727_v4 = vpop.f32.mrb[26].mxu1 }
 0x128   :  { %v497_v5 = vmax.f32 %v321_v61, 0.0  ;;  %v529_v6 = vmax.f32 %v449_v62, 0.0  ;;  %v324_v7 = vadd.f32 %v695_v3, %v995_v40  ;;  %v452_v8 = vadd.f32 %v727_v4, %v995_v40  ;;  %v315_v9 = vpop.f32.mrb[27].mxu0  ;;  %v443_v10 = vpop.f32.mrb[27].mxu1 }
 0x129   :  { %v495_v11 = vmax.f32 %v313_v1, 0.0  ;;  %v527_v12 = vmax.f32 %v441_v2, 0.0  ;;  %v316_v13 = vadd.f32 %v995_v40, %v315_v9  ;;  %v444_v14 = vadd.f32 %v995_v40, %v443_v10 }
 0x12a   :  { %561 = vst [vmem:[%s1256_s3 + $0xd0] sm:$0xff] %v497_v5  ;;  %593 = vst [vmem:[%s1256_s3 + $0x1d0] sm:$0xff] %v529_v6  ;;  %v498_v15 = vmax.f32 %v324_v7, 0.0  ;;  %v530_v16 = vmax.f32 %v452_v8, 0.0 }
 0x12b   :  { %559 = vst [vmem:[%s1256_s3 + $0xc0] sm:$0xff] %v495_v11  ;;  %591 = vst [vmem:[%s1256_s3 + $0x1c0] sm:$0xff] %v527_v12  ;;  %v496_v17 = vmax.f32 %v316_v13, 0.0  ;;  %v528_v18 = vmax.f32 %v444_v14, 0.0 }
 0x12c   :  { %562 = vst [vmem:[%s1256_s3 + $0xd8] sm:$0xff] %v498_v15  ;;  %594 = vst [vmem:[%s1256_s3 + $0x1d8] sm:$0xff] %v530_v16 }
 0x12d   :  { %560 = vst [vmem:[%s1256_s3 + $0xc8] sm:$0xff] %v496_v17  ;;  %592 = vst [vmem:[%s1256_s3 + $0x1c8] sm:$0xff] %v528_v18  ;;  %v698_v19 = vpop.f32.mrb[28].mxu0  ;;  %v730_v20 = vpop.f32.mrb[28].mxu1 }
 0x12e   :  { %v337_v21 = vadd.f32 %v698_v19, %v995_v40  ;;  %v465_v22 = vadd.f32 %v730_v20, %v995_v40  ;;  %v328_v23 = vpop.f32.mrb[29].mxu0  ;;  %v456_v24 = vpop.f32.mrb[29].mxu1 }
 0x12f   :  { %v329_v25 = vadd.f32 %v995_v40, %v328_v23  ;;  %v457_v26 = vadd.f32 %v995_v40, %v456_v24  ;;  %v699_v27 = vpop.f32.mrb[30].mxu0  ;;  %v731_v28 = vpop.f32.mrb[30].mxu1 }
 0x130   :  { %v501_v29 = vmax.f32 %v337_v21, 0.0  ;;  %v533_v30 = vmax.f32 %v465_v22, 0.0  ;;  %v340_v31 = vadd.f32 %v699_v27, %v995_v40  ;;  %v468_v32 = vadd.f32 %v731_v28, %v995_v40  ;;  %v331_v33 = vpop.f32.mrb[31].mxu0  ;;  %v459_v34 = vpop.f32.mrb[31].mxu1 }
 0x131   :  { %v499_v35 = vmax.f32 %v329_v25, 0.0  ;;  %v531_v36 = vmax.f32 %v457_v26, 0.0  ;;  %v332_v37 = vadd.f32 %v995_v40, %v331_v33  ;;  %v460_v38 = vadd.f32 %v995_v40, %v459_v34 }
 0x132   :  { %565 = vst [vmem:[%s1256_s3 + $0xf0] sm:$0xff] %v501_v29  ;;  %597 = vst [vmem:[%s1256_s3 + $0x1f0] sm:$0xff] %v533_v30  ;;  %v502_v39 = vmax.f32 %v340_v31, 0.0  ;;  %v534_v41 = vmax.f32 %v468_v32, 0.0 }
 0x133   :  { %563 = vst [vmem:[%s1256_s3 + $0xe0] sm:$0xff] %v499_v35  ;;  %595 = vst [vmem:[%s1256_s3 + $0x1e0] sm:$0xff] %v531_v36  ;;  %v500_v42 = vmax.f32 %v332_v37, 0.0  ;;  %v532_v40 = vmax.f32 %v460_v38, 0.0 }
 0x134   :  { %566 = vst [vmem:[%s1256_s3 + $0xf8] sm:$0xff] %v502_v39  ;;  %598 = vst [vmem:[%s1256_s3 + $0x1f8] sm:$0xff] %v534_v41 }
 0x135   :  { %564 = vst [vmem:[%s1256_s3 + $0xe8] sm:$0xff] %v500_v42  ;;  %596 = vst [vmem:[%s1256_s3 + $0x1e8] sm:$0xff] %v532_v40 }

// kernel: net1_forward.8
= control target key start
LH: loop header
LB: loop body
LE: loop exit
PB: predicated region body
PF: predicated region fallthrough
CT: control target
= control target key end

     0   :  { %s1509_s1 = inlined_call_operand.vmem [shape: bf16[1152,128], index: 1, kind: input, shape index: {}]   ;;  %s1510_s0 = inlined_call_operand.vmem [shape: f32[18,1152], index: 0, kind: input, shape index: {}]   ;;  %s1511_s2 = inlined_call_operand.vmem [shape: f32[1,128], index: 2, kind: input, shape index: {}]   ;;  %s1512_s3 = inlined_call_operand.vmem [shape: f32[18,128], index: 3, kind: output, shape index: {}]  }
   0x1   :  { %v1108_v0 = vld [vmem:[%s1509_s1 + $0x40] sm:$0xff]   ;;  %v1112_v4 = vld [vmem:[%s1509_s1 + $0x48] sm:$0xff]   ;;  %v1116_v8 = vld [vmem:[%s1509_s1 + $0x50] sm:$0xff]  }
   0x2   :  { %v1109_v1 = vld [vmem:[%s1509_s1] sm:$0xff]   ;;  %966 = vmatprep.subr.bf16.mxu0 %v1108_v0  ;;  %v1113_v5 = vld [vmem:[%s1509_s1 + $0x8] sm:$0xff]   ;;  %v1117_v9 = vld [vmem:[%s1509_s1 + $0x10] sm:$0xff]  }
   0x3   :  { %v1110_v2 = vld [vmem:[%s1509_s1 + $0xc0] sm:$0xff]   ;;  %967 = vmatpush3.bf16.msra.mxu0 %v1109_v1  ;;  %v1114_v6 = vld [vmem:[%s1509_s1 + $0xc8] sm:$0xff]   ;;  %v1118_v10 = vld [vmem:[%s1509_s1 + $0xd0] sm:$0xff]  }
   0x4   :  { %v1111_v3 = vld [vmem:[%s1509_s1 + $0x80] sm:$0xff]   ;;  %994 = vmatprep.subr.bf16.mxu1 %v1110_v2  ;;  %968 = vmatprep.subr.bf16.mxu0 %v1112_v4  ;;  %v1115_v7 = vld [vmem:[%s1509_s1 + $0x88] sm:$0xff]   ;;  %v1119_v11 = vld [vmem:[%s1509_s1 + $0x90] sm:$0xff]  }
   0x5   :  { %995 = vmatpush3.bf16.msra.mxu1 %v1111_v3  ;;  %v1120_v12 = vld [vmem:[%s1509_s1 + $0x58] sm:$0xff]   ;;  %v1124_v16 = vld [vmem:[%s1509_s1 + $0x60] sm:$0xff]   ;;  %v1128_v20 = vld [vmem:[%s1509_s1 + $0x68] sm:$0xff]  }
   0x6   :  { %996 = vmatprep.subr.bf16.mxu1 %v1114_v6  ;;  %v1121_v13 = vld [vmem:[%s1509_s1 + $0x18] sm:$0xff]   ;;  %v1125_v17 = vld [vmem:[%s1509_s1 + $0x20] sm:$0xff]   ;;  %v1129_v21 = vld [vmem:[%s1509_s1 + $0x28] sm:$0xff]  }
   0x7   :  { %969 = vmatpush3.bf16.msra.mxu0 %v1113_v5  ;;  %v1122_v14 = vld [vmem:[%s1509_s1 + $0xd8] sm:$0xff]   ;;  %v1126_v18 = vld [vmem:[%s1509_s1 + $0xe0] sm:$0xff]   ;;  %v1130_v22 = vld [vmem:[%s1509_s1 + $0xe8] sm:$0xff]  }
   0x8   :  { %970 = vmatprep.subr.bf16.mxu0 %v1116_v8  ;;  %v1123_v15 = vld [vmem:[%s1509_s1 + $0x98] sm:$0xff]   ;;  %v1127_v19 = vld [vmem:[%s1509_s1 + $0xa0] sm:$0xff]   ;;  %v1131_v23 = vld [vmem:[%s1509_s1 + $0xa8] sm:$0xff]  }
   0x9   :  { %997 = vmatpush3.bf16.msra.mxu1 %v1115_v7  ;;  %v1132_v24 = vld [vmem:[%s1509_s1 + $0x70] sm:$0xff]   ;;  %v1136_v28 = vld [vmem:[%s1509_s1 + $0x78] sm:$0xff]   ;;  %v16_v31 = vld [vmem:[%s1510_s0 + $0x8] sm:$0xff] }
   0xa   :  { %998 = vmatprep.subr.bf16.mxu1 %v1118_v10  ;;  %v1133_v25 = vld [vmem:[%s1509_s1 + $0x30] sm:$0xff]   ;;  %v1137_v29 = vld [vmem:[%s1509_s1 + $0x38] sm:$0xff]   ;;  %v15_v35 = vld [vmem:[%s1510_s0] sm:$0xff] }
   0xb   :  { %971 = vmatpush3.bf16.msra.mxu0 %v1117_v9  ;;  %v1134_v26 = vld [vmem:[%s1509_s1 + $0xf0] sm:$0xff]   ;;  %v1138_v30 = vld [vmem:[%s1509_s1 + $0xf8] sm:$0xff]   ;;  %v24_v36 = vld [vmem:[%s1510_s0 + $0x48] sm:$0xff] }
   0xc   :  { %972 = vmatprep.subr.bf16.mxu0 %v1120_v12  ;;  %v1135_v27 = vld [vmem:[%s1509_s1 + $0xb0] sm:$0xff]   ;;  %v1139_v34 = vld [vmem:[%s1509_s1 + $0xb8] sm:$0xff]   ;;  %v42_v37 = vpack.c.bf16 %v24_v36, %v15_v35  ;;  %v1140_v38 = vld [vmem:[%s1509_s1 + $0x140] sm:$0xff]  }
   0xd   :  { %999 = vmatpush3.bf16.msra.mxu1 %v1119_v11  ;;  %v25_v32 = vld [vmem:[%s1510_s0 + $0x50] sm:$0xff]  ;;  %v18_v39 = vld [vmem:[%s1510_s0 + $0x18] sm:$0xff]  ;;  %v27_v40 = vld [vmem:[%s1510_s0 + $0x60] sm:$0xff] }
   0xe   :  { %1000 = vmatprep.subr.bf16.mxu1 %v1122_v14  ;;  %v43_v33 = vpack.c.bf16 %v25_v32, %v16_v31  ;;  %v45_v41 = vpack.c.bf16 %v27_v40, %v18_v39  ;;  %v1141_v42 = vld [vmem:[%s1509_s1 + $0x100] sm:$0xff]   ;;  %v17_v43 = vld [vmem:[%s1510_s0 + $0x10] sm:$0xff]  ;;  %v26_v44 = vld [vmem:[%s1510_s0 + $0x58] sm:$0xff] }
   0xf   :  { %973 = vmatpush3.bf16.msra.mxu0 %v1121_v13  ;;  %v44_v45 = vpack.c.bf16 %v26_v44, %v17_v43  ;;  %v1142_v46 = vld [vmem:[%s1509_s1 + $0x1c0] sm:$0xff]   ;;  %v1144_v48 = vld [vmem:[%s1509_s1 + $0x148] sm:$0xff]   ;;  %v1148_v52 = vld [vmem:[%s1509_s1 + $0x150] sm:$0xff]  }
  0x10   :  { %974 = vmatprep.subr.bf16.mxu0 %v1124_v16  ;;  %675 = vmatprep.mubr.bf16.mxu0 %v43_v33  ;;  %v1143_v47 = vld [vmem:[%s1509_s1 + $0x180] sm:$0xff]   ;;  %v1145_v49 = vld [vmem:[%s1509_s1 + $0x108] sm:$0xff]   ;;  %v1149_v53 = vld [vmem:[%s1509_s1 + $0x110] sm:$0xff]  }
  0x11   :  { %1001 = vmatpush3.bf16.msra.mxu1 %v1123_v15  ;;  %723 = vmatprep.mubr.bf16.mxu1 %v45_v41  ;;  %v1146_v50 = vld [vmem:[%s1509_s1 + $0x1c8] sm:$0xff]   ;;  %v1150_v54 = vld [vmem:[%s1509_s1 + $0x1d0] sm:$0xff]   ;;  %v1152_v56 = vld [vmem:[%s1509_s1 + $0x158] sm:$0xff]  }
  0x12   :  { %1002 = vmatprep.subr.bf16.mxu1 %v1126_v18  ;;  %v1147_v51 = vld [vmem:[%s1509_s1 + $0x188] sm:$0xff]   ;;  %v1151_v55 = vld [vmem:[%s1509_s1 + $0x190] sm:$0xff]   ;;  %v1153_v57 = vld [vmem:[%s1509_s1 + $0x118] sm:$0xff]  }
  0x13   :  { %975 = vmatpush3.bf16.msra.mxu0 %v1125_v17  ;;  %v1154_v58 = vld [vmem:[%s1509_s1 + $0x1d8] sm:$0xff]   ;;  %v1156_v60 = vld [vmem:[%s1509_s1 + $0x160] sm:$0xff]   ;;  %v1160_v0 = vld [vmem:[%s1509_s1 + $0x168] sm:$0xff]  }
  0x14   :  { %976 = vmatprep.subr.bf16.mxu0 %v1128_v20  ;;  %v1155_v59 = vld [vmem:[%s1509_s1 + $0x198] sm:$0xff]   ;;  %v1157_v61 = vld [vmem:[%s1509_s1 + $0x120] sm:$0xff]   ;;  %v1161_v3 = vld [vmem:[%s1509_s1 + $0x128] sm:$0xff]  }
  0x15   :  { %1003 = vmatpush3.bf16.msra.mxu1 %v1127_v19  ;;  %v1158_v62 = vld [vmem:[%s1509_s1 + $0x1e0] sm:$0xff]   ;;  %v34_v1 = vld [vmem:[%s1510_s0 + $0x98] sm:$0x3]  ;;  %v33_v4 = vld [vmem:[%s1510_s0 + $0x90] sm:$0x3] }
  0x16   :  { %1004 = vmatprep.subr.bf16.mxu1 %v1130_v22  ;;  %v1159_v63 = vld [vmem:[%s1509_s1 + $0x1a0] sm:$0xff]   ;;  %v52_v2 = vpack.c.bf16 %v34_v1, %v34_v1  ;;  %v51_v5 = vpack.c.bf16 %v33_v4, %v33_v4  ;;  %v1162_v6 = vld [vmem:[%s1509_s1 + $0x1e8] sm:$0xff]   ;;  %v1164_v8 = vld [vmem:[%s1509_s1 + $0x170] sm:$0xff]  }
  0x17   :  { %977 = vmatpush3.bf16.msra.mxu0 %v1129_v21  ;;  %v1163_v7 = vld [vmem:[%s1509_s1 + $0x1a8] sm:$0xff]   ;;  %v1165_v11 = vld [vmem:[%s1509_s1 + $0x130] sm:$0xff]   ;;  %v35_v12 = vld [vmem:[%s1510_s0 + $0xa0] sm:$0x3] }
  0x18   :  { %978 = vmatprep.subr.bf16.mxu0 %v1132_v24  ;;  %v36_v9 = vld [vmem:[%s1510_s0 + $0xa8] sm:$0x3]  ;;  %v53_v13 = vpack.c.bf16 %v35_v12, %v35_v12  ;;  %v1166_v14 = vld [vmem:[%s1509_s1 + $0x1f0] sm:$0xff]   ;;  %v1168_v16 = vld [vmem:[%s1509_s1 + $0x178] sm:$0xff]  }
  0x19   :  { %1005 = vmatpush3.bf16.msra.mxu1 %v1131_v23  ;;  %v54_v10 = vpack.c.bf16 %v36_v9, %v36_v9  ;;  %v1167_v15 = vld [vmem:[%s1509_s1 + $0x1b0] sm:$0xff]   ;;  %v1169_v17 = vld [vmem:[%s1509_s1 + $0x138] sm:$0xff]   ;;  %v20_v19 = vld [vmem:[%s1510_s0 + $0x28] sm:$0xff] }
  0x1a   :  { %1006 = vmatprep.subr.bf16.mxu1 %v1134_v26  ;;  %v1170_v18 = vld [vmem:[%s1509_s1 + $0x1f8] sm:$0xff]   ;;  %v29_v20 = vld [vmem:[%s1510_s0 + $0x70] sm:$0xff]  ;;  %v19_v23 = vld [vmem:[%s1510_s0 + $0x20] sm:$0xff] }
  0x1b   :  { %979 = vmatpush3.bf16.msra.mxu0 %v1133_v25  ;;  %v47_v21 = vpack.c.bf16 %v29_v20, %v20_v19  ;;  %v1171_v22 = vld [vmem:[%s1509_s1 + $0x1b8] sm:$0xff]   ;;  %v28_v24 = vld [vmem:[%s1510_s0 + $0x68] sm:$0xff]  ;;  %v1172_v26 = vld [vmem:[%s1509_s1 + $0x200] sm:$0xff]  }
  0x1c   :  { %980 = vmatprep.subr.bf16.mxu0 %v1136_v28  ;;  %v46_v25 = vpack.c.bf16 %v28_v24, %v19_v23  ;;  %v31_v28 = vld [vmem:[%s1510_s0 + $0x80] sm:$0xff]  ;;  %v30_v31 = vld [vmem:[%s1510_s0 + $0x78] sm:$0xff]  ;;  %v1173_v33 = vld [vmem:[%s1509_s1 + $0x208] sm:$0xff]  }
  0x1d   :  { %1007 = vmatpush3.bf16.msra.mxu1 %v1135_v27  ;;  %v22_v27 = vld [vmem:[%s1510_s0 + $0x38] sm:$0xff]  ;;  %v37_v36 = vld [vmem:[%s1510_s0 + $0xb0] sm:$0x3]  ;;  %v39_v40 = vld [vmem:[%s1510_s0 + $0xc0] sm:$0x3] }
  0x1e   :  { %1008 = vmatprep.subr.bf16.mxu1 %v1138_v30  ;;  %v21_v30 = vld [vmem:[%s1510_s0 + $0x30] sm:$0xff]  ;;  %v55_v41 = vpack.c.bf16 %v37_v36, %v37_v36  ;;  %v1175_v43 = vld [vmem:[%s1509_s1 + $0x218] sm:$0xff]   ;;  %v23_v44 = vld [vmem:[%s1510_s0 + $0x40] sm:$0xff] }
  0x1f   :  { %981 = vmatpush3.bf16.msra.mxu0 %v1137_v29  ;;  %v49_v29 = vpack.c.bf16 %v31_v28, %v22_v27  ;;  %v48_v32 = vpack.c.bf16 %v30_v31, %v21_v30 }
  0x20   :  { %1022 = vmatprep.subr.bf16.mxu0 %v1140_v38  ;;  %v40_v38 = vld [vmem:[%s1510_s0 + $0xc8] sm:$0x3] }
  0x21   :  { %1009 = vmatpush3.bf16.msra.mxu1 %v1139_v34  ;;  %v38_v34 = vld [vmem:[%s1510_s0 + $0xb8] sm:$0x3]  ;;  %v58_v39 = vpack.c.bf16 %v40_v38, %v40_v38 }
  0x22   :  { %676 = vmatmul.mubr.bf16.vlgmr.msra.gmra.mrb[0].mxu0 %v42_v37  ;;  %1050 = vmatprep.subr.bf16.mxu1 %v1142_v46  ;;  %v56_v35 = vpack.c.bf16 %v38_v34, %v38_v34  ;;  %v1174_v37 = vld [vmem:[%s1509_s1 + $0x210] sm:$0xff]  }
  0x23   :  { %1023 = vmatpush3.bf16.msra.mxu0 %v1141_v42  ;;  %683 = vmatprep.mubr.bf16.mxu0 %v52_v2  ;;  %v57_v42 = vpack.c.bf16 %v39_v40, %v39_v40 }
  0x24   :  { %724 = vmatmul.mubr.bf16.vlgmr.msra.gmra.mrb[0].mxu1 %v44_v45  ;;  %1024 = vmatprep.subr.bf16.mxu0 %v1144_v48  ;;  %v32_v45 = vld [vmem:[%s1510_s0 + $0x88] sm:$0xff] }
  0x25   :  { %1051 = vmatpush3.bf16.msra.mxu1 %v1143_v47  ;;  %731 = vmatprep.mubr.bf16.mxu1 %v54_v10  ;;  %v50_v46 = vpack.c.bf16 %v32_v45, %v23_v44  ;;  %v1176_v47 = vld [vmem:[%s1509_s1 + $0x220] sm:$0xff]   ;;  %v1177_v48 = vld [vmem:[%s1509_s1 + $0x228] sm:$0xff]  }
  0x26   :  { %1052 = vmatprep.subr.bf16.mxu1 %v1146_v50  ;;  %v1179_v50 = vld [vmem:[%s1509_s1 + $0x238] sm:$0xff]  }
  0x27   :  { %1025 = vmatpush3.bf16.msra.mxu0 %v1145_v49  ;;  %v1178_v49 = vld [vmem:[%s1509_s1 + $0x230] sm:$0xff]  }
  0x28   :  { %1026 = vmatprep.subr.bf16.mxu0 %v1148_v52 }
  0x29   :  { %1053 = vmatpush3.bf16.msra.mxu1 %v1147_v51  ;;  %v41_v51 = vld [vmem:[%s1510_s0 + $0xd0] sm:$0x3] }
  0x2a   :  { %1054 = vmatprep.subr.bf16.mxu1 %v1150_v54  ;;  %684 = vmatmul.mubr.bf16.gmra.mrb[4].mxu0 %v51_v5  ;;  %v59_v52 = vpack.c.bf16 %v41_v51, %v41_v51  ;;  %v893_v54 = vld [vmem:[%s1511_s2] ss:$0 sm:$0xff] }
  0x2b   :  { %1027 = vmatpush3.bf16.msra.mxu0 %v1149_v53  ;;  %771 = vmatprep.mubr.bf16.mxu0 %v47_v21 }
  0x2c   :  { %1028 = vmatprep.subr.bf16.mxu0 %v1152_v56  ;;  %732 = vmatmul.mubr.bf16.gmra.mrb[4].mxu1 %v53_v13 }
  0x2d   :  { %1055 = vmatpush3.bf16.msra.mxu1 %v1151_v55  ;;  %819 = vmatprep.mubr.bf16.mxu1 %v49_v29 }
  0x2e   :  { %1056 = vmatprep.subr.bf16.mxu1 %v1154_v58 }
  0x2f   :  { %1029 = vmatpush3.bf16.msra.mxu0 %v1153_v57 }
  0x30   :  { %1030 = vmatprep.subr.bf16.mxu0 %v1156_v60 }
  0x31   :  { %1057 = vmatpush3.bf16.msra.mxu1 %v1155_v59 }
  0x32   :  { %1058 = vmatprep.subr.bf16.mxu1 %v1158_v62 }
  0x33   :  { %1031 = vmatpush3.bf16.msra.mxu0 %v1157_v61 }
  0x34   :  { %1032 = vmatprep.subr.bf16.mxu0 %v1160_v0 }
  0x35   :  { %1059 = vmatpush3.bf16.msra.mxu1 %v1159_v63 }
  0x36   :  { %1060 = vmatprep.subr.bf16.mxu1 %v1162_v6 }
  0x37   :  { %1033 = vmatpush3.bf16.msra.mxu0 %v1161_v3 }
  0x38   :  { %1034 = vmatprep.subr.bf16.mxu0 %v1164_v8 }
  0x39   :  { %1061 = vmatpush3.bf16.msra.mxu1 %v1163_v7 }
  0x3a   :  { %1062 = vmatprep.subr.bf16.mxu1 %v1166_v14 }
  0x3b   :  { %1035 = vmatpush3.bf16.msra.mxu0 %v1165_v11 }
  0x3c   :  { %1036 = vmatprep.subr.bf16.mxu0 %v1168_v16 }
  0x3d   :  { %1063 = vmatpush3.bf16.msra.mxu1 %v1167_v15 }
  0x3e   :  { %1064 = vmatprep.subr.bf16.mxu1 %v1170_v18 }
  0x3f   :  { %1037 = vmatpush3.bf16.msra.mxu0 %v1169_v17 }
  0x40   :  { %1088 = vmatprep.subr.bf16.mxu0 %v1172_v26 }
  0x41   :  { %1065 = vmatpush3.bf16.msra.mxu1 %v1171_v22 }
  0x42   :  { %772 = vmatmul.mubr.bf16.vlgmr.msra.gmra.mrb[8].mxu0 %v46_v25 }
  0x43   :  { %1089 = vmatpush3.bf16.msra.mxu0 %v1172_v26  ;;  %779 = vmatprep.mubr.bf16.mxu0 %v56_v35 }
  0x44   :  { %820 = vmatmul.mubr.bf16.vlgmr.msra.gmra.mrb[8].mxu1 %v48_v32  ;;  %1090 = vmatprep.subr.bf16.mxu0 %v1173_v33 }
  0x45   :  { %827 = vmatprep.mubr.bf16.mxu1 %v58_v39 }
  0x47   :  { %1091 = vmatpush3.bf16.msra.mxu0 %v1173_v33 }
  0x48   :  { %1092 = vmatprep.subr.bf16.mxu0 %v1174_v37 }
  0x4a   :  { %780 = vmatmul.mubr.bf16.gmra.mrb[12].mxu0 %v55_v41 }
  0x4b   :  { %1093 = vmatpush3.bf16.msra.mxu0 %v1174_v37  ;;  %1104 = vmatprep.mubr.bf16.mxu0 %v50_v46 }
  0x4c   :  { %828 = vmatmul.mubr.bf16.gmra.mrb[12].mxu1 %v57_v42  ;;  %1094 = vmatprep.subr.bf16.mxu0 %v1175_v43 }
  0x4f   :  { %1095 = vmatpush3.bf16.msra.mxu0 %v1175_v43 }
  0x50   :  { %1096 = vmatprep.subr.bf16.mxu0 %v1176_v47 }
  0x53   :  { %1097 = vmatpush3.bf16.msra.mxu0 %v1176_v47 }
  0x54   :  { %1098 = vmatprep.subr.bf16.mxu0 %v1177_v48 }
  0x57   :  { %1099 = vmatpush3.bf16.msra.mxu0 %v1177_v48 }
  0x58   :  { %1100 = vmatprep.subr.bf16.mxu0 %v1178_v49 }
  0x5b   :  { %1101 = vmatpush3.bf16.msra.mxu0 %v1178_v49 }
  0x5c   :  { %1102 = vmatprep.subr.bf16.mxu0 %v1179_v50 }
  0x5f   :  { %1103 = vmatpush3.bf16.msra.mxu0 %v1179_v50 }
  0x62   :  { %1105 = vmatmul.mubr.bf16.vlgmr.msra.gmra.mrb[16].mxu0 %v59_v52 }
  0xf5   :  { %v982_v53 = vpop.f32.mrb[0].mxu0 }
  0xf6   :  { %v983_v55 = vpop.f32.mrb[1].mxu0 }
  0xf7   :  { %v984_v56 = vadd.f32 %v983_v55, %v982_v53  ;;  %v985_v57 = vpop.f32.mrb[2].mxu0  ;;  %v1010_v58 = vpop.f32.mrb[0].mxu1 }
  0xf8   :  { %v986_v59 = vpop.f32.mrb[3].mxu0  ;;  %v1011_v62 = vpop.f32.mrb[1].mxu1 }
  0xf9   :  { %v678_v60 = vadd.f32 %v984_v56, %v893_v54  ;;  %v987_v61 = vadd.f32 %v986_v59, %v985_v57  ;;  %v1012_v63 = vadd.f32 %v1011_v62, %v1010_v58  ;;  %v1013_v0 = vpop.f32.mrb[2].mxu1 }
  0xfa   :  { %v1014_v2 = vpop.f32.mrb[3].mxu1 }
  0xfb   :  { %v681_v1 = vadd.f32 %v987_v61, %v893_v54  ;;  %v726_v3 = vadd.f32 %v1012_v63, %v678_v60  ;;  %v1015_v4 = vadd.f32 %v1014_v2, %v1013_v0 }
  0xfd   :  { %v729_v5 = vadd.f32 %v1015_v4, %v681_v1  ;;  %v988_v6 = vpop.f32.mrb[4].mxu0 }
  0xfe   :  { %v989_v7 = vpop.f32.mrb[5].mxu0 }
  0xff   :  { %v990_v8 = vadd.f32 %v989_v7, %v988_v6  ;;  %v991_v9 = vpop.f32.mrb[6].mxu0  ;;  %v1016_v12 = vpop.f32.mrb[4].mxu1 }
 0x100   :  { %v992_v10 = vpop.f32.mrb[7].mxu0  ;;  %v1017_v13 = vpop.f32.mrb[5].mxu1 }
 0x101   :  { %v686_v11 = vadd.f32 %v990_v8, %v893_v54  ;;  %v1018_v14 = vadd.f32 %v1017_v13, %v1016_v12  ;;  %v1019_v15 = vpop.f32.mrb[6].mxu1 }
 0x102   :  { %v1020_v16 = vpop.f32.mrb[7].mxu1 }
 0x103   :  { %v734_v17 = vadd.f32 %v1018_v14, %v686_v11 }
 0x115   :  { %v1038_v18 = vpop.f32.mrb[8].mxu0 }
 0x116   :  { %v1039_v19 = vpop.f32.mrb[9].mxu0 }
 0x117   :  { %v1040_v20 = vadd.f32 %v1039_v19, %v1038_v18  ;;  %v1041_v21 = vpop.f32.mrb[10].mxu0  ;;  %v1066_v22 = vpop.f32.mrb[8].mxu1 }
 0x118   :  { %v1042_v23 = vpop.f32.mrb[11].mxu0  ;;  %v1067_v24 = vpop.f32.mrb[9].mxu1 }
 0x119   :  { %v774_v25 = vadd.f32 %v1040_v20, %v726_v3  ;;  %v1043_v26 = vadd.f32 %v1042_v23, %v1041_v21  ;;  %v1068_v27 = vadd.f32 %v1067_v24, %v1066_v22  ;;  %v1069_v28 = vpop.f32.mrb[10].mxu1 }
 0x11a   :  { %v1070_v29 = vpop.f32.mrb[11].mxu1 }
 0x11b   :  { %v777_v30 = vadd.f32 %v1043_v26, %v729_v5  ;;  %v1071_v31 = vadd.f32 %v1070_v29, %v1069_v28  ;;  %v822_v32 = vadd.f32 %v1068_v27, %v774_v25 }
 0x11d   :  { %v1044_v33 = vpop.f32.mrb[12].mxu0  ;;  %v825_v34 = vadd.f32 %v1071_v31, %v777_v30 }
 0x11e   :  { %v1045_v35 = vpop.f32.mrb[13].mxu0 }
 0x11f   :  { %v1046_v36 = vadd.f32 %v1045_v35, %v1044_v33  ;;  %v1072_v37 = vpop.f32.mrb[12].mxu1  ;;  %v1047_v38 = vpop.f32.mrb[14].mxu0 }
 0x120   :  { %v1073_v39 = vpop.f32.mrb[13].mxu1  ;;  %v1048_v40 = vpop.f32.mrb[15].mxu0 }
 0x121   :  { %v782_v41 = vadd.f32 %v1046_v36, %v734_v17  ;;  %v1074_v42 = vadd.f32 %v1073_v39, %v1072_v37  ;;  %v1075_v43 = vpop.f32.mrb[14].mxu1 }
 0x122   :  { %v1076_v44 = vpop.f32.mrb[15].mxu1 }
 0x123   :  { %v830_v45 = vadd.f32 %v1074_v42, %v782_v41 }
 0x135   :  { %v1106_v46 = vpop.f32.mrb[16].mxu0 }
 0x136   :  { %v878_v47 = vadd.f32 %v1106_v46, %v830_v45  ;;  %v869_v48 = vpop.f32.mrb[17].mxu0 }
 0x137   :  { %v870_v49 = vadd.f32 %v869_v48, %v822_v32  ;;  %v1107_v50 = vpop.f32.mrb[18].mxu0 }
 0x138   :  { %v885_v51 = vmax.f32 %v878_v47, 0.0  ;;  %v872_v52 = vpop.f32.mrb[19].mxu0 }
 0x139   :  { %v883_v53 = vmax.f32 %v870_v49, 0.0  ;;  %v873_v54 = vadd.f32 %v872_v52, %v825_v34 }
 0x13a   :  { %888 = vst [vmem:[%s1512_s3 + $0x10] sm:$0x3] %v885_v51 }
 0x13b   :  { %886 = vst [vmem:[%s1512_s3] sm:$0xff] %v883_v53  ;;  %v884_v55 = vmax.f32 %v873_v54, 0.0 }
 0x13d   :  { %887 = vst [vmem:[%s1512_s3 + $0x8] sm:$0xff] %v884_v55 }

// kernel: net1_forward.9
= control target key start
LH: loop header
LB: loop body
LE: loop exit
PB: predicated region body
PF: predicated region fallthrough
CT: control target
= control target key end

     0   :  { %v32_v27 = vlaneseq  ;;  %v1338_v35 = vmov 1983009808   ;;  %vm1340_vm0 = vmmov 0   ;;  %s1645_s0 = inlined_call_operand.vmem [shape: f32[2,1152], index: 0, kind: input, shape index: {}]   ;;  %s1646_s1 = inlined_call_operand.vmem [shape: bf16[1152,128], index: 1, kind: input, shape index: {}]   ;;  %s1647_s2 = inlined_call_operand.vmem [shape: f32[1,128], index: 2, kind: input, shape index: {}]   ;;  %s1648_s3 = inlined_call_operand.vmem [shape: bf16[128,128], index: 3, kind: input, shape index: {}]   ;;  %s1649_s4 = inlined_call_operand.vmem [shape: f32[1,128], index: 4, kind: input, shape index: {}]   ;;  %s1650_s5 = inlined_call_operand.hbm [shape: f32[2,128], index: 5, kind: output, shape index: {}]  }
   0x1   :  { %v1232_v0 = vld [vmem:[%s1646_s1 + $0x40] sm:$0xff]   ;;  %v1236_v4 = vld [vmem:[%s1646_s1 + $0x48] sm:$0xff]   ;;  %v1240_v8 = vld [vmem:[%s1646_s1 + $0x50] sm:$0xff]   ;;  %v30_v36 = vunpack.c.l.s4 %v1338_v35 }
   0x2   :  { %v1233_v1 = vld [vmem:[%s1646_s1] sm:$0xff]   ;;  %1082 = vmatprep.subr.bf16.mxu0 %v1232_v0  ;;  %v1237_v5 = vld [vmem:[%s1646_s1 + $0x8] sm:$0xff]   ;;  %v1241_v9 = vld [vmem:[%s1646_s1 + $0x10] sm:$0xff]   ;;  %v33_v32 = vshrl.u32 %v32_v27, 7  ;;  %v1339_v27 = vmov 0.0  }
   0x3   :  { %v1234_v2 = vld [vmem:[%s1646_s1 + $0xc0] sm:$0xff]   ;;  %1083 = vmatpush3.bf16.msra.mxu0 %v1233_v1  ;;  %v1238_v6 = vld [vmem:[%s1646_s1 + $0xc8] sm:$0xff]   ;;  %v1242_v10 = vld [vmem:[%s1646_s1 + $0xd0] sm:$0xff]   ;;  %v31_v38 = vunpack.c.0.s8 %v30_v36 }
   0x4   :  { %v1235_v3 = vld [vmem:[%s1646_s1 + $0x80] sm:$0xff]   ;;  %1104 = vmatprep.subr.bf16.mxu1 %v1234_v2  ;;  %1084 = vmatprep.subr.bf16.mxu0 %v1236_v4  ;;  %v1239_v7 = vld [vmem:[%s1646_s1 + $0x88] sm:$0xff]   ;;  %v1243_v11 = vld [vmem:[%s1646_s1 + $0x90] sm:$0xff]  }
   0x5   :  { %1105 = vmatpush3.bf16.msra.mxu1 %v1235_v3  ;;  %v1244_v12 = vld [vmem:[%s1646_s1 + $0x58] sm:$0xff]   ;;  %v1248_v16 = vld [vmem:[%s1646_s1 + $0x60] sm:$0xff]   ;;  %v1252_v20 = vld [vmem:[%s1646_s1 + $0x68] sm:$0xff]   ;;  %v1477_v41 = vsub.s32 %v31_v38, %v33_v32 }
   0x6   :  { %1106 = vmatprep.subr.bf16.mxu1 %v1238_v6  ;;  %v1245_v13 = vld [vmem:[%s1646_s1 + $0x18] sm:$0xff]   ;;  %v1249_v17 = vld [vmem:[%s1646_s1 + $0x20] sm:$0xff]   ;;  %v1253_v21 = vld [vmem:[%s1646_s1 + $0x28] sm:$0xff]  }
   0x7   :  { %1085 = vmatpush3.bf16.msra.mxu0 %v1237_v5  ;;  %v1246_v14 = vld [vmem:[%s1646_s1 + $0xd8] sm:$0xff]   ;;  %v1250_v18 = vld [vmem:[%s1646_s1 + $0xe0] sm:$0xff]   ;;  %v1254_v22 = vld [vmem:[%s1646_s1 + $0xe8] sm:$0xff]  }
   0x8   :  { %1086 = vmatprep.subr.bf16.mxu0 %v1240_v8  ;;  %v1247_v15 = vld [vmem:[%s1646_s1 + $0x98] sm:$0xff]   ;;  %v1251_v19 = vld [vmem:[%s1646_s1 + $0xa0] sm:$0xff]   ;;  %v1255_v23 = vld [vmem:[%s1646_s1 + $0xa8] sm:$0xff]  }
   0x9   :  { %1107 = vmatpush3.bf16.msra.mxu1 %v1239_v7  ;;  %v1256_v24 = vld [vmem:[%s1646_s1 + $0x70] sm:$0xff]   ;;  %v1260_v29 = vld [vmem:[%s1646_s1 + $0x78] sm:$0xff]   ;;  %v22_v33 = vld [vmem:[%s1645_s0] sm:$0xff] }
   0xa   :  { %1108 = vmatprep.subr.bf16.mxu1 %v1242_v10  ;;  %v1257_v25 = vld [vmem:[%s1646_s1 + $0x30] sm:$0xff]   ;;  %v1261_v30 = vld [vmem:[%s1646_s1 + $0x38] sm:$0xff]   ;;  %v1264_v37 = vld [vmem:[%s1646_s1 + $0x140] sm:$0xff]   ;;  %v28_v39 = vcombine.high %v22_v33, %v22_v33  ;;  %v35_v42 = vrot.slane %v22_v33, %v1477_v41 }
   0xb   :  { %1087 = vmatpush3.bf16.msra.mxu0 %v1241_v9  ;;  %v1258_v26 = vld [vmem:[%s1646_s1 + $0xf0] sm:$0xff]   ;;  %v1262_v31 = vld [vmem:[%s1646_s1 + $0xf8] sm:$0xff]   ;;  %v1267_v40 = vld [vmem:[%s1646_s1 + $0x1c0] sm:$0xff]  }
   0xc   :  { %1088 = vmatprep.subr.bf16.mxu0 %v1244_v12  ;;  %v1259_v28 = vld [vmem:[%s1646_s1 + $0xb0] sm:$0xff]   ;;  %v1263_v34 = vld [vmem:[%s1646_s1 + $0xb8] sm:$0xff]   ;;  %v42_v43 = vrot.slane %v28_v39, %v1477_v41  ;;  %v43_v44 = vcombine.high %v35_v42, %v35_v42  ;;  %v1266_v46 = vld [vmem:[%s1646_s1 + $0x100] sm:$0xff]   ;;  %v78_v47 = vpack.c.bf16 %v35_v42, %v35_v42 }
   0xd   :  { %1109 = vmatpush3.bf16.msra.mxu1 %v1243_v11  ;;  %v1268_v49 = vld [vmem:[%s1646_s1 + $0x180] sm:$0xff]   ;;  %v1269_v52 = vld [vmem:[%s1646_s1 + $0x148] sm:$0xff]   ;;  %v1273_v56 = vld [vmem:[%s1646_s1 + $0x150] sm:$0xff]  }
   0xe   :  { %1110 = vmatprep.subr.bf16.mxu1 %v1246_v14  ;;  %v44_v45 = vcombine.high %v42_v43, %v42_v43  ;;  %v80_v48 = vpack.c.bf16 %v42_v43, %v42_v43  ;;  %v79_v50 = vpack.c.bf16 %v43_v44, %v43_v44  ;;  %v1271_v53 = vld [vmem:[%s1646_s1 + $0x1c8] sm:$0xff]   ;;  %v1275_v57 = vld [vmem:[%s1646_s1 + $0x1d0] sm:$0xff]   ;;  %v1277_v60 = vld [vmem:[%s1646_s1 + $0x158] sm:$0xff]  }
   0xf   :  { %1089 = vmatpush3.bf16.msra.mxu0 %v1245_v13  ;;  %v1270_v54 = vld [vmem:[%s1646_s1 + $0x108] sm:$0xff]   ;;  %v1274_v58 = vld [vmem:[%s1646_s1 + $0x110] sm:$0xff]   ;;  %v1279_v61 = vld [vmem:[%s1646_s1 + $0x1d8] sm:$0xff]  }
  0x10   :  { %1090 = vmatprep.subr.bf16.mxu0 %v1248_v16  ;;  %v81_v51 = vpack.c.bf16 %v44_v45, %v44_v45  ;;  %702 = vmatprep.mubr.bf16.mxu0 %v79_v50  ;;  %v1272_v55 = vld [vmem:[%s1646_s1 + $0x188] sm:$0xff]   ;;  %v1276_v59 = vld [vmem:[%s1646_s1 + $0x190] sm:$0xff]   ;;  %v1278_v62 = vld [vmem:[%s1646_s1 + $0x118] sm:$0xff]  }
  0x11   :  { %1111 = vmatpush3.bf16.msra.mxu1 %v1247_v15  ;;  %v1280_v63 = vld [vmem:[%s1646_s1 + $0x198] sm:$0xff]   ;;  %v1281_v0 = vld [vmem:[%s1646_s1 + $0x160] sm:$0xff]   ;;  %v1285_v4 = vld [vmem:[%s1646_s1 + $0x168] sm:$0xff]  }
  0x12   :  { %1112 = vmatprep.subr.bf16.mxu1 %v1250_v18  ;;  %742 = vmatprep.mubr.bf16.mxu1 %v81_v51  ;;  %v1283_v1 = vld [vmem:[%s1646_s1 + $0x1e0] sm:$0xff]   ;;  %v1287_v5 = vld [vmem:[%s1646_s1 + $0x1e8] sm:$0xff]   ;;  %v1289_v8 = vld [vmem:[%s1646_s1 + $0x170] sm:$0xff]  }
  0x13   :  { %1091 = vmatpush3.bf16.msra.mxu0 %v1249_v17  ;;  %v1282_v2 = vld [vmem:[%s1646_s1 + $0x120] sm:$0xff]   ;;  %v1286_v6 = vld [vmem:[%s1646_s1 + $0x128] sm:$0xff]   ;;  %v1291_v9 = vld [vmem:[%s1646_s1 + $0x1f0] sm:$0xff]  }
  0x14   :  { %1092 = vmatprep.subr.bf16.mxu0 %v1252_v20  ;;  %v1284_v3 = vld [vmem:[%s1646_s1 + $0x1a0] sm:$0xff]   ;;  %v1288_v7 = vld [vmem:[%s1646_s1 + $0x1a8] sm:$0xff]   ;;  %v1290_v11 = vld [vmem:[%s1646_s1 + $0x130] sm:$0xff]  }
  0x15   :  { %1113 = vmatpush3.bf16.msra.mxu1 %v1251_v19  ;;  %v23_v10 = vld [vmem:[%s1645_s0 + $0x8] sm:$0xff]  ;;  %v1292_v14 = vld [vmem:[%s1646_s1 + $0x1b0] sm:$0xff]   ;;  %v1293_v15 = vld [vmem:[%s1646_s1 + $0x178] sm:$0xff]  }
  0x16   :  { %1114 = vmatprep.subr.bf16.mxu1 %v1254_v22  ;;  %v52_v12 = vrot.slane %v23_v10, %v1477_v41  ;;  %v45_v13 = vcombine.high %v23_v10, %v23_v10  ;;  %v1295_v18 = vld [vmem:[%s1646_s1 + $0x1f8] sm:$0xff]  }
  0x17   :  { %1093 = vmatpush3.bf16.msra.mxu0 %v1253_v21  ;;  %v1294_v21 = vld [vmem:[%s1646_s1 + $0x138] sm:$0xff]  }
  0x18   :  { %1094 = vmatprep.subr.bf16.mxu0 %v1256_v24  ;;  %v60_v16 = vcombine.high %v52_v12, %v52_v12  ;;  %v59_v17 = vrot.slane %v45_v13, %v1477_v41  ;;  %v1296_v22 = vld [vmem:[%s1646_s1 + $0x1b8] sm:$0xff]   ;;  %v82_v24 = vpack.c.bf16 %v52_v12, %v52_v12 }
  0x19   :  { %1115 = vmatpush3.bf16.msra.mxu1 %v1255_v23 }
  0x1a   :  { %1116 = vmatprep.subr.bf16.mxu1 %v1258_v26  ;;  %v83_v19 = vpack.c.bf16 %v60_v16, %v60_v16  ;;  %v61_v20 = vcombine.high %v59_v17, %v59_v17  ;;  %v84_v26 = vpack.c.bf16 %v59_v17, %v59_v17 }
  0x1b   :  { %1095 = vmatpush3.bf16.msra.mxu0 %v1257_v25  ;;  %v1298_v25 = vld [vmem:[%s1646_s1 + $0x200] sm:$0xff]  }
  0x1c   :  { %1096 = vmatprep.subr.bf16.mxu0 %v1260_v29  ;;  %v85_v23 = vpack.c.bf16 %v61_v20, %v61_v20 }
  0x1d   :  { %1117 = vmatpush3.bf16.msra.mxu1 %v1259_v28  ;;  %v1299_v28 = vld [vmem:[%s1646_s1 + $0x208] sm:$0xff]  }
  0x1e   :  { %1118 = vmatprep.subr.bf16.mxu1 %v1262_v31 }
  0x1f   :  { %1097 = vmatpush3.bf16.msra.mxu0 %v1261_v30 }
  0x20   :  { %1126 = vmatprep.subr.bf16.mxu0 %v1264_v37 }
  0x21   :  { %1119 = vmatpush3.bf16.msra.mxu1 %v1263_v34 }
  0x22   :  { %1148 = vmatprep.subr.bf16.mxu1 %v1267_v40  ;;  %703 = vmatmul.mubr.bf16.vlgmr.msra.gmra.mrb[0].mxu0 %v78_v47 }
  0x23   :  { %1127 = vmatpush3.bf16.msra.mxu0 %v1266_v46  ;;  %782 = vmatprep.mubr.bf16.mxu0 %v83_v19 }
  0x24   :  { %743 = vmatmul.mubr.bf16.vlgmr.msra.gmra.mrb[0].mxu1 %v80_v48  ;;  %1128 = vmatprep.subr.bf16.mxu0 %v1269_v52 }
  0x25   :  { %1149 = vmatpush3.bf16.msra.mxu1 %v1268_v49  ;;  %822 = vmatprep.mubr.bf16.mxu1 %v85_v23 }
  0x26   :  { %1150 = vmatprep.subr.bf16.mxu1 %v1271_v53 }
  0x27   :  { %1129 = vmatpush3.bf16.msra.mxu0 %v1270_v54 }
  0x28   :  { %1130 = vmatprep.subr.bf16.mxu0 %v1273_v56 }
  0x29   :  { %1151 = vmatpush3.bf16.msra.mxu1 %v1272_v55 }
  0x2a   :  { %1152 = vmatprep.subr.bf16.mxu1 %v1275_v57 }
  0x2b   :  { %1131 = vmatpush3.bf16.msra.mxu0 %v1274_v58 }
  0x2c   :  { %1132 = vmatprep.subr.bf16.mxu0 %v1277_v60 }
  0x2d   :  { %1153 = vmatpush3.bf16.msra.mxu1 %v1276_v59 }
  0x2e   :  { %1154 = vmatprep.subr.bf16.mxu1 %v1279_v61 }
  0x2f   :  { %1133 = vmatpush3.bf16.msra.mxu0 %v1278_v62 }
  0x30   :  { %1134 = vmatprep.subr.bf16.mxu0 %v1281_v0 }
  0x31   :  { %1155 = vmatpush3.bf16.msra.mxu1 %v1280_v63 }
  0x32   :  { %1156 = vmatprep.subr.bf16.mxu1 %v1283_v1 }
  0x33   :  { %1135 = vmatpush3.bf16.msra.mxu0 %v1282_v2 }
  0x34   :  { %1136 = vmatprep.subr.bf16.mxu0 %v1285_v4 }
  0x35   :  { %1157 = vmatpush3.bf16.msra.mxu1 %v1284_v3 }
  0x36   :  { %1158 = vmatprep.subr.bf16.mxu1 %v1287_v5 }
  0x37   :  { %1137 = vmatpush3.bf16.msra.mxu0 %v1286_v6 }
  0x38   :  { %1138 = vmatprep.subr.bf16.mxu0 %v1289_v8 }
  0x39   :  { %1159 = vmatpush3.bf16.msra.mxu1 %v1288_v7 }
  0x3a   :  { %1160 = vmatprep.subr.bf16.mxu1 %v1291_v9 }
  0x3b   :  { %1139 = vmatpush3.bf16.msra.mxu0 %v1290_v11 }
  0x3c   :  { %1140 = vmatprep.subr.bf16.mxu0 %v1293_v15 }
  0x3d   :  { %1161 = vmatpush3.bf16.msra.mxu1 %v1292_v14 }
  0x3e   :  { %1162 = vmatprep.subr.bf16.mxu1 %v1295_v18 }
  0x3f   :  { %1141 = vmatpush3.bf16.msra.mxu0 %v1294_v21 }
  0x40   :  { %1188 = vmatprep.subr.bf16.mxu0 %v1339_v27 }
  0x41   :  { %1163 = vmatpush3.bf16.msra.mxu1 %v1296_v22 }
  0x42   :  { %1208 = vmatprep.subr.bf16.mxu1 %v1339_v27  ;;  %783 = vmatmul.mubr.bf16.vlgmr.msra.gmra.mrb[4].mxu0 %v82_v24 }
  0x43   :  { %1189 = vmatpush3.bf16.msra.mxu0 %v1298_v25  ;;  %1204 = vmatprep.mubr.msk.bf16.mxu0 %vm1340_vm0, %v1339_v27 }
  0x44   :  { %823 = vmatmul.mubr.bf16.vlgmr.msra.gmra.mrb[4].mxu1 %v84_v26 }
  0x45   :  { %10 = vsyncpa [#allocation3], 0  ;;  %1190 = vmatprep.subr.bf16.mxu0 %v1339_v27  ;;  %1224 = vmatprep.mubr.msk.bf16.mxu1 %vm1340_vm0, %v1339_v27  ;;  %v1300_v29 = vld [vmem:[%s1646_s1 + $0x210] sm:$0xff]   ;;  %v1301_v30 = vld [vmem:[%s1646_s1 + $0x218] sm:$0xff]   ;;  %s1341_s9 = smov [#allocation2]  }
  0x46   :  { %v1302_v31 = vld [vmem:[%s1646_s1 + $0x220] sm:$0xff]   ;;  %v1303_v32 = vld [vmem:[%s1646_s1 + $0x228] sm:$0xff]   ;;  %v1304_v33 = vld [vmem:[%s1646_s1 + $0x230] sm:$0xff]   ;;  %s991_s10 = sshll.u32 %s1341_s9, 4  ;;  %s992_s10 = int_to_ptr.vmem [resolvable:$true] %s991_s10 }
  0x47   :  { %1191 = vmatpush3.bf16.msra.mxu0 %v1299_v28  ;;  %v1305_v34 = vld [vmem:[%s1646_s1 + $0x238] sm:$0xff]   ;;  %v999_v35 = vld.sshfl [vmem:[%s1645_s0 + $0x10] sm:$0x3 pattern:$0x76325410]  ;;  %v1306_v37 = vld [vmem:[%s1648_s3] sm:$0xff]   ;;  %p1319_p1 = scmp.lt.s32.totalorder %s992_s10, %s992_s10 }
  0x48   :  { %1192 = vmatprep.subr.bf16.mxu0 %v1339_v27  ;;  %v86_v36 = vpack.c.bf16 %v999_v35, %v999_v35  ;;  %1209 = vmatpush3.bf16.msra.mxu1 %v1306_v37  ;;  %v1307_v38 = vld [vmem:[%s1648_s3 + $0x8] sm:$0xff]   ;;  %v1308_v39 = vld [vmem:[%s1648_s3 + $0x10] sm:$0xff]   ;;  %v1309_v40 = vld [vmem:[%s1648_s3 + $0x18] sm:$0xff]   ;;  %s1314_s11 = scalar_lea.vmem %s992_s10, 32 }
  0x49   :  { %1210 = vmatprep.subr.bf16.mxu1 %v1339_v27  ;;  %v1310_v41 = vld [vmem:[%s1648_s3 + $0x20] sm:$0xff]   ;;  %v1311_v42 = vld [vmem:[%s1648_s3 + $0x28] sm:$0xff]   ;;  %v1312_v43 = vld [vmem:[%s1648_s3 + $0x30] sm:$0xff]   ;;  %p1315_p0 = scmp.ne.s32.totalorder %s992_s10, %s1314_s11  ;;  %p1320_p2 = scmp.lt.s32.totalorder %s1314_s11, %s1314_s11 }
  0x4a   :  { %v1313_v44 = vld [vmem:[%s1648_s3 + $0x38] sm:$0xff]   ;;  %v1000_v47 = vld [vmem:[%s1647_s2] ss:$0 sm:$0xff] }
  0x4b   :  { %1193 = vmatpush3.bf16.msra.mxu0 %v1300_v29  ;;  %v1073_v13 = vld [vmem:[%s1649_s4] ss:$0 sm:$0xff]  ;;  %p1321_p3 = por %p1320_p2, %p1319_p1 }
  0x4c   :  { %1194 = vmatprep.subr.bf16.mxu0 %v1339_v27  ;;  %1211 = vmatpush3.bf16.msra.mxu1 %v1307_v38 }
  0x4d   :  { %1212 = vmatprep.subr.bf16.mxu1 %v1339_v27  ;;  %p1322_p4 = pnand %p1321_p3, %p1315_p0 }
  0x4f   :  { %1195 = vmatpush3.bf16.msra.mxu0 %v1301_v30 }
  0x50   :  { %1196 = vmatprep.subr.bf16.mxu0 %v1339_v27  ;;  %1213 = vmatpush3.bf16.msra.mxu1 %v1308_v39 }
  0x51   :  { %1214 = vmatprep.subr.bf16.mxu1 %v1339_v27 }
  0x53   :  { %1197 = vmatpush3.bf16.msra.mxu0 %v1302_v31 }
  0x54   :  { %1198 = vmatprep.subr.bf16.mxu0 %v1339_v27  ;;  %1215 = vmatpush3.bf16.msra.mxu1 %v1309_v40 }
  0x55   :  { %1216 = vmatprep.subr.bf16.mxu1 %v1339_v27 }
  0x57   :  { %1199 = vmatpush3.bf16.msra.mxu0 %v1303_v32 }
  0x58   :  { %1200 = vmatprep.subr.bf16.mxu0 %v1339_v27  ;;  %1217 = vmatpush3.bf16.msra.mxu1 %v1310_v41 }
  0x59   :  { %1218 = vmatprep.subr.bf16.mxu1 %v1339_v27 }
  0x5b   :  { %1201 = vmatpush3.bf16.msra.mxu0 %v1304_v33 }
  0x5c   :  { %1202 = vmatprep.subr.bf16.mxu0 %v1339_v27  ;;  %1219 = vmatpush3.bf16.msra.mxu1 %v1311_v42 }
  0x5d   :  { %1220 = vmatprep.subr.bf16.mxu1 %v1339_v27 }
  0x5f   :  { %1203 = vmatpush3.bf16.msra.mxu0 %v1305_v34 }
  0x60   :  { %1221 = vmatpush3.bf16.msra.mxu1 %v1312_v43 }
  0x61   :  { %1222 = vmatprep.subr.bf16.mxu1 %v1339_v27 }
  0x62   :  { %1205 = vmatmul.mubr.bf16.vlgmr.msra.gmra.mrb[8].mxu0 %v86_v36 }
  0x64   :  { %1223 = vmatpush3.bf16.msra.mxu1 %v1313_v44 }
  0xf5   :  { %v1098_v45 = vpop.f32.mrb[0].mxu0 }
  0xf6   :  { %v1099_v48 = vpop.f32.mrb[1].mxu0 }
  0xf7   :  { %v1120_v46 = vpop.f32.mrb[0].mxu1  ;;  %v1100_v50 = vadd.f32 %v1099_v48, %v1098_v45  ;;  %v1101_v51 = vpop.f32.mrb[2].mxu0 }
  0xf8   :  { %v1121_v49 = vpop.f32.mrb[1].mxu1  ;;  %v1102_v54 = vpop.f32.mrb[3].mxu0 }
  0xf9   :  { %v1122_v52 = vadd.f32 %v1121_v49, %v1120_v46  ;;  %v1123_v53 = vpop.f32.mrb[2].mxu1  ;;  %v705_v56 = vadd.f32 %v1100_v50, %v1000_v47 }
  0xfa   :  { %v1124_v55 = vpop.f32.mrb[3].mxu1 }
  0xfb   :  { %v745_v57 = vadd.f32 %v1122_v52, %v705_v56 }
 0x115   :  { %v1142_v58 = vpop.f32.mrb[4].mxu0 }
 0x116   :  { %v1143_v60 = vpop.f32.mrb[5].mxu0 }
 0x117   :  { %v1164_v59 = vpop.f32.mrb[4].mxu1  ;;  %v1144_v62 = vadd.f32 %v1143_v60, %v1142_v58  ;;  %v1145_v63 = vpop.f32.mrb[6].mxu0 }
 0x118   :  { %v1165_v61 = vpop.f32.mrb[5].mxu1  ;;  %v1146_v2 = vpop.f32.mrb[7].mxu0 }
 0x119   :  { %v1166_v0 = vadd.f32 %v1165_v61, %v1164_v59  ;;  %v1167_v1 = vpop.f32.mrb[6].mxu1  ;;  %v785_v4 = vadd.f32 %v1144_v62, %v745_v57 }
 0x11a   :  { %v1168_v3 = vpop.f32.mrb[7].mxu1 }
 0x11b   :  { %v825_v5 = vadd.f32 %v1166_v0, %v785_v4 }
 0x135   :  { %v864_v6 = vpop.f32.mrb[8].mxu0 }
 0x136   :  { %v865_v7 = vadd.f32 %v864_v6, %v825_v5  ;;  %v1206_v8 = vpop.f32.mrb[9].mxu0 }
 0x137   :  { %v867_v9 = vpop.f32.mrb[10].mxu0 }
 0x138   :  { %v870_v10 = vmax.f32 %v865_v7, 0.0  ;;  %v1207_v11 = vpop.f32.mrb[11].mxu0 }
 0x13a   :  { %v871_v12 = vpack.c.bf16 %v870_v10, %v870_v10 }
 0x13c   :  { %1225 = vmatmul.mubr.bf16.vlgmr.msra.gmra.mrb[8].mxu1 %v871_v12 }
 0x20f   :  { %v977_v14 = vpop.f32.mrb[8].mxu1 }
 0x210   :  { %v978_v15 = vadd.f32 %v1073_v13, %v977_v14  ;;  %v1226_v16 = vpop.f32.mrb[9].mxu1 }
 0x211   :  { %v980_v17 = vpop.f32.mrb[10].mxu1 }
 0x212   :  { %v983_v18 = vmax.f32 %v978_v15, 0.0  ;;  %v1227_v19 = vpop.f32.mrb[11].mxu1 }
 0x214   :  { %984 = vst [vmem:[#allocation2] sm:$0x3] %v983_v18 }
 0x215   :  { %1325 = shalt.err (!%p1322_p4)
}
 0x216   :  { %s1326_s4 = scalar_lea.hbm %s1650_s5, 32 }
 0x217   :  { %p1327_p5 = scmp.ne.s32.totalorder %s1650_s5, %s1326_s4  ;;  %p1330_p6 = scmp.lt.u32.totalorder %s1326_s4, %s1650_s5 }
 0x219   :  { %p1332_p7 = pnand %p1330_p6, %p1327_p5 }
 0x21b   :  { %1335 = shalt.err (!%p1332_p7)
}
 0x21c   :  { %994 = dma.vmem_to_hbm [thread:$0]  %s992_s10, 32, %s1650_s5, [#allocation3]  }
 0x21d   :  { %1336 = dma.done.wait [#allocation3], 32  }
 0x21e   :  { %1337 = vsyncadd [#allocation3], 4294967264 }
 0x21f   :  { %998 = vsyncpa [#allocation3], 1 }

// kernel: net1_forward.7
= control target key start
LH: loop header
LB: loop body
LE: loop exit
PB: predicated region body
PF: predicated region fallthrough
CT: control target
= control target key end

     0   :  { %s2615_s1 = inlined_call_operand.vmem [shape: bf16[1152,128], index: 1, kind: input, shape index: {}]   ;;  %s2616_s0 = inlined_call_operand.vmem [shape: f32[128,1152], index: 0, kind: input, shape index: {}]   ;;  %s2617_s2 = inlined_call_operand.vmem [shape: f32[1,128], index: 2, kind: input, shape index: {}]   ;;  %s2618_s3 = inlined_call_operand.vmem [shape: f32[128,128], index: 3, kind: output, shape index: {}]  }
   0x1   :  { %v1728_v0 = vld [vmem:[%s2615_s1 + $0x40] sm:$0xff]   ;;  %v1732_v4 = vld [vmem:[%s2615_s1 + $0x48] sm:$0xff]   ;;  %v1736_v8 = vld [vmem:[%s2615_s1 + $0x50] sm:$0xff]  }
   0x2   :  { %v1729_v1 = vld [vmem:[%s2615_s1 + $0xc0] sm:$0xff]   ;;  %1408 = vmatprep.subr.bf16.mxu0 %v1728_v0  ;;  %v1733_v5 = vld [vmem:[%s2615_s1 + $0xc8] sm:$0xff]   ;;  %v1737_v9 = vld [vmem:[%s2615_s1 + $0xd0] sm:$0xff]  }
   0x3   :  { %v1730_v2 = vld [vmem:[%s2615_s1] sm:$0xff]   ;;  %1472 = vmatprep.subr.bf16.mxu1 %v1729_v1  ;;  %v1734_v6 = vld [vmem:[%s2615_s1 + $0x8] sm:$0xff]   ;;  %v1738_v10 = vld [vmem:[%s2615_s1 + $0x10] sm:$0xff]  }
   0x4   :  { %v1731_v3 = vld [vmem:[%s2615_s1 + $0x80] sm:$0xff]   ;;  %1409 = vmatpush3.bf16.msra.mxu0 %v1730_v2  ;;  %v1735_v7 = vld [vmem:[%s2615_s1 + $0x88] sm:$0xff]   ;;  %v1739_v11 = vld [vmem:[%s2615_s1 + $0x90] sm:$0xff]  }
   0x5   :  { %1473 = vmatpush3.bf16.msra.mxu1 %v1731_v3  ;;  %1410 = vmatprep.subr.bf16.mxu0 %v1732_v4  ;;  %v1740_v12 = vld [vmem:[%s2615_s1 + $0x58] sm:$0xff]   ;;  %v1744_v16 = vld [vmem:[%s2615_s1 + $0x60] sm:$0xff]   ;;  %v1748_v20 = vld [vmem:[%s2615_s1 + $0x68] sm:$0xff]  }
   0x6   :  { %1474 = vmatprep.subr.bf16.mxu1 %v1733_v5  ;;  %v1741_v13 = vld [vmem:[%s2615_s1 + $0xd8] sm:$0xff]   ;;  %v1745_v17 = vld [vmem:[%s2615_s1 + $0xe0] sm:$0xff]   ;;  %v1749_v21 = vld [vmem:[%s2615_s1 + $0xe8] sm:$0xff]  }
   0x7   :  { %v1742_v14 = vld [vmem:[%s2615_s1 + $0x18] sm:$0xff]   ;;  %v1746_v18 = vld [vmem:[%s2615_s1 + $0x20] sm:$0xff]   ;;  %v1750_v22 = vld [vmem:[%s2615_s1 + $0x28] sm:$0xff]  }
   0x8   :  { %1411 = vmatpush3.bf16.msra.mxu0 %v1734_v6  ;;  %v1743_v15 = vld [vmem:[%s2615_s1 + $0x98] sm:$0xff]   ;;  %v1747_v19 = vld [vmem:[%s2615_s1 + $0xa0] sm:$0xff]   ;;  %v1751_v23 = vld [vmem:[%s2615_s1 + $0xa8] sm:$0xff]  }
   0x9   :  { %1475 = vmatpush3.bf16.msra.mxu1 %v1735_v7  ;;  %1412 = vmatprep.subr.bf16.mxu0 %v1736_v8  ;;  %v1752_v24 = vld [vmem:[%s2615_s1 + $0x70] sm:$0xff]   ;;  %v1756_v28 = vld [vmem:[%s2615_s1 + $0x78] sm:$0xff]   ;;  %v16_v32 = vld [vmem:[%s2616_s0 + $0x8] sm:$0xff] }
   0xa   :  { %1476 = vmatprep.subr.bf16.mxu1 %v1737_v9  ;;  %v1753_v25 = vld [vmem:[%s2615_s1 + $0xf0] sm:$0xff]   ;;  %v1757_v29 = vld [vmem:[%s2615_s1 + $0xf8] sm:$0xff]   ;;  %v27_v36 = vld [vmem:[%s2616_s0 + $0x60] sm:$0xff] }
   0xb   :  { %v1754_v26 = vld [vmem:[%s2615_s1 + $0x30] sm:$0xff]   ;;  %v1758_v30 = vld [vmem:[%s2615_s1 + $0x38] sm:$0xff]   ;;  %v15_v37 = vld [vmem:[%s2616_s0] sm:$0xff] }
   0xc   :  { %1413 = vmatpush3.bf16.msra.mxu0 %v1738_v10  ;;  %v1755_v27 = vld [vmem:[%s2615_s1 + $0xb0] sm:$0xff]   ;;  %v1759_v31 = vld [vmem:[%s2615_s1 + $0xb8] sm:$0xff]   ;;  %v24_v38 = vld [vmem:[%s2616_s0 + $0x48] sm:$0xff] }
   0xd   :  { %1477 = vmatpush3.bf16.msra.mxu1 %v1739_v11  ;;  %1414 = vmatprep.subr.bf16.mxu0 %v1740_v12  ;;  %v25_v33 = vld [vmem:[%s2616_s0 + $0x50] sm:$0xff]  ;;  %v18_v34 = vld [vmem:[%s2616_s0 + $0x18] sm:$0xff]  ;;  %v159_v40 = vpack.c.bf16 %v24_v38, %v15_v37  ;;  %v1760_v44 = vld [vmem:[%s2615_s1 + $0x140] sm:$0xff]  }
   0xe   :  { %1478 = vmatprep.subr.bf16.mxu1 %v1741_v13  ;;  %v160_v35 = vpack.c.bf16 %v25_v33, %v16_v32  ;;  %v162_v39 = vpack.c.bf16 %v27_v36, %v18_v34  ;;  %v17_v41 = vld [vmem:[%s2616_s0 + $0x10] sm:$0xff]  ;;  %v26_v42 = vld [vmem:[%s2616_s0 + $0x58] sm:$0xff]  ;;  %v1761_v45 = vld [vmem:[%s2615_s1 + $0x1c0] sm:$0xff]  }
   0xf   :  { %v161_v43 = vpack.c.bf16 %v26_v42, %v17_v41  ;;  %v1762_v46 = vld [vmem:[%s2615_s1 + $0x100] sm:$0xff]   ;;  %v34_v48 = vld [vmem:[%s2616_s0 + $0x98] sm:$0xff]  ;;  %v36_v50 = vld [vmem:[%s2616_s0 + $0xa8] sm:$0xff] }
  0x10   :  { %1415 = vmatpush3.bf16.msra.mxu0 %v1742_v14  ;;  %846 = vmatprep.mubr.bf16.mxu0 %v160_v35  ;;  %v1763_v47 = vld [vmem:[%s2615_s1 + $0x180] sm:$0xff]   ;;  %v45_v51 = vld [vmem:[%s2616_s0 + $0xf0] sm:$0xff]  ;;  %v42_v55 = vld [vmem:[%s2616_s0 + $0xd8] sm:$0xff] }
  0x11   :  { %1479 = vmatpush3.bf16.msra.mxu1 %v1743_v15  ;;  %1416 = vmatprep.subr.bf16.mxu0 %v1744_v16  ;;  %v43_v49 = vld [vmem:[%s2616_s0 + $0xe0] sm:$0xff]  ;;  %v171_v53 = vpack.c.bf16 %v45_v51, %v36_v50  ;;  %v33_v54 = vld [vmem:[%s2616_s0 + $0x90] sm:$0xff]  ;;  %v44_v58 = vld [vmem:[%s2616_s0 + $0xe8] sm:$0xff] }
  0x12   :  { %1480 = vmatprep.subr.bf16.mxu1 %v1745_v17  ;;  %943 = vmatprep.mubr.bf16.mxu1 %v162_v39  ;;  %v169_v52 = vpack.c.bf16 %v43_v49, %v34_v48  ;;  %v35_v56 = vld [vmem:[%s2616_s0 + $0xa0] sm:$0xff]  ;;  %v168_v57 = vpack.c.bf16 %v42_v55, %v33_v54  ;;  %v1764_v60 = vld [vmem:[%s2615_s1 + $0x148] sm:$0xff]   ;;  %v61_v1 = vld [vmem:[%s2616_s0 + $0x170] sm:$0xff] }
  0x13   :  { %v170_v59 = vpack.c.bf16 %v44_v58, %v35_v56  ;;  %v1765_v61 = vld [vmem:[%s2615_s1 + $0x1c8] sm:$0xff]   ;;  %v54_v3 = vld [vmem:[%s2616_s0 + $0x138] sm:$0xff]  ;;  %v63_v4 = vld [vmem:[%s2616_s0 + $0x180] sm:$0xff] }
  0x14   :  { %1417 = vmatpush3.bf16.msra.mxu0 %v1746_v18  ;;  %v1766_v62 = vld [vmem:[%s2615_s1 + $0x108] sm:$0xff]   ;;  %v51_v5 = vld [vmem:[%s2616_s0 + $0x120] sm:$0xff]  ;;  %v180_v6 = vpack.c.bf16 %v63_v4, %v54_v3  ;;  %v53_v8 = vld [vmem:[%s2616_s0 + $0x130] sm:$0xff] }
  0x15   :  { %1481 = vmatpush3.bf16.msra.mxu1 %v1747_v19  ;;  %1418 = vmatprep.subr.bf16.mxu0 %v1748_v20  ;;  %v1767_v63 = vld [vmem:[%s2615_s1 + $0x188] sm:$0xff]   ;;  %v62_v9 = vld [vmem:[%s2616_s0 + $0x178] sm:$0xff]  ;;  %v1768_v11 = vld [vmem:[%s2615_s1 + $0x150] sm:$0xff]  }
  0x16   :  { %1482 = vmatprep.subr.bf16.mxu1 %v1749_v21  ;;  %v52_v0 = vld [vmem:[%s2616_s0 + $0x128] sm:$0xff]  ;;  %v179_v12 = vpack.c.bf16 %v62_v9, %v53_v8  ;;  %v1769_v13 = vld [vmem:[%s2615_s1 + $0x1d0] sm:$0xff]   ;;  %v70_v16 = vld [vmem:[%s2616_s0 + $0x1b8] sm:$0xff] }
  0x17   :  { %v178_v2 = vpack.c.bf16 %v61_v1, %v52_v0  ;;  %v60_v7 = vld [vmem:[%s2616_s0 + $0x168] sm:$0xff]  ;;  %v1770_v14 = vld [vmem:[%s2615_s1 + $0x110] sm:$0xff]   ;;  %v79_v17 = vld [vmem:[%s2616_s0 + $0x200] sm:$0xff] }
  0x18   :  { %1419 = vmatpush3.bf16.msra.mxu0 %v1750_v22  ;;  %v177_v10 = vpack.c.bf16 %v60_v7, %v51_v5  ;;  %v1771_v15 = vld [vmem:[%s2615_s1 + $0x190] sm:$0xff]   ;;  %v72_v18 = vld [vmem:[%s2616_s0 + $0x1c8] sm:$0xff]  ;;  %v187_v19 = vpack.c.bf16 %v79_v17, %v70_v16  ;;  %v78_v22 = vld [vmem:[%s2616_s0 + $0x1f8] sm:$0xff] }
  0x19   :  { %1483 = vmatpush3.bf16.msra.mxu1 %v1751_v23  ;;  %1420 = vmatprep.subr.bf16.mxu0 %v1752_v24  ;;  %v81_v20 = vld [vmem:[%s2616_s0 + $0x210] sm:$0xff]  ;;  %v71_v24 = vld [vmem:[%s2616_s0 + $0x1c0] sm:$0xff]  ;;  %v88_v32 = vld [vmem:[%s2616_s0 + $0x248] sm:$0xff] }
  0x1a   :  { %1484 = vmatprep.subr.bf16.mxu1 %v1753_v25  ;;  %v69_v21 = vld [vmem:[%s2616_s0 + $0x1b0] sm:$0xff]  ;;  %v189_v23 = vpack.c.bf16 %v81_v20, %v72_v18  ;;  %v80_v25 = vld [vmem:[%s2616_s0 + $0x208] sm:$0xff]  ;;  %v90_v34 = vld [vmem:[%s2616_s0 + $0x258] sm:$0xff] }
  0x1b   :  { %v97_v33 = vld [vmem:[%s2616_s0 + $0x290] sm:$0xff]  ;;  %v99_v35 = vld [vmem:[%s2616_s0 + $0x2a0] sm:$0xff]  ;;  %v96_v39 = vld [vmem:[%s2616_s0 + $0x288] sm:$0xff] }
  0x1c   :  { %1421 = vmatpush3.bf16.msra.mxu0 %v1754_v26  ;;  %v1772_v26 = vld [vmem:[%s2615_s1 + $0x158] sm:$0xff]   ;;  %v196_v36 = vpack.c.bf16 %v97_v33, %v88_v32  ;;  %v198_v37 = vpack.c.bf16 %v99_v35, %v90_v34  ;;  %v87_v38 = vld [vmem:[%s2616_s0 + $0x240] sm:$0xff]  ;;  %v108_v51 = vld [vmem:[%s2616_s0 + $0x2e8] sm:$0xff] }
  0x1d   :  { %1485 = vmatpush3.bf16.msra.mxu1 %v1755_v27  ;;  %1422 = vmatprep.subr.bf16.mxu0 %v1756_v28  ;;  %v186_v27 = vpack.c.bf16 %v78_v22, %v69_v21  ;;  %v1773_v28 = vld [vmem:[%s2615_s1 + $0x1d8] sm:$0xff]   ;;  %v1776_v42 = vld [vmem:[%s2615_s1 + $0x160] sm:$0xff]   ;;  %v105_v54 = vld [vmem:[%s2616_s0 + $0x2d0] sm:$0xff] }
  0x1e   :  { %1486 = vmatprep.subr.bf16.mxu1 %v1757_v29  ;;  %v188_v29 = vpack.c.bf16 %v80_v25, %v71_v24  ;;  %v98_v41 = vld [vmem:[%s2616_s0 + $0x298] sm:$0xff]  ;;  %v115_v49 = vld [vmem:[%s2616_s0 + $0x320] sm:$0xff]  ;;  %v1780_v58 = vld [vmem:[%s2615_s1 + $0x168] sm:$0xff]  }
  0x1f   :  { %v106_v48 = vld [vmem:[%s2616_s0 + $0x2d8] sm:$0xff]  ;;  %v107_v56 = vld [vmem:[%s2616_s0 + $0x2e0] sm:$0xff]  ;;  %v133_v0 = vld [vmem:[%s2616_s0 + $0x3b0] sm:$0xff] }
  0x20   :  { %1423 = vmatpush3.bf16.msra.mxu0 %v1758_v30  ;;  %v1774_v30 = vld [vmem:[%s2615_s1 + $0x118] sm:$0xff]   ;;  %v205_v50 = vpack.c.bf16 %v115_v49, %v106_v48  ;;  %v135_v4 = vld [vmem:[%s2616_s0 + $0x3c0] sm:$0xff]  ;;  %v132_v7 = vld [vmem:[%s2616_s0 + $0x3a8] sm:$0xff] }
  0x21   :  { %1487 = vmatpush3.bf16.msra.mxu1 %v1759_v31  ;;  %1536 = vmatprep.subr.bf16.mxu0 %v1760_v44  ;;  %v1775_v31 = vld [vmem:[%s2615_s1 + $0x198] sm:$0xff]   ;;  %v195_v44 = vpack.c.bf16 %v96_v39, %v87_v38  ;;  %v1784_v8 = vld [vmem:[%s2615_s1 + $0x170] sm:$0xff]   ;;  %v144_v16 = vld [vmem:[%s2616_s0 + $0x408] sm:$0xff] }
  0x22   :  { %1600 = vmatprep.subr.bf16.mxu1 %v1761_v45  ;;  %v1778_v45 = vld [vmem:[%s2615_s1 + $0x120] sm:$0xff]   ;;  %v114_v55 = vld [vmem:[%s2616_s0 + $0x318] sm:$0xff]  ;;  %v125_v9 = vld [vmem:[%s2616_s0 + $0x370] sm:$0xff] }
  0x23   :  { %847 = vmatmul.mubr.bf16.vlgmr.msra.gmra.mrb[0].mxu0 %v159_v40  ;;  %v89_v40 = vld [vmem:[%s2616_s0 + $0x250] sm:$0xff]  ;;  %v126_v1 = vld [vmem:[%s2616_s0 + $0x378] sm:$0xff]  ;;  %v31_v33 = vld [vmem:[%s2616_s0 + $0x80] sm:$0xff] }
  0x24   :  { %944 = vmatmul.mubr.bf16.vlgmr.msra.gmra.mrb[0].mxu1 %v161_v43  ;;  %1537 = vmatpush3.bf16.msra.mxu0 %v1762_v46  ;;  %v1777_v43 = vld [vmem:[%s2615_s1 + $0x1e0] sm:$0xff]   ;;  %v197_v46 = vpack.c.bf16 %v98_v41, %v89_v40  ;;  %v216_v5 = vpack.c.bf16 %v135_v4, %v126_v1  ;;  %v153_v17 = vld [vmem:[%s2616_s0 + $0x450] sm:$0xff]  ;;  %v1788_v22 = vld [vmem:[%s2615_s1 + $0x178] sm:$0xff]  }
  0x25   :  { %1601 = vmatpush3.bf16.msra.mxu1 %v1763_v47  ;;  %854 = vmatprep.mubr.bf16.mxu0 %v169_v52  ;;  %v1779_v47 = vld [vmem:[%s2615_s1 + $0x1a0] sm:$0xff]   ;;  %v117_v52 = vld [vmem:[%s2616_s0 + $0x330] sm:$0xff]  ;;  %v225_v21 = vpack.c.bf16 %v153_v17, %v144_v16  ;;  %v1789_v24 = vld [vmem:[%s2615_s1 + $0x1f8] sm:$0xff]  }
  0x26   :  { %951 = vmatprep.mubr.bf16.mxu1 %v171_v53  ;;  %1538 = vmatprep.subr.bf16.mxu0 %v1764_v60  ;;  %v207_v53 = vpack.c.bf16 %v117_v52, %v108_v51  ;;  %v1782_v60 = vld [vmem:[%s2615_s1 + $0x128] sm:$0xff]   ;;  %v1790_v25 = vld [vmem:[%s2615_s1 + $0x138] sm:$0xff]   ;;  %v1792_v35 = vld [vmem:[%s2615_s1 + $0x200] sm:$0xff]  }
  0x27   :  { %1602 = vmatprep.subr.bf16.mxu1 %v1765_v61  ;;  %v1783_v61 = vld [vmem:[%s2615_s1 + $0x1a8] sm:$0xff]   ;;  %v22_v32 = vld [vmem:[%s2616_s0 + $0x38] sm:$0xff]  ;;  %v19_v39 = vld [vmem:[%s2616_s0 + $0x20] sm:$0xff] }
  0x28   :  { %1539 = vmatpush3.bf16.msra.mxu0 %v1766_v62  ;;  %v204_v62 = vpack.c.bf16 %v114_v55, %v105_v54  ;;  %v166_v38 = vpack.c.bf16 %v31_v33, %v22_v32  ;;  %v28_v40 = vld [vmem:[%s2616_s0 + $0x68] sm:$0xff]  ;;  %v21_v41 = vld [vmem:[%s2616_s0 + $0x30] sm:$0xff]  ;;  %v39_v54 = vld [vmem:[%s2616_s0 + $0xc0] sm:$0xff] }
  0x29   :  { %1603 = vmatpush3.bf16.msra.mxu1 %v1767_v63  ;;  %1540 = vmatprep.subr.bf16.mxu0 %v1768_v11  ;;  %v124_v63 = vld [vmem:[%s2616_s0 + $0x368] sm:$0xff]  ;;  %v1785_v11 = vld [vmem:[%s2615_s1 + $0x1f0] sm:$0xff]   ;;  %v1795_v1 = vld [vmem:[%s2615_s1 + $0x218] sm:$0xff]  }
  0x2a   :  { %1604 = vmatprep.subr.bf16.mxu1 %v1769_v13  ;;  %v214_v3 = vpack.c.bf16 %v133_v0, %v124_v63  ;;  %v1787_v13 = vld [vmem:[%s2615_s1 + $0x1b0] sm:$0xff]   ;;  %v1793_v51 = vld [vmem:[%s2615_s1 + $0x208] sm:$0xff]   ;;  %v82_v17 = vld [vmem:[%s2616_s0 + $0x218] sm:$0xff] }
  0x2b   :  { %855 = vmatmul.mubr.bf16.gmra.mrb[4].mxu0 %v168_v57  ;;  %v116_v57 = vld [vmem:[%s2616_s0 + $0x328] sm:$0xff]  ;;  %v37_v52 = vld [vmem:[%s2616_s0 + $0xb0] sm:$0xff]  ;;  %v102_v33 = vld [vmem:[%s2616_s0 + $0x2b8] sm:$0xff] }
  0x2c   :  { %952 = vmatmul.mubr.bf16.gmra.mrb[4].mxu1 %v170_v59  ;;  %862 = vmatprep.mubr.bf16.mxu0 %v178_v2  ;;  %v1781_v59 = vld [vmem:[%s2615_s1 + $0x1e8] sm:$0xff]   ;;  %v206_v2 = vpack.c.bf16 %v116_v57, %v107_v56  ;;  %v65_v57 = vld [vmem:[%s2616_s0 + $0x190] sm:$0xff] }
  0x2d   :  { %959 = vmatprep.mubr.bf16.mxu1 %v180_v6  ;;  %1541 = vmatpush3.bf16.msra.mxu0 %v1770_v14  ;;  %v123_v6 = vld [vmem:[%s2616_s0 + $0x360] sm:$0xff]  ;;  %v142_v14 = vld [vmem:[%s2616_s0 + $0x3f8] sm:$0xff]  ;;  %v48_v55 = vld [vmem:[%s2616_s0 + $0x108] sm:$0xff] }
  0x2e   :  { %1605 = vmatpush3.bf16.msra.mxu1 %v1771_v15  ;;  %1542 = vmatprep.subr.bf16.mxu0 %v1772_v26  ;;  %v151_v15 = vld [vmem:[%s2616_s0 + $0x440] sm:$0xff]  ;;  %v213_v18 = vpack.c.bf16 %v132_v7, %v123_v6  ;;  %v150_v26 = vld [vmem:[%s2616_s0 + $0x438] sm:$0xff]  ;;  %v56_v56 = vld [vmem:[%s2616_s0 + $0x148] sm:$0xff] }
  0x2f   :  { %1606 = vmatprep.subr.bf16.mxu1 %v1773_v28  ;;  %v223_v20 = vpack.c.bf16 %v151_v15, %v142_v14  ;;  %v1791_v28 = vld [vmem:[%s2615_s1 + $0x1b8] sm:$0xff]   ;;  %v182_v63 = vpack.c.bf16 %v65_v57, %v56_v56  ;;  %v57_v4 = vld [vmem:[%s2616_s0 + $0x150] sm:$0xff]  ;;  %v83_v7 = vld [vmem:[%s2616_s0 + $0x220] sm:$0xff] }
  0x30   :  { %v74_v6 = vld [vmem:[%s2616_s0 + $0x1d8] sm:$0xff]  ;;  %v1797_v15 = vld [vmem:[%s2615_s1 + $0x228] sm:$0xff]   ;;  %v73_v16 = vld [vmem:[%s2616_s0 + $0x1d0] sm:$0xff] }
  0x31   :  { %1543 = vmatpush3.bf16.msra.mxu0 %v1774_v30  ;;  %v20_v30 = vld [vmem:[%s2616_s0 + $0x28] sm:$0xff]  ;;  %v93_v32 = vld [vmem:[%s2616_s0 + $0x270] sm:$0xff]  ;;  %v138_v57 = vld [vmem:[%s2616_s0 + $0x3d8] sm:$0xff] }
  0x32   :  { %1607 = vmatpush3.bf16.msra.mxu1 %v1775_v31  ;;  %1544 = vmatprep.subr.bf16.mxu0 %v1776_v42  ;;  %v29_v31 = vld [vmem:[%s2616_s0 + $0x70] sm:$0xff]  ;;  %v30_v42 = vld [vmem:[%s2616_s0 + $0x78] sm:$0xff] }
  0x33   :  { %863 = vmatmul.mubr.bf16.gmra.mrb[8].mxu0 %v177_v10  ;;  %1608 = vmatprep.subr.bf16.mxu1 %v1777_v43  ;;  %v134_v10 = vld [vmem:[%s2616_s0 + $0x3b8] sm:$0xff]  ;;  %v165_v48 = vpack.c.bf16 %v30_v42, %v21_v41  ;;  %v109_v42 = vld [vmem:[%s2616_s0 + $0x2f0] sm:$0xff] }
  0x34   :  { %960 = vmatmul.mubr.bf16.gmra.mrb[8].mxu1 %v179_v12  ;;  %870 = vmatprep.mubr.bf16.mxu0 %v187_v19  ;;  %v1786_v12 = vld [vmem:[%s2615_s1 + $0x130] sm:$0xff]   ;;  %v215_v19 = vpack.c.bf16 %v134_v10, %v125_v9  ;;  %v38_v43 = vld [vmem:[%s2616_s0 + $0xb8] sm:$0xff]  ;;  %v1796_v10 = vld [vmem:[%s2615_s1 + $0x220] sm:$0xff]  }
  0x35   :  { %967 = vmatprep.mubr.bf16.mxu1 %v189_v23  ;;  %1545 = vmatpush3.bf16.msra.mxu0 %v1778_v45  ;;  %v141_v23 = vld [vmem:[%s2616_s0 + $0x3f0] sm:$0xff]  ;;  %v163_v45 = vpack.c.bf16 %v28_v40, %v19_v39  ;;  %v201_v39 = vpack.c.bf16 %v102_v33, %v93_v32 }
  0x36   :  { %1609 = vmatpush3.bf16.msra.mxu1 %v1779_v47  ;;  %1546 = vmatprep.subr.bf16.mxu0 %v1780_v58  ;;  %v222_v34 = vpack.c.bf16 %v150_v26, %v141_v23  ;;  %v49_v47 = vld [vmem:[%s2616_s0 + $0x110] sm:$0xff]  ;;  %v103_v23 = vld [vmem:[%s2616_s0 + $0x2c0] sm:$0xff] }
  0x37   :  { %1610 = vmatprep.subr.bf16.mxu1 %v1781_v59  ;;  %v1794_v58 = vld [vmem:[%s2615_s1 + $0x210] sm:$0xff]   ;;  %v58_v59 = vld [vmem:[%s2616_s0 + $0x158] sm:$0xff] }
  0x38   :  { %v85_v9 = vld [vmem:[%s2616_s0 + $0x230] sm:$0xff] }
  0x39   :  { %1547 = vmatpush3.bf16.msra.mxu0 %v1782_v60  ;;  %v67_v60 = vld [vmem:[%s2616_s0 + $0x1a0] sm:$0xff]  ;;  %v129_v56 = vld [vmem:[%s2616_s0 + $0x390] sm:$0xff] }
  0x3a   :  { %1611 = vmatpush3.bf16.msra.mxu1 %v1783_v61  ;;  %1548 = vmatprep.subr.bf16.mxu0 %v1784_v8  ;;  %v184_v0 = vpack.c.bf16 %v67_v60, %v58_v59  ;;  %v76_v8 = vld [vmem:[%s2616_s0 + $0x1e8] sm:$0xff]  ;;  %v155_v59 = vld [vmem:[%s2616_s0 + $0x460] sm:$0xff] }
  0x3b   :  { %871 = vmatmul.mubr.bf16.gmra.mrb[12].mxu0 %v186_v27  ;;  %1612 = vmatprep.subr.bf16.mxu1 %v1785_v11  ;;  %v143_v27 = vld [vmem:[%s2616_s0 + $0x400] sm:$0xff]  ;;  %v193_v14 = vpack.c.bf16 %v85_v9, %v76_v8  ;;  %v148_v60 = vld [vmem:[%s2616_s0 + $0x428] sm:$0xff] }
  0x3c   :  { %968 = vmatmul.mubr.bf16.gmra.mrb[12].mxu1 %v188_v29  ;;  %878 = vmatprep.mubr.bf16.mxu0 %v196_v36  ;;  %v152_v29 = vld [vmem:[%s2616_s0 + $0x448] sm:$0xff]  ;;  %v95_v8 = vld [vmem:[%s2616_s0 + $0x280] sm:$0xff] }
  0x3d   :  { %975 = vmatprep.mubr.bf16.mxu1 %v198_v37  ;;  %1549 = vmatpush3.bf16.msra.mxu0 %v1786_v12  ;;  %v224_v36 = vpack.c.bf16 %v152_v29, %v143_v27  ;;  %v164_v37 = vpack.c.bf16 %v29_v31, %v20_v30  ;;  %v1799_v29 = vld [vmem:[%s2615_s1 + $0x238] sm:$0xff]   ;;  %v91_v30 = vld [vmem:[%s2616_s0 + $0x260] sm:$0xff]  ;;  %v100_v31 = vld [vmem:[%s2616_s0 + $0x2a8] sm:$0xff] }
  0x3e   :  { %1613 = vmatpush3.bf16.msra.mxu1 %v1787_v13  ;;  %1550 = vmatprep.subr.bf16.mxu0 %v1788_v22  ;;  %v191_v13 = vpack.c.bf16 %v83_v7, %v74_v6  ;;  %v94_v22 = vld [vmem:[%s2616_s0 + $0x278] sm:$0xff]  ;;  %v23_v6 = vld [vmem:[%s2616_s0 + $0x40] sm:$0xff]  ;;  %v32_v7 = vld [vmem:[%s2616_s0 + $0x88] sm:$0xff] }
  0x3f   :  { %1614 = vmatprep.subr.bf16.mxu1 %v1789_v24  ;;  %v1798_v24 = vld [vmem:[%s2615_s1 + $0x230] sm:$0xff]   ;;  %v104_v9 = vld [vmem:[%s2616_s0 + $0x2c8] sm:$0xff] }
  0x41   :  { %1551 = vmatpush3.bf16.msra.mxu0 %v1790_v25  ;;  %v190_v25 = vpack.c.bf16 %v82_v17, %v73_v16  ;;  %v113_v16 = vld [vmem:[%s2616_s0 + $0x310] sm:$0xff]  ;;  %v122_v17 = vld [vmem:[%s2616_s0 + $0x358] sm:$0xff] }
  0x42   :  { %1615 = vmatpush3.bf16.msra.mxu1 %v1791_v28  ;;  %1680 = vmatprep.subr.bf16.mxu0 %v1792_v35  ;;  %v202_v28 = vpack.c.bf16 %v103_v23, %v94_v22  ;;  %v212_v23 = vpack.c.bf16 %v122_v17, %v113_v16 }
  0x43   :  { %879 = vmatmul.mubr.bf16.gmra.mrb[16].mxu0 %v195_v44  ;;  %1712 = vmatprep.subr.bf16.mxu1 %v1792_v35  ;;  %v47_v44 = vld [vmem:[%s2616_s0 + $0x100] sm:$0xff] }
  0x44   :  { %976 = vmatmul.mubr.bf16.gmra.mrb[16].mxu1 %v197_v46  ;;  %886 = vmatprep.mubr.bf16.mxu0 %v205_v50  ;;  %v40_v46 = vld [vmem:[%s2616_s0 + $0xc8] sm:$0xff]  ;;  %v173_v49 = vpack.c.bf16 %v47_v44, %v38_v43  ;;  %v118_v43 = vld [vmem:[%s2616_s0 + $0x338] sm:$0xff]  ;;  %v111_v44 = vld [vmem:[%s2616_s0 + $0x300] sm:$0xff] }
  0x45   :  { %983 = vmatprep.mubr.bf16.mxu1 %v207_v53  ;;  %v175_v50 = vpack.c.bf16 %v49_v47, %v40_v46  ;;  %v46_v53 = vld [vmem:[%s2616_s0 + $0xf8] sm:$0xff]  ;;  %v128_v46 = vld [vmem:[%s2616_s0 + $0x388] sm:$0xff]  ;;  %v137_v47 = vld [vmem:[%s2616_s0 + $0x3d0] sm:$0xff] }
  0x46   :  { %v172_v61 = vpack.c.bf16 %v46_v53, %v37_v52  ;;  %v218_v52 = vpack.c.bf16 %v137_v47, %v128_v46 }
  0x4b   :  { %887 = vmatmul.mubr.bf16.gmra.mrb[20].mxu0 %v204_v62  ;;  %v174_v62 = vpack.c.bf16 %v48_v55, %v39_v54  ;;  %v127_v54 = vld [vmem:[%s2616_s0 + $0x380] sm:$0xff]  ;;  %v136_v55 = vld [vmem:[%s2616_s0 + $0x3c8] sm:$0xff] }
  0x4c   :  { %984 = vmatmul.mubr.bf16.gmra.mrb[20].mxu1 %v206_v2  ;;  %894 = vmatprep.mubr.bf16.mxu0 %v214_v3  ;;  %v55_v2 = vld [vmem:[%s2616_s0 + $0x140] sm:$0xff]  ;;  %v64_v3 = vld [vmem:[%s2616_s0 + $0x188] sm:$0xff] }
  0x4d   :  { %991 = vmatprep.mubr.bf16.mxu1 %v216_v5  ;;  %v66_v5 = vld [vmem:[%s2616_s0 + $0x198] sm:$0xff]  ;;  %v181_v11 = vpack.c.bf16 %v64_v3, %v55_v2  ;;  %v145_v2 = vld [vmem:[%s2616_s0 + $0x410] sm:$0xff] }
  0x4e   :  { %v183_v12 = vpack.c.bf16 %v66_v5, %v57_v4  ;;  %v154_v3 = vld [vmem:[%s2616_s0 + $0x458] sm:$0xff]  ;;  %v147_v4 = vld [vmem:[%s2616_s0 + $0x420] sm:$0xff]  ;;  %v156_v5 = vld [vmem:[%s2616_s0 + $0x468] sm:$0xff] }
  0x53   :  { %895 = vmatmul.mubr.bf16.gmra.mrb[24].mxu0 %v213_v18  ;;  %v75_v18 = vld [vmem:[%s2616_s0 + $0x1e0] sm:$0xff] }
  0x54   :  { %992 = vmatmul.mubr.bf16.gmra.mrb[24].mxu1 %v215_v19  ;;  %902 = vmatprep.mubr.bf16.mxu0 %v223_v20  ;;  %v84_v19 = vld [vmem:[%s2616_s0 + $0x228] sm:$0xff] }
  0x55   :  { %999 = vmatprep.mubr.bf16.mxu1 %v225_v21  ;;  %v92_v20 = vld [vmem:[%s2616_s0 + $0x268] sm:$0xff]  ;;  %v101_v21 = vld [vmem:[%s2616_s0 + $0x2b0] sm:$0xff]  ;;  %v192_v26 = vpack.c.bf16 %v84_v19, %v75_v18  ;;  %v59_v18 = vld [vmem:[%s2616_s0 + $0x160] sm:$0xff] }
  0x56   :  { %v200_v27 = vpack.c.bf16 %v101_v21, %v92_v20  ;;  %v68_v19 = vld [vmem:[%s2616_s0 + $0x1a8] sm:$0xff]  ;;  %v131_v20 = vld [vmem:[%s2616_s0 + $0x3a0] sm:$0xff] }
  0x57   :  { %v140_v21 = vld [vmem:[%s2616_s0 + $0x3e8] sm:$0xff] }
  0x5b   :  { %903 = vmatmul.mubr.bf16.gmra.mrb[28].mxu0 %v222_v34  ;;  %v110_v34 = vld [vmem:[%s2616_s0 + $0x2f8] sm:$0xff] }
  0x5c   :  { %1000 = vmatmul.mubr.bf16.gmra.mrb[28].mxu1 %v224_v36  ;;  %1040 = vmatprep.mubr.bf16.mxu0 %v164_v37  ;;  %v112_v36 = vld [vmem:[%s2616_s0 + $0x308] sm:$0xff]  ;;  %v121_v37 = vld [vmem:[%s2616_s0 + $0x350] sm:$0xff] }
  0x5d   :  { %1137 = vmatprep.mubr.bf16.mxu1 %v166_v38  ;;  %v199_v38 = vpack.c.bf16 %v100_v31, %v91_v30  ;;  %v211_v41 = vpack.c.bf16 %v121_v37, %v112_v36 }
  0x63   :  { %1041 = vmatmul.mubr.bf16.vlgmr.msra.gmra.mrb[32].mxu0 %v163_v45  ;;  %v120_v45 = vld [vmem:[%s2616_s0 + $0x348] sm:$0xff] }
  0x64   :  { %1138 = vmatmul.mubr.bf16.vlgmr.msra.gmra.mrb[32].mxu1 %v165_v48  ;;  %1681 = vmatpush3.bf16.msra.mxu0 %v1792_v35  ;;  %v130_v48 = vld [vmem:[%s2616_s0 + $0x398] sm:$0xff] }
  0x65   :  { %1720 = vmatpush3.bf16.msra.mxu1 %v1792_v35  ;;  %1048 = vmatprep.mubr.bf16.mxu0 %v173_v49  ;;  %v119_v35 = vld [vmem:[%s2616_s0 + $0x340] sm:$0xff] }
  0x66   :  { %1145 = vmatprep.mubr.bf16.mxu1 %v175_v50  ;;  %1682 = vmatprep.subr.bf16.mxu0 %v1793_v51  ;;  %v209_v40 = vpack.c.bf16 %v119_v35, %v110_v34  ;;  %v139_v49 = vld [vmem:[%s2616_s0 + $0x3e0] sm:$0xff]  ;;  %v208_v50 = vpack.c.bf16 %v118_v43, %v109_v42 }
  0x67   :  { %1713 = vmatprep.subr.bf16.mxu1 %v1793_v51  ;;  %v220_v53 = vpack.c.bf16 %v139_v49, %v130_v48  ;;  %v2471_v34 = vld [vmem:[%s2617_s2] ss:$0 sm:$0xff] }
  0x68   :  { %1683 = vmatpush3.bf16.msra.mxu0 %v1793_v51 }
  0x69   :  { %1721 = vmatpush3.bf16.msra.mxu1 %v1793_v51  ;;  %1684 = vmatprep.subr.bf16.mxu0 %v1794_v58  ;;  %v210_v51 = vpack.c.bf16 %v120_v45, %v111_v44 }
  0x6a   :  { %1714 = vmatprep.subr.bf16.mxu1 %v1794_v58 }
  0x6b   :  { %1049 = vmatmul.mubr.bf16.gmra.mrb[36].mxu0 %v172_v61  ;;  %v157_v61 = vld [vmem:[%s2616_s0 + $0x470] sm:$0xff] }
  0x6c   :  { %1146 = vmatmul.mubr.bf16.gmra.mrb[36].mxu1 %v174_v62  ;;  %1056 = vmatprep.mubr.bf16.mxu0 %v182_v63  ;;  %v217_v62 = vpack.c.bf16 %v136_v55, %v127_v54  ;;  %v219_v63 = vpack.c.bf16 %v138_v57, %v129_v56 }
  0x6d   :  { %1153 = vmatprep.mubr.bf16.mxu1 %v184_v0  ;;  %1685 = vmatpush3.bf16.msra.mxu0 %v1794_v58 }
  0x6e   :  { %1722 = vmatpush3.bf16.msra.mxu1 %v1794_v58  ;;  %1686 = vmatprep.subr.bf16.mxu0 %v1795_v1  ;;  %v146_v58 = vld [vmem:[%s2616_s0 + $0x418] sm:$0xff] }
  0x6f   :  { %1715 = vmatprep.subr.bf16.mxu1 %v1795_v1  ;;  %v227_v0 = vpack.c.bf16 %v155_v59, %v146_v58 }
  0x71   :  { %1687 = vmatpush3.bf16.msra.mxu0 %v1795_v1 }
  0x72   :  { %1723 = vmatpush3.bf16.msra.mxu1 %v1795_v1  ;;  %1688 = vmatprep.subr.bf16.mxu0 %v1796_v10  ;;  %v229_v1 = vpack.c.bf16 %v157_v61, %v148_v60 }
  0x73   :  { %1057 = vmatmul.mubr.bf16.gmra.mrb[40].mxu0 %v181_v11  ;;  %1716 = vmatprep.subr.bf16.mxu1 %v1796_v10  ;;  %v228_v11 = vpack.c.bf16 %v156_v5, %v147_v4 }
  0x74   :  { %1154 = vmatmul.mubr.bf16.gmra.mrb[40].mxu1 %v183_v12  ;;  %1064 = vmatprep.mubr.bf16.mxu0 %v191_v13  ;;  %v167_v12 = vpack.c.bf16 %v32_v7, %v23_v6  ;;  %v203_v13 = vpack.c.bf16 %v104_v9, %v95_v8 }
  0x75   :  { %1161 = vmatprep.mubr.bf16.mxu1 %v193_v14  ;;  %1689 = vmatpush3.bf16.msra.mxu0 %v1796_v10  ;;  %v41_v14 = vld [vmem:[%s2616_s0 + $0xd0] sm:$0xff] }
  0x76   :  { %1724 = vmatpush3.bf16.msra.mxu1 %v1796_v10  ;;  %1690 = vmatprep.subr.bf16.mxu0 %v1797_v15  ;;  %v226_v10 = vpack.c.bf16 %v154_v3, %v145_v2 }
  0x77   :  { %1717 = vmatprep.subr.bf16.mxu1 %v1797_v15 }
  0x79   :  { %1691 = vmatpush3.bf16.msra.mxu0 %v1797_v15 }
  0x7a   :  { %1725 = vmatpush3.bf16.msra.mxu1 %v1797_v15  ;;  %1692 = vmatprep.subr.bf16.mxu0 %v1798_v24  ;;  %v50_v15 = vld [vmem:[%s2616_s0 + $0x118] sm:$0xff] }
  0x7b   :  { %1065 = vmatmul.mubr.bf16.gmra.mrb[44].mxu0 %v190_v25  ;;  %1718 = vmatprep.subr.bf16.mxu1 %v1798_v24  ;;  %v176_v22 = vpack.c.bf16 %v50_v15, %v41_v14  ;;  %v221_v25 = vpack.c.bf16 %v140_v21, %v131_v20 }
  0x7c   :  { %1162 = vmatmul.mubr.bf16.gmra.mrb[44].mxu1 %v192_v26  ;;  %1072 = vmatprep.mubr.bf16.mxu0 %v200_v27  ;;  %v77_v26 = vld [vmem:[%s2616_s0 + $0x1f0] sm:$0xff]  ;;  %v86_v27 = vld [vmem:[%s2616_s0 + $0x238] sm:$0xff] }
  0x7d   :  { %1169 = vmatprep.mubr.bf16.mxu1 %v202_v28  ;;  %1693 = vmatpush3.bf16.msra.mxu0 %v1798_v24  ;;  %v149_v28 = vld [vmem:[%s2616_s0 + $0x430] sm:$0xff]  ;;  %v194_v30 = vpack.c.bf16 %v86_v27, %v77_v26 }
  0x7e   :  { %1726 = vmatpush3.bf16.msra.mxu1 %v1798_v24  ;;  %1694 = vmatprep.subr.bf16.mxu0 %v1799_v29  ;;  %v185_v24 = vpack.c.bf16 %v68_v19, %v59_v18 }
  0x7f   :  { %1719 = vmatprep.subr.bf16.mxu1 %v1799_v29 }
  0x81   :  { %1695 = vmatpush3.bf16.msra.mxu0 %v1799_v29 }
  0x82   :  { %1727 = vmatpush3.bf16.msra.mxu1 %v1799_v29  ;;  %v158_v29 = vld [vmem:[%s2616_s0 + $0x478] sm:$0xff] }
  0x83   :  { %1073 = vmatmul.mubr.bf16.gmra.mrb[48].mxu0 %v199_v38  ;;  %v230_v31 = vpack.c.bf16 %v158_v29, %v149_v28 }
  0x84   :  { %1170 = vmatmul.mubr.bf16.gmra.mrb[48].mxu1 %v201_v39  ;;  %1080 = vmatprep.mubr.bf16.mxu0 %v209_v40 }
  0x85   :  { %1177 = vmatprep.mubr.bf16.mxu1 %v211_v41 }
  0x8b   :  { %1081 = vmatmul.mubr.bf16.gmra.mrb[52].mxu0 %v208_v50 }
  0x8c   :  { %1178 = vmatmul.mubr.bf16.gmra.mrb[52].mxu1 %v210_v51  ;;  %1088 = vmatprep.mubr.bf16.mxu0 %v218_v52 }
  0x8d   :  { %1185 = vmatprep.mubr.bf16.mxu1 %v220_v53 }
  0x93   :  { %1089 = vmatmul.mubr.bf16.gmra.mrb[56].mxu0 %v217_v62 }
  0x94   :  { %1186 = vmatmul.mubr.bf16.gmra.mrb[56].mxu1 %v219_v63  ;;  %1096 = vmatprep.mubr.bf16.mxu0 %v227_v0 }
  0x95   :  { %1193 = vmatprep.mubr.bf16.mxu1 %v229_v1 }
  0x9b   :  { %1097 = vmatmul.mubr.bf16.gmra.mrb[60].mxu0 %v226_v10 }
  0x9c   :  { %1194 = vmatmul.mubr.bf16.gmra.mrb[60].mxu1 %v228_v11  ;;  %1696 = vmatprep.mubr.bf16.mxu0 %v167_v12 }
  0x9d   :  { %1704 = vmatprep.mubr.bf16.mxu1 %v203_v13 }
  0xa3   :  { %1697 = vmatmul.mubr.bf16.vlgmr.msra.gmra.mrb[64].mxu0 %v176_v22 }
  0xa4   :  { %1705 = vmatmul.mubr.bf16.vlgmr.msra.gmra.mrb[64].mxu1 %v212_v23  ;;  %1700 = vmatprep.mubr.bf16.mxu0 %v185_v24 }
  0xa5   :  { %1708 = vmatprep.mubr.bf16.mxu1 %v221_v25 }
  0xab   :  { %1701 = vmatmul.mubr.bf16.gmra.mrb[68].mxu0 %v194_v30 }
  0xac   :  { %1709 = vmatmul.mubr.bf16.gmra.mrb[68].mxu1 %v230_v31 }
  0xf6   :  { %v1424_v32 = vpop.f32.mrb[0].mxu0 }
  0xf7   :  { %v1488_v33 = vpop.f32.mrb[0].mxu1  ;;  %v1425_v35 = vpop.f32.mrb[1].mxu0 }
  0xf8   :  { %v1426_v36 = vadd.f32 %v1425_v35, %v1424_v32  ;;  %v1489_v37 = vpop.f32.mrb[1].mxu1  ;;  %v1427_v38 = vpop.f32.mrb[2].mxu0 }
  0xf9   :  { %v1490_v39 = vadd.f32 %v1489_v37, %v1488_v33  ;;  %v1491_v40 = vpop.f32.mrb[2].mxu1  ;;  %v1428_v41 = vpop.f32.mrb[3].mxu0 }
  0xfa   :  { %v849_v42 = vadd.f32 %v1426_v36, %v2471_v34  ;;  %v1429_v43 = vadd.f32 %v1428_v41, %v1427_v38  ;;  %v1492_v44 = vpop.f32.mrb[3].mxu1 }
  0xfb   :  { %v1493_v45 = vadd.f32 %v1492_v44, %v1491_v40 }
  0xfc   :  { %v2474_v46 = vadd.f32 %v1490_v39, %v849_v42  ;;  %v852_v47 = vadd.f32 %v1429_v43, %v2471_v34 }
  0xfe   :  { %v2477_v48 = vadd.f32 %v1493_v45, %v852_v47  ;;  %v1430_v49 = vpop.f32.mrb[4].mxu0 }
  0xff   :  { %v1494_v50 = vpop.f32.mrb[4].mxu1  ;;  %v1431_v51 = vpop.f32.mrb[5].mxu0 }
 0x100   :  { %v1432_v52 = vadd.f32 %v1431_v51, %v1430_v49  ;;  %v1495_v53 = vpop.f32.mrb[5].mxu1  ;;  %v1433_v54 = vpop.f32.mrb[6].mxu0 }
 0x101   :  { %v1496_v55 = vadd.f32 %v1495_v53, %v1494_v50  ;;  %v1497_v56 = vpop.f32.mrb[6].mxu1  ;;  %v1434_v57 = vpop.f32.mrb[7].mxu0 }
 0x102   :  { %v857_v58 = vadd.f32 %v1432_v52, %v2471_v34  ;;  %v1435_v59 = vadd.f32 %v1434_v57, %v1433_v54  ;;  %v1498_v60 = vpop.f32.mrb[7].mxu1 }
 0x103   :  { %v1499_v61 = vadd.f32 %v1498_v60, %v1497_v56 }
 0x104   :  { %v2480_v62 = vadd.f32 %v1496_v55, %v857_v58  ;;  %v860_v63 = vadd.f32 %v1435_v59, %v2471_v34 }
 0x106   :  { %v2483_v0 = vadd.f32 %v1499_v61, %v860_v63  ;;  %v1436_v1 = vpop.f32.mrb[8].mxu0 }
 0x107   :  { %v1500_v2 = vpop.f32.mrb[8].mxu1  ;;  %v1437_v3 = vpop.f32.mrb[9].mxu0 }
 0x108   :  { %v1438_v4 = vadd.f32 %v1437_v3, %v1436_v1  ;;  %v1501_v5 = vpop.f32.mrb[9].mxu1  ;;  %v1439_v6 = vpop.f32.mrb[10].mxu0 }
 0x109   :  { %v1502_v7 = vadd.f32 %v1501_v5, %v1500_v2  ;;  %v1503_v8 = vpop.f32.mrb[10].mxu1  ;;  %v1440_v9 = vpop.f32.mrb[11].mxu0 }
 0x10a   :  { %v865_v10 = vadd.f32 %v1438_v4, %v2471_v34  ;;  %v1441_v11 = vadd.f32 %v1440_v9, %v1439_v6  ;;  %v1504_v12 = vpop.f32.mrb[11].mxu1 }
 0x10b   :  { %v1505_v13 = vadd.f32 %v1504_v12, %v1503_v8 }
 0x10c   :  { %v2486_v14 = vadd.f32 %v1502_v7, %v865_v10  ;;  %v868_v15 = vadd.f32 %v1441_v11, %v2471_v34 }
 0x10e   :  { %v2489_v16 = vadd.f32 %v1505_v13, %v868_v15  ;;  %v1442_v17 = vpop.f32.mrb[12].mxu0 }
 0x10f   :  { %v1506_v18 = vpop.f32.mrb[12].mxu1  ;;  %v1443_v19 = vpop.f32.mrb[13].mxu0 }
 0x110   :  { %v1444_v20 = vadd.f32 %v1443_v19, %v1442_v17  ;;  %v1507_v21 = vpop.f32.mrb[13].mxu1  ;;  %v1445_v22 = vpop.f32.mrb[14].mxu0 }
 0x111   :  { %v1508_v23 = vadd.f32 %v1507_v21, %v1506_v18  ;;  %v1509_v24 = vpop.f32.mrb[14].mxu1  ;;  %v1446_v25 = vpop.f32.mrb[15].mxu0 }
 0x112   :  { %v873_v26 = vadd.f32 %v1444_v20, %v2471_v34  ;;  %v1447_v27 = vadd.f32 %v1446_v25, %v1445_v22  ;;  %v1510_v28 = vpop.f32.mrb[15].mxu1 }
 0x113   :  { %v1511_v29 = vadd.f32 %v1510_v28, %v1509_v24 }
 0x114   :  { %v2492_v30 = vadd.f32 %v1508_v23, %v873_v26  ;;  %v876_v31 = vadd.f32 %v1447_v27, %v2471_v34 }
 0x116   :  { %v2495_v32 = vadd.f32 %v1511_v29, %v876_v31  ;;  %v1448_v33 = vpop.f32.mrb[16].mxu0 }
 0x117   :  { %v1512_v35 = vpop.f32.mrb[16].mxu1  ;;  %v1449_v36 = vpop.f32.mrb[17].mxu0 }
 0x118   :  { %v1450_v37 = vadd.f32 %v1449_v36, %v1448_v33  ;;  %v1513_v38 = vpop.f32.mrb[17].mxu1  ;;  %v1451_v39 = vpop.f32.mrb[18].mxu0 }
 0x119   :  { %v1514_v40 = vadd.f32 %v1513_v38, %v1512_v35  ;;  %v1515_v41 = vpop.f32.mrb[18].mxu1  ;;  %v1452_v42 = vpop.f32.mrb[19].mxu0 }
 0x11a   :  { %v881_v43 = vadd.f32 %v1450_v37, %v2471_v34  ;;  %v1453_v44 = vadd.f32 %v1452_v42, %v1451_v39  ;;  %v1516_v45 = vpop.f32.mrb[19].mxu1 }
 0x11b   :  { %v1517_v47 = vadd.f32 %v1516_v45, %v1515_v41 }
 0x11c   :  { %v2498_v49 = vadd.f32 %v1514_v40, %v881_v43  ;;  %v884_v50 = vadd.f32 %v1453_v44, %v2471_v34 }
 0x11e   :  { %v2501_v51 = vadd.f32 %v1517_v47, %v884_v50  ;;  %v1454_v52 = vpop.f32.mrb[20].mxu0 }
 0x11f   :  { %v1518_v53 = vpop.f32.mrb[20].mxu1  ;;  %v1455_v54 = vpop.f32.mrb[21].mxu0 }
 0x120   :  { %v1456_v55 = vadd.f32 %v1455_v54, %v1454_v52  ;;  %v1519_v56 = vpop.f32.mrb[21].mxu1  ;;  %v1457_v57 = vpop.f32.mrb[22].mxu0 }
 0x121   :  { %v1520_v58 = vadd.f32 %v1519_v56, %v1518_v53  ;;  %v1521_v59 = vpop.f32.mrb[22].mxu1  ;;  %v1458_v60 = vpop.f32.mrb[23].mxu0 }
 0x122   :  { %v889_v61 = vadd.f32 %v1456_v55, %v2471_v34  ;;  %v1459_v63 = vadd.f32 %v1458_v60, %v1457_v57  ;;  %v1522_v1 = vpop.f32.mrb[23].mxu1 }
 0x123   :  { %v1523_v2 = vadd.f32 %v1522_v1, %v1521_v59 }
 0x124   :  { %v2504_v3 = vadd.f32 %v1520_v58, %v889_v61  ;;  %v892_v4 = vadd.f32 %v1459_v63, %v2471_v34 }
 0x126   :  { %v2507_v5 = vadd.f32 %v1523_v2, %v892_v4  ;;  %v1460_v6 = vpop.f32.mrb[24].mxu0 }
 0x127   :  { %v1524_v7 = vpop.f32.mrb[24].mxu1  ;;  %v1461_v8 = vpop.f32.mrb[25].mxu0 }
 0x128   :  { %v1462_v9 = vadd.f32 %v1461_v8, %v1460_v6  ;;  %v1525_v10 = vpop.f32.mrb[25].mxu1  ;;  %v1463_v11 = vpop.f32.mrb[26].mxu0 }
 0x129   :  { %v1526_v12 = vadd.f32 %v1525_v10, %v1524_v7  ;;  %v1527_v13 = vpop.f32.mrb[26].mxu1  ;;  %v1464_v15 = vpop.f32.mrb[27].mxu0 }
 0x12a   :  { %v897_v17 = vadd.f32 %v1462_v9, %v2471_v34  ;;  %v1465_v18 = vadd.f32 %v1464_v15, %v1463_v11  ;;  %v1528_v19 = vpop.f32.mrb[27].mxu1 }
 0x12b   :  { %v1529_v20 = vadd.f32 %v1528_v19, %v1527_v13 }
 0x12c   :  { %v2510_v21 = vadd.f32 %v1526_v12, %v897_v17  ;;  %v900_v22 = vadd.f32 %v1465_v18, %v2471_v34 }
 0x12e   :  { %v2513_v23 = vadd.f32 %v1529_v20, %v900_v22  ;;  %v1466_v24 = vpop.f32.mrb[28].mxu0 }
 0x12f   :  { %v1530_v25 = vpop.f32.mrb[28].mxu1  ;;  %v1467_v26 = vpop.f32.mrb[29].mxu0 }
 0x130   :  { %v1468_v27 = vadd.f32 %v1467_v26, %v1466_v24  ;;  %v1531_v28 = vpop.f32.mrb[29].mxu1  ;;  %v1469_v29 = vpop.f32.mrb[30].mxu0 }
 0x131   :  { %v1532_v31 = vadd.f32 %v1531_v28, %v1530_v25  ;;  %v1533_v33 = vpop.f32.mrb[30].mxu1  ;;  %v1470_v35 = vpop.f32.mrb[31].mxu0 }
 0x132   :  { %v905_v36 = vadd.f32 %v1468_v27, %v2471_v34  ;;  %v1471_v37 = vadd.f32 %v1470_v35, %v1469_v29  ;;  %v1534_v38 = vpop.f32.mrb[31].mxu1 }
 0x133   :  { %v1535_v39 = vadd.f32 %v1534_v38, %v1533_v33 }
 0x134   :  { %v2516_v40 = vadd.f32 %v1532_v31, %v905_v36  ;;  %v908_v41 = vadd.f32 %v1471_v37, %v2471_v34 }
 0x136   :  { %v2519_v42 = vadd.f32 %v1535_v39, %v908_v41  ;;  %v1552_v43 = vpop.f32.mrb[32].mxu0 }
 0x137   :  { %v1616_v44 = vpop.f32.mrb[32].mxu1  ;;  %v1553_v45 = vpop.f32.mrb[33].mxu0 }
 0x138   :  { %v1554_v47 = vadd.f32 %v1553_v45, %v1552_v43  ;;  %v1617_v50 = vpop.f32.mrb[33].mxu1  ;;  %v1555_v52 = vpop.f32.mrb[34].mxu0 }
 0x139   :  { %v1618_v53 = vadd.f32 %v1617_v50, %v1616_v44  ;;  %v1619_v54 = vpop.f32.mrb[34].mxu1  ;;  %v1556_v55 = vpop.f32.mrb[35].mxu0 }
 0x13a   :  { %v1043_v56 = vadd.f32 %v1554_v47, %v2474_v46  ;;  %v1557_v57 = vadd.f32 %v1556_v55, %v1555_v52  ;;  %v1620_v58 = vpop.f32.mrb[35].mxu1 }
 0x13b   :  { %v1621_v59 = vadd.f32 %v1620_v58, %v1619_v54 }
 0x13c   :  { %v1046_v60 = vadd.f32 %v1557_v57, %v2477_v48  ;;  %v2523_v61 = vadd.f32 %v1618_v53, %v1043_v56 }
 0x13e   :  { %v1558_v34 = vpop.f32.mrb[36].mxu0  ;;  %v2525_v63 = vadd.f32 %v1621_v59, %v1046_v60 }
 0x13f   :  { %v1622_v1 = vpop.f32.mrb[36].mxu1  ;;  %v1559_v2 = vpop.f32.mrb[37].mxu0 }
 0x140   :  { %v1560_v4 = vadd.f32 %v1559_v2, %v1558_v34  ;;  %v1623_v6 = vpop.f32.mrb[37].mxu1  ;;  %v1561_v7 = vpop.f32.mrb[38].mxu0 }
 0x141   :  { %v1624_v8 = vadd.f32 %v1623_v6, %v1622_v1  ;;  %v1625_v9 = vpop.f32.mrb[38].mxu1  ;;  %v1562_v10 = vpop.f32.mrb[39].mxu0 }
 0x142   :  { %v1051_v46 = vadd.f32 %v1560_v4, %v2480_v62  ;;  %v1563_v11 = vadd.f32 %v1562_v10, %v1561_v7  ;;  %v1626_v12 = vpop.f32.mrb[39].mxu1 }
 0x143   :  { %v1627_v13 = vadd.f32 %v1626_v12, %v1625_v9 }
 0x144   :  { %v1054_v48 = vadd.f32 %v1563_v11, %v2483_v0  ;;  %v2529_v15 = vadd.f32 %v1624_v8, %v1051_v46 }
 0x146   :  { %v1564_v17 = vpop.f32.mrb[40].mxu0  ;;  %v2531_v18 = vadd.f32 %v1627_v13, %v1054_v48 }
 0x147   :  { %v1628_v19 = vpop.f32.mrb[40].mxu1  ;;  %v1565_v20 = vpop.f32.mrb[41].mxu0 }
 0x148   :  { %v1566_v22 = vadd.f32 %v1565_v20, %v1564_v17  ;;  %v1629_v24 = vpop.f32.mrb[41].mxu1  ;;  %v1567_v25 = vpop.f32.mrb[42].mxu0 }
 0x149   :  { %v1630_v26 = vadd.f32 %v1629_v24, %v1628_v19  ;;  %v1631_v27 = vpop.f32.mrb[42].mxu1  ;;  %v1568_v28 = vpop.f32.mrb[43].mxu0 }
 0x14a   :  { %v1059_v62 = vadd.f32 %v1566_v22, %v2486_v14  ;;  %v1569_v29 = vadd.f32 %v1568_v28, %v1567_v25  ;;  %v1632_v31 = vpop.f32.mrb[43].mxu1 }
 0x14b   :  { %v1633_v33 = vadd.f32 %v1632_v31, %v1631_v27 }
 0x14c   :  { %v1062_v0 = vadd.f32 %v1569_v29, %v2489_v16  ;;  %v2535_v35 = vadd.f32 %v1630_v26, %v1059_v62 }
 0x14e   :  { %v1570_v36 = vpop.f32.mrb[44].mxu0  ;;  %v2537_v37 = vadd.f32 %v1633_v33, %v1062_v0 }
 0x14f   :  { %v1634_v38 = vpop.f32.mrb[44].mxu1  ;;  %v1571_v39 = vpop.f32.mrb[45].mxu0 }
 0x150   :  { %v1572_v41 = vadd.f32 %v1571_v39, %v1570_v36  ;;  %v1635_v43 = vpop.f32.mrb[45].mxu1  ;;  %v1573_v44 = vpop.f32.mrb[46].mxu0 }
 0x151   :  { %v1636_v45 = vadd.f32 %v1635_v43, %v1634_v38  ;;  %v1637_v47 = vpop.f32.mrb[46].mxu1  ;;  %v1574_v50 = vpop.f32.mrb[47].mxu0 }
 0x152   :  { %v1067_v14 = vadd.f32 %v1572_v41, %v2492_v30  ;;  %v1575_v52 = vadd.f32 %v1574_v50, %v1573_v44  ;;  %v1638_v53 = vpop.f32.mrb[47].mxu1 }
 0x153   :  { %v1639_v54 = vadd.f32 %v1638_v53, %v1637_v47 }
 0x154   :  { %v1070_v16 = vadd.f32 %v1575_v52, %v2495_v32  ;;  %v2541_v55 = vadd.f32 %v1636_v45, %v1067_v14 }
 0x156   :  { %v1576_v56 = vpop.f32.mrb[48].mxu0  ;;  %v2543_v57 = vadd.f32 %v1639_v54, %v1070_v16 }
 0x157   :  { %v1640_v58 = vpop.f32.mrb[48].mxu1  ;;  %v1577_v59 = vpop.f32.mrb[49].mxu0 }
 0x158   :  { %v1578_v60 = vadd.f32 %v1577_v59, %v1576_v56  ;;  %v1641_v34 = vpop.f32.mrb[49].mxu1  ;;  %v1579_v1 = vpop.f32.mrb[50].mxu0 }
 0x159   :  { %v1642_v2 = vadd.f32 %v1641_v34, %v1640_v58  ;;  %v1643_v4 = vpop.f32.mrb[50].mxu1  ;;  %v1580_v6 = vpop.f32.mrb[51].mxu0 }
 0x15a   :  { %v1075_v30 = vadd.f32 %v1578_v60, %v2498_v49  ;;  %v1581_v7 = vadd.f32 %v1580_v6, %v1579_v1  ;;  %v1644_v8 = vpop.f32.mrb[51].mxu1 }
 0x15b   :  { %v1645_v9 = vadd.f32 %v1644_v8, %v1643_v4 }
 0x15c   :  { %v1078_v32 = vadd.f32 %v1581_v7, %v2501_v51  ;;  %v1172_v10 = vadd.f32 %v1642_v2, %v1075_v30 }
 0x15e   :  { %v1582_v46 = vpop.f32.mrb[52].mxu0  ;;  %v2547_v11 = vadd.f32 %v1645_v9, %v1078_v32 }
 0x15f   :  { %v1646_v12 = vpop.f32.mrb[52].mxu1  ;;  %v1583_v13 = vpop.f32.mrb[53].mxu0 }
 0x160   :  { %v1584_v48 = vadd.f32 %v1583_v13, %v1582_v46  ;;  %v1647_v17 = vpop.f32.mrb[53].mxu1  ;;  %v1585_v19 = vpop.f32.mrb[54].mxu0 }
 0x161   :  { %v1648_v20 = vadd.f32 %v1647_v17, %v1646_v12  ;;  %v1649_v22 = vpop.f32.mrb[54].mxu1  ;;  %v1586_v24 = vpop.f32.mrb[55].mxu0 }
 0x162   :  { %v1083_v25 = vadd.f32 %v1584_v48, %v2504_v3  ;;  %v1587_v49 = vadd.f32 %v1586_v24, %v1585_v19  ;;  %v1650_v26 = vpop.f32.mrb[55].mxu1 }
 0x163   :  { %v1651_v27 = vadd.f32 %v1650_v26, %v1649_v22 }
 0x164   :  { %v1086_v28 = vadd.f32 %v1587_v49, %v2507_v5  ;;  %v1180_v51 = vadd.f32 %v1648_v20, %v1083_v25 }
 0x166   :  { %v1588_v62 = vpop.f32.mrb[56].mxu0  ;;  %v1183_v29 = vadd.f32 %v1651_v27, %v1086_v28 }
 0x167   :  { %v1652_v31 = vpop.f32.mrb[56].mxu1  ;;  %v1589_v33 = vpop.f32.mrb[57].mxu0 }
 0x168   :  { %v1590_v0 = vadd.f32 %v1589_v33, %v1588_v62  ;;  %v1653_v36 = vpop.f32.mrb[57].mxu1  ;;  %v1591_v38 = vpop.f32.mrb[58].mxu0 }
 0x169   :  { %v1654_v39 = vadd.f32 %v1653_v36, %v1652_v31  ;;  %v1655_v41 = vpop.f32.mrb[58].mxu1  ;;  %v1592_v43 = vpop.f32.mrb[59].mxu0 }
 0x16a   :  { %v1091_v44 = vadd.f32 %v1590_v0, %v2510_v21  ;;  %v1593_v45 = vadd.f32 %v1592_v43, %v1591_v38  ;;  %v1656_v3 = vpop.f32.mrb[59].mxu1 }
 0x16b   :  { %v1657_v47 = vadd.f32 %v1656_v3, %v1655_v41 }
 0x16c   :  { %v1094_v50 = vadd.f32 %v1593_v45, %v2513_v23  ;;  %v1188_v14 = vadd.f32 %v1654_v39, %v1091_v44 }
 0x16e   :  { %v1594_v5 = vpop.f32.mrb[60].mxu0  ;;  %v2553_v52 = vadd.f32 %v1657_v47, %v1094_v50 }
 0x16f   :  { %v1658_v53 = vpop.f32.mrb[60].mxu1  ;;  %v1595_v54 = vpop.f32.mrb[61].mxu0 }
 0x170   :  { %v1596_v16 = vadd.f32 %v1595_v54, %v1594_v5  ;;  %v1659_v56 = vpop.f32.mrb[61].mxu1  ;;  %v1597_v58 = vpop.f32.mrb[62].mxu0 }
 0x171   :  { %v1660_v59 = vadd.f32 %v1659_v56, %v1658_v53  ;;  %v1661_v60 = vpop.f32.mrb[62].mxu1  ;;  %v1598_v34 = vpop.f32.mrb[63].mxu0 }
 0x172   :  { %v1099_v1 = vadd.f32 %v1596_v16, %v2516_v40  ;;  %v1599_v21 = vadd.f32 %v1598_v34, %v1597_v58  ;;  %v1662_v2 = vpop.f32.mrb[63].mxu1 }
 0x173   :  { %v1663_v4 = vadd.f32 %v1662_v2, %v1661_v60 }
 0x174   :  { %v1102_v6 = vadd.f32 %v1599_v21, %v2519_v42  ;;  %v1196_v23 = vadd.f32 %v1660_v59, %v1099_v1 }
 0x176   :  { %v1698_v30 = vpop.f32.mrb[64].mxu0  ;;  %v1199_v7 = vadd.f32 %v1663_v4, %v1102_v6 }
 0x177   :  { %v1245_v8 = vadd.f32 %v1698_v30, %v2529_v15  ;;  %v1706_v9 = vpop.f32.mrb[64].mxu1  ;;  %v1236_v32 = vpop.f32.mrb[65].mxu0 }
 0x178   :  { %v1277_v46 = vadd.f32 %v1706_v9, %v1180_v51  ;;  %v1237_v12 = vadd.f32 %v1236_v32, %v2523_v61  ;;  %v1268_v13 = vpop.f32.mrb[65].mxu1  ;;  %v1699_v48 = vpop.f32.mrb[66].mxu0 }
 0x179   :  { %v1301_v17 = vmax.f32 %v1245_v8, 0.0  ;;  %v1269_v19 = vadd.f32 %v1268_v13, %v1172_v10  ;;  %v1248_v40 = vadd.f32 %v1699_v48, %v2531_v18  ;;  %v1707_v20 = vpop.f32.mrb[66].mxu1  ;;  %v1239_v22 = vpop.f32.mrb[67].mxu0 }
 0x17a   :  { %v1309_v24 = vmax.f32 %v1277_v46, 0.0  ;;  %v1299_v42 = vmax.f32 %v1237_v12, 0.0  ;;  %v1280_v25 = vadd.f32 %v1707_v20, %v1183_v29  ;;  %v1240_v49 = vadd.f32 %v1239_v22, %v2525_v63  ;;  %v1271_v26 = vpop.f32.mrb[67].mxu1 }
 0x17b   :  { %1317 = vst [vmem:[%s2618_s3 + $0x10] sm:$0xff] %v1301_v17  ;;  %v1307_v15 = vmax.f32 %v1269_v19, 0.0  ;;  %v1302_v61 = vmax.f32 %v1248_v40, 0.0  ;;  %v1272_v27 = vadd.f32 %v1271_v26, %v2547_v11 }
 0x17c   :  { %1325 = vst [vmem:[%s2618_s3 + $0x50] sm:$0xff] %v1309_v24  ;;  %1315 = vst [vmem:[%s2618_s3] sm:$0xff] %v1299_v42  ;;  %v1310_v18 = vmax.f32 %v1280_v25, 0.0  ;;  %v1300_v10 = vmax.f32 %v1240_v49, 0.0 }
 0x17d   :  { %1323 = vst [vmem:[%s2618_s3 + $0x40] sm:$0xff] %v1307_v15  ;;  %1318 = vst [vmem:[%s2618_s3 + $0x18] sm:$0xff] %v1302_v61  ;;  %v1308_v63 = vmax.f32 %v1272_v27, 0.0 }
 0x17e   :  { %1326 = vst [vmem:[%s2618_s3 + $0x58] sm:$0xff] %v1310_v18  ;;  %1316 = vst [vmem:[%s2618_s3 + $0x8] sm:$0xff] %v1300_v10  ;;  %v1702_v11 = vpop.f32.mrb[68].mxu0 }
 0x17f   :  { %1324 = vst [vmem:[%s2618_s3 + $0x48] sm:$0xff] %v1308_v63  ;;  %v1261_v28 = vadd.f32 %v1702_v11, %v2541_v55  ;;  %v1710_v51 = vpop.f32.mrb[68].mxu1  ;;  %v1252_v62 = vpop.f32.mrb[69].mxu0 }
 0x180   :  { %v1293_v29 = vadd.f32 %v1710_v51, %v1196_v23  ;;  %v1253_v31 = vadd.f32 %v1252_v62, %v2535_v35  ;;  %v1284_v33 = vpop.f32.mrb[69].mxu1  ;;  %v1703_v0 = vpop.f32.mrb[70].mxu0 }
 0x181   :  { %v1305_v36 = vmax.f32 %v1261_v28, 0.0  ;;  %v1285_v38 = vadd.f32 %v1284_v33, %v1188_v14  ;;  %v1264_v39 = vadd.f32 %v1703_v0, %v2543_v57  ;;  %v1711_v41 = vpop.f32.mrb[70].mxu1  ;;  %v1255_v43 = vpop.f32.mrb[71].mxu0 }
 0x182   :  { %v1313_v44 = vmax.f32 %v1293_v29, 0.0  ;;  %v1303_v45 = vmax.f32 %v1253_v31, 0.0  ;;  %v1296_v3 = vadd.f32 %v1711_v41, %v1199_v7  ;;  %v1256_v47 = vadd.f32 %v1255_v43, %v2537_v37  ;;  %v1287_v50 = vpop.f32.mrb[71].mxu1 }
 0x183   :  { %1321 = vst [vmem:[%s2618_s3 + $0x30] sm:$0xff] %v1305_v36  ;;  %v1311_v55 = vmax.f32 %v1285_v38, 0.0  ;;  %v1306_v35 = vmax.f32 %v1264_v39, 0.0  ;;  %v1288_v5 = vadd.f32 %v1287_v50, %v2553_v52 }
 0x184   :  { %1329 = vst [vmem:[%s2618_s3 + $0x70] sm:$0xff] %v1313_v44  ;;  %1319 = vst [vmem:[%s2618_s3 + $0x20] sm:$0xff] %v1303_v45  ;;  %v1314_v57 = vmax.f32 %v1296_v3, 0.0  ;;  %v1304_v14 = vmax.f32 %v1256_v47, 0.0 }
 0x185   :  { %1327 = vst [vmem:[%s2618_s3 + $0x60] sm:$0xff] %v1311_v55  ;;  %1322 = vst [vmem:[%s2618_s3 + $0x38] sm:$0xff] %v1306_v35  ;;  %v1312_v37 = vmax.f32 %v1288_v5, 0.0 }
 0x186   :  { %1330 = vst [vmem:[%s2618_s3 + $0x78] sm:$0xff] %v1314_v57  ;;  %1320 = vst [vmem:[%s2618_s3 + $0x28] sm:$0xff] %v1304_v14 }
 0x187   :  { %1328 = vst [vmem:[%s2618_s3 + $0x68] sm:$0xff] %v1312_v37 }

</bundles_post_ra>
